<compile_context>
chip_gen: v7x
topology: tpu7x:2x2x1
jax: 0.10.0
libtpu: 0.0.40
codegen_flags: <defaults>
</compile_context>

<pallas_src>
import functools

import jax
import jax.numpy as jnp
from jax.experimental import pallas as pl
from jax.experimental.pallas import tpu as pltpu


# ----------------------------- in-kernel helpers -----------------------------

def _gelu(x):
    # TODO(synk): PyTorch nn.GELU default is the exact erf GELU; tanh approximation is
    # used since erf has no guaranteed Mosaic lowering (differs at ~1e-3).
    c = 0.7978845608028654  # sqrt(2/pi)
    return 0.5 * x * (1.0 + jnp.tanh(c * (x + 0.044715 * x * x * x)))


def _ln(x, g, b, eps):
    mu = jnp.mean(x, axis=-1, keepdims=True)
    var = jnp.mean(jnp.square(x - mu), axis=-1, keepdims=True)
    return (x - mu) * jax.lax.rsqrt(var + eps) * g + b


def _im2col_1d(x, kernel, stride):
    # x: (B, T, C) -> patches (B, T_out, kernel*C)   (glue, plain JAX)
    B, T, C = x.shape
    T_out = (T - kernel) // stride + 1
    idx = jnp.arange(T_out)[:, None] * stride + jnp.arange(kernel)[None, :]
    patches = x[:, idx, :]                              # (B, T_out, kernel, C)
    return patches.reshape(B, T_out, kernel * C), T_out


# ----------------------------- generic pallas plumbing -----------------------------

def _const_spec(shape):
    nd = len(shape)

    def idx(i):
        return (0,) * nd

    return pl.BlockSpec(shape, idx)


def _pallas_full(kernel_fn, out_struct, *args):
    """Single-program call: every operand is one whole-array block resident in VMEM."""
    return pl.pallas_call(
        kernel_fn,
        out_shape=out_struct,
        grid=(1,),
        in_specs=[_const_spec(a.shape) for a in args],
        out_specs=_const_spec(out_struct.shape),
    )(*args)


# ----------------------------- Pallas kernels -----------------------------

def _linear_kernel(x_ref, w_ref, b_ref, o_ref, *, apply_gelu):
    y = jnp.dot(x_ref[...].astype(jnp.float32), w_ref[...],
                preferred_element_type=jnp.float32) + b_ref[...]
    if apply_gelu:
        y = _gelu(y)
    o_ref[...] = y.astype(o_ref.dtype)


def linear(x, w, b, *, apply_gelu=False):
    """x: (M, K), w: (K, N), b: (1, N) -> (M, N)."""
    M, _ = x.shape
    N = w.shape[1]
    return _pallas_full(functools.partial(_linear_kernel, apply_gelu=apply_gelu),
                        jax.ShapeDtypeStruct((M, N), x.dtype), x, w, b)


def _conv_ln_gelu_kernel(p_ref, w_ref, b_ref, g_ref, bb_ref, o_ref, *, eps):
    # conv (as matmul) -> LayerNorm over channels -> GELU, all on the VMEM-resident tile.
    y = jnp.dot(p_ref[...].astype(jnp.float32), w_ref[...],
                preferred_element_type=jnp.float32) + b_ref[...]
    o_ref[...] = _gelu(_ln(y, g_ref[...], bb_ref[...], eps)).astype(o_ref.dtype)


def conv_ln_gelu(patches, w, b, g, bb):
    M, _ = patches.shape
    N = w.shape[1]
    return _pallas_full(functools.partial(_conv_ln_gelu_kernel, eps=1e-5),
                        jax.ShapeDtypeStruct((M, N), patches.dtype),
                        patches, w, b, g, bb)


def _ln_linear_kernel(x_ref, g_ref, bb_ref, w_ref, b_ref, o_ref, *, eps):
    y = _ln(x_ref[...].astype(jnp.float32), g_ref[...], bb_ref[...], eps)
    o_ref[...] = (jnp.dot(y, w_ref[...], preferred_element_type=jnp.float32)
                  + b_ref[...]).astype(o_ref.dtype)


def ln_linear(x, g, bb, w, b):
    M, _ = x.shape
    N = w.shape[1]
    return _pallas_full(functools.partial(_ln_linear_kernel, eps=1e-5),
                        jax.ShapeDtypeStruct((M, N), x.dtype), x, g, bb, w, b)


def _add_ln_kernel(a_ref, b_ref, g_ref, bb_ref, o_ref, *, eps):
    x = a_ref[...].astype(jnp.float32) + b_ref[...].astype(jnp.float32)
    o_ref[...] = _ln(x, g_ref[...], bb_ref[...], eps).astype(o_ref.dtype)


def add_layernorm(a, b, g, bb):
    M, N = a.shape
    return _pallas_full(functools.partial(_add_ln_kernel, eps=1e-5),
                        jax.ShapeDtypeStruct((M, N), a.dtype), a, b, g, bb)


def _encoder_layer_kernel(x_ref, ln1_g, ln1_b, wqkv, bqkv, wo, bo,
                          ln2_g, ln2_b, w1, b1, w2, b2, o_ref, *, H, hd, eps):
    """One full transformer encoder layer (layer_norm_first=True) for one batch element."""
    x = x_ref[0].astype(jnp.float32)                    # (T, D)
    D = H * hd

    # ---- self-attention block (pre-LN); 1/sqrt(hd) pre-folded into wqkv/bqkv ----
    y = _ln(x, ln1_g[...], ln1_b[...], eps)
    qkv = jnp.dot(y, wqkv[...], preferred_element_type=jnp.float32) + bqkv[...]   # (T, 3D)

    ctx = None
    for h in range(H):                                   # static loop, all heads in-kernel
        q = qkv[:, h * hd:(h + 1) * hd]                  # (T, hd)
        k = qkv[:, D + h * hd:D + (h + 1) * hd]
        v = qkv[:, 2 * D + h * hd:2 * D + (h + 1) * hd]
        s = jnp.dot(q, k.T, preferred_element_type=jnp.float32)                   # (T, T)
        m = jnp.max(s, axis=-1, keepdims=True)
        p = jnp.exp(s - m)
        p = p * pl.reciprocal(jnp.sum(p, axis=-1, keepdims=True), approx=True)
        oh = jnp.dot(p, v, preferred_element_type=jnp.float32)                    # (T, hd)
        part = jnp.dot(oh, wo[pl.ds(h * hd, hd), :],
                       preferred_element_type=jnp.float32)                        # (T, D)
        ctx = part if ctx is None else ctx + part
    x = x + ctx + bo[...]

    # ---- feed-forward block (pre-LN) ----
    y = _ln(x, ln2_g[...], ln2_b[...], eps)
    ff = _gelu(jnp.dot(y, w1[...], preferred_element_type=jnp.float32) + b1[...])
    ff = jnp.dot(ff, w2[...], preferred_element_type=jnp.float32) + b2[...]
    o_ref[0] = (x + ff).astype(o_ref.dtype)


def encoder_layer(x, lp, *, num_heads):
    B, T, D = x.shape
    hd = D // num_heads
    args = [x, lp["ln1_g"], lp["ln1_b"], lp["wqkv"], lp["bqkv"], lp["wo"], lp["bo"],
            lp["ln2_g"], lp["ln2_b"], lp["w1"], lp["b1"], lp["w2"], lp["b2"]]
    in_specs = [pl.BlockSpec((1, T, D), lambda b: (b, 0, 0))]
    in_specs += [_const_spec(a.shape) for a in args[1:]]
    return pl.pallas_call(
        functools.partial(_encoder_layer_kernel, H=num_heads, hd=hd, eps=1e-5),
        out_shape=jax.ShapeDtypeStruct((B, T, D), x.dtype),
        grid=(B,),
        in_specs=in_specs,
        out_specs=pl.BlockSpec((1, T, D), lambda b: (b, 0, 0)),
        compiler_params=pltpu.CompilerParams(dimension_semantics=("parallel",)),
    )(*args)


# ----------------------------- model -----------------------------

CFG = dict(
    conv_layers=[(32, 10, 5), (32, 3, 2), (32, 2, 2)],  # (out_ch, kernel, stride)
    embed_dim=64,
    num_heads=4,
    ffn_dim=128,
    num_layers=2,
    pos_conv_kernel=8,
    pos_conv_groups=4,
    num_labels=29,   # HUBERT_ASR label set size
)


def init_params(key, cfg):
    def nrm(k, shape, scale=0.02):
        return scale * jax.random.normal(k, shape, jnp.float32)

    keys = iter(jax.random.split(key, 256))
    params = {}

    # feature extractor ("layer_norm" mode: conv has bias, per-layer LayerNorm over channels)
    feat = []
    c_in = 1
    for (c_out, k, s) in cfg["conv_layers"]:
        feat.append(dict(
            kernel=k, stride=s,
            w=nrm(next(keys), (k * c_in, c_out)),
            b=jnp.zeros((c_out,), jnp.float32),
            ln_g=jnp.ones((c_out,), jnp.float32),
            ln_b=jnp.zeros((c_out,), jnp.float32),
        ))
        c_in = c_out
    params["feat_ext"] = feat

    D = cfg["embed_dim"]
    params["fp_ln_g"] = jnp.ones((c_in,), jnp.float32)
    params["fp_ln_b"] = jnp.zeros((c_in,), jnp.float32)
    params["fp_w"] = nrm(next(keys), (c_in, D))
    params["fp_b"] = jnp.zeros((D,), jnp.float32)

    G = cfg["pos_conv_groups"]
    Dg = D // G
    kpc = cfg["pos_conv_kernel"]
    # TODO(synk): torch's pos-conv uses a weight-norm parameterization; identity here.
    params["pos_w"] = [nrm(next(keys), (kpc * Dg, Dg)) for _ in range(G)]
    params["pos_b"] = [jnp.zeros((Dg,), jnp.float32) for _ in range(G)]

    params["enc_ln_g"] = jnp.ones((D,), jnp.float32)
    params["enc_ln_b"] = jnp.zeros((D,), jnp.float32)

    layers = []
    for _ in range(cfg["num_layers"]):
        layers.append(dict(
            ln1_g=jnp.ones((D,), jnp.float32), ln1_b=jnp.zeros((D,), jnp.float32),
            wq=nrm(next(keys), (D, D)), bq=jnp.zeros((D,), jnp.float32),
            wk=nrm(next(keys), (D, D)), bk=jnp.zeros((D,), jnp.float32),
            wv=nrm(next(keys), (D, D)), bv=jnp.zeros((D,), jnp.float32),
            wo=nrm(next(keys), (D, D)), bo=jnp.zeros((D,), jnp.float32),
            ln2_g=jnp.ones((D,), jnp.float32), ln2_b=jnp.zeros((D,), jnp.float32),
            w1=nrm(next(keys), (D, cfg["ffn_dim"])), b1=jnp.zeros((cfg["ffn_dim"],), jnp.float32),
            w2=nrm(next(keys), (cfg["ffn_dim"], D)), b2=jnp.zeros((D,), jnp.float32),
        ))
    params["layers"] = layers

    params["aux_w"] = nrm(next(keys), (D, cfg["num_labels"]))
    params["aux_b"] = jnp.zeros((cfg["num_labels"],), jnp.float32)
    return params


def prepare_params(params, cfg):
    """One-time (outside jit) weight fusion/padding so the kernels see lane-friendly shapes."""
    D = cfg["embed_dim"]
    H = cfg["num_heads"]
    hd = D // H
    scale = 1.0 / (hd ** 0.5)
    fused = {}

    # feature extractor: pad contraction dim K to a sublane multiple, biases as (1, N)
    feat = []
    for lp in params["feat_ext"]:
        K, N = lp["w"].shape
        Kp = -(-K // 8) * 8
        feat.append(dict(
            kernel=lp["kernel"], stride=lp["stride"], K=K, Kp=Kp,
            w=jnp.pad(lp["w"], ((0, Kp - K), (0, 0))),
            b=lp["b"].reshape(1, N),
            ln_g=lp["ln_g"].reshape(1, N),
            ln_b=lp["ln_b"].reshape(1, N),
        ))
    fused["feat_ext"] = feat

    C = params["fp_ln_g"].shape[0]
    fused["fp_ln_g"] = params["fp_ln_g"].reshape(1, C)
    fused["fp_ln_b"] = params["fp_ln_b"].reshape(1, C)
    fused["fp_w"] = params["fp_w"]
    fused["fp_b"] = params["fp_b"].reshape(1, D)

    # grouped positional conv -> single block-diagonal weight (one matmul for all groups)
    G = cfg["pos_conv_groups"]
    Dg = D // G
    kpc = cfg["pos_conv_kernel"]
    Wfull = jnp.zeros((kpc, D, D), jnp.float32)
    for g in range(G):
        wg = params["pos_w"][g].reshape(kpc, Dg, Dg)
        Wfull = Wfull.at[:, g * Dg:(g + 1) * Dg, g * Dg:(g + 1) * Dg].set(wg)
    fused["pos_w_bd"] = Wfull.reshape(kpc * D, D)
    fused["pos_b_bd"] = jnp.concatenate(params["pos_b"]).reshape(1, D)

    fused["enc_ln_g"] = params["enc_ln_g"].reshape(1, D)
    fused["enc_ln_b"] = params["enc_ln_b"].reshape(1, D)

    # encoder layers: concatenate QKV weights, fold attention scale into Wq/bq
    layers = []
    for lp in params["layers"]:
        wqkv = jnp.concatenate([lp["wq"] * scale, lp["wk"], lp["wv"]], axis=1)       # (D, 3D)
        bqkv = jnp.concatenate([lp["bq"] * scale, lp["bk"], lp["bv"]]).reshape(1, 3 * D)
        layers.append(dict(
            ln1_g=lp["ln1_g"].reshape(1, D), ln1_b=lp["ln1_b"].reshape(1, D),
            wqkv=wqkv, bqkv=bqkv,
            wo=lp["wo"], bo=lp["bo"].reshape(1, D),
            ln2_g=lp["ln2_g"].reshape(1, D), ln2_b=lp["ln2_b"].reshape(1, D),
            w1=lp["w1"], b1=lp["b1"].reshape(1, -1),
            w2=lp["w2"], b2=lp["b2"].reshape(1, D),
        ))
    fused["layers"] = layers

    # aux CTC head padded to 128 lanes for lane-dense stores; sliced back in the wrapper
    NL = cfg["num_labels"]
    NP = 128
    fused["aux_w"] = jnp.pad(params["aux_w"], ((0, 0), (0, NP - NL)))
    fused["aux_b"] = jnp.pad(params["aux_b"], (0, NP - NL)).reshape(1, NP)
    fused["aux_n"] = NL
    return fused


def hubert_forward(params, cfg, x):
    """Matches HUBERT.forward: (B, ..., L) -> reshape (B, L) -> model -> emission logits."""
    B = x.shape[0]
    x = x.reshape(B, x.shape[-1]).astype(jnp.float32)

    # ---- ConvFeatureExtractionModel ("layer_norm" mode): conv -> LN(C) -> GELU, fused ----
    h = x[:, :, None]                                    # (B, T, 1) channels-last
    for lp in params["feat_ext"]:
        patches, T = _im2col_1d(h, lp["kernel"], lp["stride"])
        p2 = patches.reshape(B * T, -1)
        if lp["Kp"] != lp["K"]:
            p2 = jnp.pad(p2, ((0, 0), (0, lp["Kp"] - lp["K"])))
        y = conv_ln_gelu(p2, lp["w"], lp["b"], lp["ln_g"], lp["ln_b"])
        h = y.reshape(B, T, -1)

    _, T, C = h.shape
    D = cfg["embed_dim"]

    # ---- FeatureProjection: LayerNorm + Linear fused (dropout = identity at inference) ----
    feat = ln_linear(h.reshape(B * T, C), params["fp_ln_g"], params["fp_ln_b"],
                     params["fp_w"], params["fp_b"]).reshape(B, T, D)

    # ---- ConvolutionalPositionalEmbedding: block-diag grouped conv + GELU (one matmul) ----
    kpc = cfg["pos_conv_kernel"]
    pad = kpc // 2
    xpad = jnp.pad(feat, ((0, 0), (pad, pad), (0, 0)))
    patches, Tp = _im2col_1d(xpad, kpc, 1)               # (B, T+1, kpc*D)
    pos = linear(patches.reshape(B * Tp, kpc * D), params["pos_w_bd"], params["pos_b_bd"],
                 apply_gelu=True).reshape(B, Tp, D)[:, :T, :]   # even kernel -> drop last frame

    # ---- residual + pre-encoder LayerNorm (layer_norm_first=True), fused ----
    xt = add_layernorm(feat.reshape(B * T, D), pos.reshape(B * T, D),
                       params["enc_ln_g"], params["enc_ln_b"]).reshape(B, T, D)

    # ---- Transformer encoder: one fused kernel per layer, grid over batch ----
    for lp in params["layers"]:
        xt = encoder_layer(xt, lp, num_heads=cfg["num_heads"])

    # ---- aux (fine-tuned CTC head): emission logits (padded N, sliced back) ----
    logits = linear(xt.reshape(B * T, D), params["aux_w"], params["aux_b"])
    return logits[:, :params["aux_n"]].reshape(B, T, cfg["num_labels"])


# ----------------------------- main -----------------------------

if __name__ == "__main__":
    cfg = CFG
    key = jax.random.PRNGKey(0)
    pkey, xkey = jax.random.split(key)
    params = prepare_params(init_params(pkey, cfg), cfg)

    B, L = 2, 400
    # HUBERT.forward accepts (n_batch, ..., signal_length); extra dims are collapsed.
    x = jax.random.normal(xkey, (B, 1, L), jnp.float32)

    @jax.jit
    def fwd(inp):
        return hubert_forward(params, cfg, inp)

    emission = fwd(x)
    jax.block_until_ready(emission)

    # signal 400 -> conv strides 5,2,2 => 79 -> 39 -> 19 frames
    assert emission.shape == (B, 19, cfg["num_labels"]), emission.shape
    assert emission.dtype == jnp.float32
    print("KERNEL_OK")
</pallas_src>

<mosaic_0001>
module attributes {stable_mosaic.version = 11 : i64} {
  func.func @_conv_ln_gelu_kernel(%arg0: i32, %arg1: memref<158x16xf32, #tpu.memory_space<vmem>>, %arg2: memref<16x32xf32, #tpu.memory_space<vmem>>, %arg3: memref<1x32xf32, #tpu.memory_space<vmem>>, %arg4: memref<1x32xf32, #tpu.memory_space<vmem>>, %arg5: memref<1x32xf32, #tpu.memory_space<vmem>>, %arg6: memref<158x32xf32, #tpu.memory_space<vmem>>) attributes {dimension_semantics = [#tpu.dimension_semantics<arbitrary>], iteration_bounds = array<i64: 1>, scalar_prefetch = 0 : i64, scratch_operands = 0 : i64, tpu.core_type = #tpu.core_type<tc>, window_params = [{pipeline_mode = #tpu.pipeline_mode<synchronous>, transform_indices = @transform_0, window_bounds = array<i64: 158, 16>}, {pipeline_mode = #tpu.pipeline_mode<synchronous>, transform_indices = @transform_1, window_bounds = array<i64: 16, 32>}, {pipeline_mode = #tpu.pipeline_mode<synchronous>, transform_indices = @transform_2, window_bounds = array<i64: 1, 32>}, {pipeline_mode = #tpu.pipeline_mode<synchronous>, transform_indices = @transform_3, window_bounds = array<i64: 1, 32>}, {pipeline_mode = #tpu.pipeline_mode<synchronous>, transform_indices = @transform_4, window_bounds = array<i64: 1, 32>}, {pipeline_mode = #tpu.pipeline_mode<synchronous>, transform_indices = @transform_5, window_bounds = array<i64: 158, 32>}]} {
    %c0 = arith.constant 0 : index
    %c0_0 = arith.constant 0 : index
    %0 = vector.load %arg1[%c0, %c0_0] : memref<158x16xf32, #tpu.memory_space<vmem>>, vector<158x16xf32>
    %c0_1 = arith.constant 0 : index
    %c0_2 = arith.constant 0 : index
    %1 = vector.load %arg2[%c0_1, %c0_2] : memref<16x32xf32, #tpu.memory_space<vmem>>, vector<16x32xf32>
    %cst = arith.constant dense<0.000000e+00> : vector<158x32xf32>
    %2 = tpu.matmul %0, %1, %cst {dimension_numbers = #tpu.dot_dimension_numbers<[1], [0], [0], [1], [0, 0, 1, 1], [], []>} : vector<158x16xf32>, vector<16x32xf32>, vector<158x32xf32> -> vector<158x32xf32>
    %c0_3 = arith.constant 0 : index
    %c0_4 = arith.constant 0 : index
    %3 = vector.load %arg3[%c0_3, %c0_4] : memref<1x32xf32, #tpu.memory_space<vmem>>, vector<1x32xf32>
    %4 = vector.broadcast %3 : vector<1x32xf32> to vector<158x32xf32>
    %5 = arith.addf %2, %4 : vector<158x32xf32>
    %c0_5 = arith.constant 0 : index
    %c0_6 = arith.constant 0 : index
    %6 = vector.load %arg4[%c0_5, %c0_6] : memref<1x32xf32, #tpu.memory_space<vmem>>, vector<1x32xf32>
    %c0_7 = arith.constant 0 : index
    %c0_8 = arith.constant 0 : index
    %7 = vector.load %arg5[%c0_7, %c0_8] : memref<1x32xf32, #tpu.memory_space<vmem>>, vector<1x32xf32>
    %cst_9 = arith.constant dense<0.000000e+00> : vector<158xf32>
    %8 = vector.multi_reduction <add>, %5, %cst_9 [1] : vector<158x32xf32> to vector<158xf32>
    %9 = vector.shape_cast %8 : vector<158xf32> to vector<158x1xf32>
    %cst_10 = arith.constant 3.200000e+01 : f32
    %10 = vector.broadcast %cst_10 : f32 to vector<158x1xf32>
    %11 = arith.divf %9, %10 : vector<158x1xf32>
    %12 = vector.broadcast %11 : vector<158x1xf32> to vector<158x32xf32>
    %13 = arith.subf %5, %12 : vector<158x32xf32>
    %14 = arith.mulf %13, %13 : vector<158x32xf32>
    %cst_11 = arith.constant dense<0.000000e+00> : vector<158xf32>
    %15 = vector.multi_reduction <add>, %14, %cst_11 [1] : vector<158x32xf32> to vector<158xf32>
    %16 = vector.shape_cast %15 : vector<158xf32> to vector<158x1xf32>
    %cst_12 = arith.constant 3.200000e+01 : f32
    %17 = vector.broadcast %cst_12 : f32 to vector<158x1xf32>
    %18 = arith.divf %16, %17 : vector<158x1xf32>
    %19 = vector.broadcast %11 : vector<158x1xf32> to vector<158x32xf32>
    %20 = arith.subf %5, %19 : vector<158x32xf32>
    %cst_13 = arith.constant 9.99999974E-6 : f32
    %21 = vector.broadcast %cst_13 : f32 to vector<158x1xf32>
    %22 = arith.addf %18, %21 : vector<158x1xf32>
    %23 = math.rsqrt %22 : vector<158x1xf32>
    %24 = vector.broadcast %23 : vector<158x1xf32> to vector<158x32xf32>
    %25 = arith.mulf %20, %24 : vector<158x32xf32>
    %26 = vector.broadcast %6 : vector<1x32xf32> to vector<158x32xf32>
    %27 = arith.mulf %25, %26 : vector<158x32xf32>
    %28 = vector.broadcast %7 : vector<1x32xf32> to vector<158x32xf32>
    %29 = arith.addf %27, %28 : vector<158x32xf32>
    %cst_14 = arith.constant 5.000000e-01 : f32
    %30 = vector.broadcast %cst_14 : f32 to vector<158x32xf32>
    %31 = arith.mulf %30, %29 : vector<158x32xf32>
    %cst_15 = arith.constant 4.471500e-02 : f32
    %32 = vector.broadcast %cst_15 : f32 to vector<158x32xf32>
    %33 = arith.mulf %32, %29 : vector<158x32xf32>
    %34 = arith.mulf %33, %29 : vector<158x32xf32>
    %35 = arith.mulf %34, %29 : vector<158x32xf32>
    %36 = arith.addf %29, %35 : vector<158x32xf32>
    %cst_16 = arith.constant 0.797884583 : f32
    %37 = vector.broadcast %cst_16 : f32 to vector<158x32xf32>
    %38 = arith.mulf %37, %36 : vector<158x32xf32>
    %39 = math.tanh %38 : vector<158x32xf32>
    %cst_17 = arith.constant 1.000000e+00 : f32
    %40 = vector.broadcast %cst_17 : f32 to vector<158x32xf32>
    %41 = arith.addf %40, %39 : vector<158x32xf32>
    %42 = arith.mulf %31, %41 : vector<158x32xf32>
    %c0_18 = arith.constant 0 : index
    %c0_19 = arith.constant 0 : index
    %43 = vector.load %arg6[%c0_18, %c0_19] : memref<158x32xf32, #tpu.memory_space<vmem>>, vector<158x32xf32>
    tpu.vector_store %arg6[%c0_18, %c0_19], %42 {strides = array<i32>} : memref<158x32xf32, #tpu.memory_space<vmem>>, vector<158x32xf32>,
    return
  }
  func.func @transform_0(%arg0: i32) -> (i32, i32) {
    %c0_i32 = arith.constant 0 : i32
    %c0_i32_0 = arith.constant 0 : i32
    %c0_i32_1 = arith.constant 0 : i32
    return %c0_i32, %c0_i32_0 : i32, i32
  }
  func.func @transform_1(%arg0: i32) -> (i32, i32) {
    %c0_i32 = arith.constant 0 : i32
    %c0_i32_0 = arith.constant 0 : i32
    %c0_i32_1 = arith.constant 0 : i32
    return %c0_i32, %c0_i32_0 : i32, i32
  }
  func.func @transform_2(%arg0: i32) -> (i32, i32) {
    %c0_i32 = arith.constant 0 : i32
    %c0_i32_0 = arith.constant 0 : i32
    %c0_i32_1 = arith.constant 0 : i32
    return %c0_i32, %c0_i32_0 : i32, i32
  }
  func.func @transform_3(%arg0: i32) -> (i32, i32) {
    %c0_i32 = arith.constant 0 : i32
    %c0_i32_0 = arith.constant 0 : i32
    %c0_i32_1 = arith.constant 0 : i32
    return %c0_i32, %c0_i32_0 : i32, i32
  }
  func.func @transform_4(%arg0: i32) -> (i32, i32) {
    %c0_i32 = arith.constant 0 : i32
    %c0_i32_0 = arith.constant 0 : i32
    %c0_i32_1 = arith.constant 0 : i32
    return %c0_i32, %c0_i32_0 : i32, i32
  }
  func.func @transform_5(%arg0: i32) -> (i32, i32) {
    %c0_i32 = arith.constant 0 : i32
    %c0_i32_0 = arith.constant 0 : i32
    %c0_i32_1 = arith.constant 0 : i32
    return %c0_i32, %c0_i32_0 : i32, i32
  }
}

module attributes {stable_mosaic.version = 11 : i64} {
  func.func @_conv_ln_gelu_kernel(%arg0: i32, %arg1: memref<78x96xf32, #tpu.memory_space<vmem>>, %arg2: memref<96x32xf32, #tpu.memory_space<vmem>>, %arg3: memref<1x32xf32, #tpu.memory_space<vmem>>, %arg4: memref<1x32xf32, #tpu.memory_space<vmem>>, %arg5: memref<1x32xf32, #tpu.memory_space<vmem>>, %arg6: memref<78x32xf32, #tpu.memory_space<vmem>>) attributes {dimension_semantics = [#tpu.dimension_semantics<arbitrary>], iteration_bounds = array<i64: 1>, scalar_prefetch = 0 : i64, scratch_operands = 0 : i64, tpu.core_type = #tpu.core_type<tc>, window_params = [{pipeline_mode = #tpu.pipeline_mode<synchronous>, transform_indices = @transform_0, window_bounds = array<i64: 78, 96>}, {pipeline_mode = #tpu.pipeline_mode<synchronous>, transform_indices = @transform_1, window_bounds = array<i64: 96, 32>}, {pipeline_mode = #tpu.pipeline_mode<synchronous>, transform_indices = @transform_2, window_bounds = array<i64: 1, 32>}, {pipeline_mode = #tpu.pipeline_mode<synchronous>, transform_indices = @transform_3, window_bounds = array<i64: 1, 32>}, {pipeline_mode = #tpu.pipeline_mode<synchronous>, transform_indices = @transform_4, window_bounds = array<i64: 1, 32>}, {pipeline_mode = #tpu.pipeline_mode<synchronous>, transform_indices = @transform_5, window_bounds = array<i64: 78, 32>}]} {
    %c0 = arith.constant 0 : index
    %c0_0 = arith.constant 0 : index
    %0 = vector.load %arg1[%c0, %c0_0] : memref<78x96xf32, #tpu.memory_space<vmem>>, vector<78x96xf32>
    %c0_1 = arith.constant 0 : index
    %c0_2 = arith.constant 0 : index
    %1 = vector.load %arg2[%c0_1, %c0_2] : memref<96x32xf32, #tpu.memory_space<vmem>>, vector<96x32xf32>
    %cst = arith.constant dense<0.000000e+00> : vector<78x32xf32>
    %2 = tpu.matmul %0, %1, %cst {dimension_numbers = #tpu.dot_dimension_numbers<[1], [0], [0], [1], [0, 0, 1, 1], [], []>} : vector<78x96xf32>, vector<96x32xf32>, vector<78x32xf32> -> vector<78x32xf32>
    %c0_3 = arith.constant 0 : index
    %c0_4 = arith.constant 0 : index
    %3 = vector.load %arg3[%c0_3, %c0_4] : memref<1x32xf32, #tpu.memory_space<vmem>>, vector<1x32xf32>
    %4 = vector.broadcast %3 : vector<1x32xf32> to vector<78x32xf32>
    %5 = arith.addf %2, %4 : vector<78x32xf32>
    %c0_5 = arith.constant 0 : index
    %c0_6 = arith.constant 0 : index
    %6 = vector.load %arg4[%c0_5, %c0_6] : memref<1x32xf32, #tpu.memory_space<vmem>>, vector<1x32xf32>
    %c0_7 = arith.constant 0 : index
    %c0_8 = arith.constant 0 : index
    %7 = vector.load %arg5[%c0_7, %c0_8] : memref<1x32xf32, #tpu.memory_space<vmem>>, vector<1x32xf32>
    %cst_9 = arith.constant dense<0.000000e+00> : vector<78xf32>
    %8 = vector.multi_reduction <add>, %5, %cst_9 [1] : vector<78x32xf32> to vector<78xf32>
    %9 = vector.shape_cast %8 : vector<78xf32> to vector<78x1xf32>
    %cst_10 = arith.constant 3.200000e+01 : f32
    %10 = vector.broadcast %cst_10 : f32 to vector<78x1xf32>
    %11 = arith.divf %9, %10 : vector<78x1xf32>
    %12 = vector.broadcast %11 : vector<78x1xf32> to vector<78x32xf32>
    %13 = arith.subf %5, %12 : vector<78x32xf32>
    %14 = arith.mulf %13, %13 : vector<78x32xf32>
    %cst_11 = arith.constant dense<0.000000e+00> : vector<78xf32>
    %15 = vector.multi_reduction <add>, %14, %cst_11 [1] : vector<78x32xf32> to vector<78xf32>
    %16 = vector.shape_cast %15 : vector<78xf32> to vector<78x1xf32>
    %cst_12 = arith.constant 3.200000e+01 : f32
    %17 = vector.broadcast %cst_12 : f32 to vector<78x1xf32>
    %18 = arith.divf %16, %17 : vector<78x1xf32>
    %19 = vector.broadcast %11 : vector<78x1xf32> to vector<78x32xf32>
    %20 = arith.subf %5, %19 : vector<78x32xf32>
    %cst_13 = arith.constant 9.99999974E-6 : f32
    %21 = vector.broadcast %cst_13 : f32 to vector<78x1xf32>
    %22 = arith.addf %18, %21 : vector<78x1xf32>
    %23 = math.rsqrt %22 : vector<78x1xf32>
    %24 = vector.broadcast %23 : vector<78x1xf32> to vector<78x32xf32>
    %25 = arith.mulf %20, %24 : vector<78x32xf32>
    %26 = vector.broadcast %6 : vector<1x32xf32> to vector<78x32xf32>
    %27 = arith.mulf %25, %26 : vector<78x32xf32>
    %28 = vector.broadcast %7 : vector<1x32xf32> to vector<78x32xf32>
    %29 = arith.addf %27, %28 : vector<78x32xf32>
    %cst_14 = arith.constant 5.000000e-01 : f32
    %30 = vector.broadcast %cst_14 : f32 to vector<78x32xf32>
    %31 = arith.mulf %30, %29 : vector<78x32xf32>
    %cst_15 = arith.constant 4.471500e-02 : f32
    %32 = vector.broadcast %cst_15 : f32 to vector<78x32xf32>
    %33 = arith.mulf %32, %29 : vector<78x32xf32>
    %34 = arith.mulf %33, %29 : vector<78x32xf32>
    %35 = arith.mulf %34, %29 : vector<78x32xf32>
    %36 = arith.addf %29, %35 : vector<78x32xf32>
    %cst_16 = arith.constant 0.797884583 : f32
    %37 = vector.broadcast %cst_16 : f32 to vector<78x32xf32>
    %38 = arith.mulf %37, %36 : vector<78x32xf32>
    %39 = math.tanh %38 : vector<78x32xf32>
    %cst_17 = arith.constant 1.000000e+00 : f32
    %40 = vector.broadcast %cst_17 : f32 to vector<78x32xf32>
    %41 = arith.addf %40, %39 : vector<78x32xf32>
    %42 = arith.mulf %31, %41 : vector<78x32xf32>
    %c0_18 = arith.constant 0 : index
    %c0_19 = arith.constant 0 : index
    %43 = vector.load %arg6[%c0_18, %c0_19] : memref<78x32xf32, #tpu.memory_space<vmem>>, vector<78x32xf32>
    tpu.vector_store %arg6[%c0_18, %c0_19], %42 {strides = array<i32>} : memref<78x32xf32, #tpu.memory_space<vmem>>, vector<78x32xf32>,
    return
  }
  func.func @transform_0(%arg0: i32) -> (i32, i32) {
    %c0_i32 = arith.constant 0 : i32
    %c0_i32_0 = arith.constant 0 : i32
    %c0_i32_1 = arith.constant 0 : i32
    return %c0_i32, %c0_i32_0 : i32, i32
  }
  func.func @transform_1(%arg0: i32) -> (i32, i32) {
    %c0_i32 = arith.constant 0 : i32
    %c0_i32_0 = arith.constant 0 : i32
    %c0_i32_1 = arith.constant 0 : i32
    return %c0_i32, %c0_i32_0 : i32, i32
  }
  func.func @transform_2(%arg0: i32) -> (i32, i32) {
    %c0_i32 = arith.constant 0 : i32
    %c0_i32_0 = arith.constant 0 : i32
    %c0_i32_1 = arith.constant 0 : i32
    return %c0_i32, %c0_i32_0 : i32, i32
  }
  func.func @transform_3(%arg0: i32) -> (i32, i32) {
    %c0_i32 = arith.constant 0 : i32
    %c0_i32_0 = arith.constant 0 : i32
    %c0_i32_1 = arith.constant 0 : i32
    return %c0_i32, %c0_i32_0 : i32, i32
  }
  func.func @transform_4(%arg0: i32) -> (i32, i32) {
    %c0_i32 = arith.constant 0 : i32
    %c0_i32_0 = arith.constant 0 : i32
    %c0_i32_1 = arith.constant 0 : i32
    return %c0_i32, %c0_i32_0 : i32, i32
  }
  func.func @transform_5(%arg0: i32) -> (i32, i32) {
    %c0_i32 = arith.constant 0 : i32
    %c0_i32_0 = arith.constant 0 : i32
    %c0_i32_1 = arith.constant 0 : i32
    return %c0_i32, %c0_i32_0 : i32, i32
  }
}

module attributes {stable_mosaic.version = 11 : i64} {
  func.func @_conv_ln_gelu_kernel(%arg0: i32, %arg1: memref<38x64xf32, #tpu.memory_space<vmem>>, %arg2: memref<64x32xf32, #tpu.memory_space<vmem>>, %arg3: memref<1x32xf32, #tpu.memory_space<vmem>>, %arg4: memref<1x32xf32, #tpu.memory_space<vmem>>, %arg5: memref<1x32xf32, #tpu.memory_space<vmem>>, %arg6: memref<38x32xf32, #tpu.memory_space<vmem>>) attributes {dimension_semantics = [#tpu.dimension_semantics<arbitrary>], iteration_bounds = array<i64: 1>, scalar_prefetch = 0 : i64, scratch_operands = 0 : i64, tpu.core_type = #tpu.core_type<tc>, window_params = [{pipeline_mode = #tpu.pipeline_mode<synchronous>, transform_indices = @transform_0, window_bounds = array<i64: 38, 64>}, {pipeline_mode = #tpu.pipeline_mode<synchronous>, transform_indices = @transform_1, window_bounds = array<i64: 64, 32>}, {pipeline_mode = #tpu.pipeline_mode<synchronous>, transform_indices = @transform_2, window_bounds = array<i64: 1, 32>}, {pipeline_mode = #tpu.pipeline_mode<synchronous>, transform_indices = @transform_3, window_bounds = array<i64: 1, 32>}, {pipeline_mode = #tpu.pipeline_mode<synchronous>, transform_indices = @transform_4, window_bounds = array<i64: 1, 32>}, {pipeline_mode = #tpu.pipeline_mode<synchronous>, transform_indices = @transform_5, window_bounds = array<i64: 38, 32>}]} {
    %c0 = arith.constant 0 : index
    %c0_0 = arith.constant 0 : index
    %0 = vector.load %arg1[%c0, %c0_0] : memref<38x64xf32, #tpu.memory_space<vmem>>, vector<38x64xf32>
    %c0_1 = arith.constant 0 : index
    %c0_2 = arith.constant 0 : index
    %1 = vector.load %arg2[%c0_1, %c0_2] : memref<64x32xf32, #tpu.memory_space<vmem>>, vector<64x32xf32>
    %cst = arith.constant dense<0.000000e+00> : vector<38x32xf32>
    %2 = tpu.matmul %0, %1, %cst {dimension_numbers = #tpu.dot_dimension_numbers<[1], [0], [0], [1], [0, 0, 1, 1], [], []>} : vector<38x64xf32>, vector<64x32xf32>, vector<38x32xf32> -> vector<38x32xf32>
    %c0_3 = arith.constant 0 : index
    %c0_4 = arith.constant 0 : index
    %3 = vector.load %arg3[%c0_3, %c0_4] : memref<1x32xf32, #tpu.memory_space<vmem>>, vector<1x32xf32>
    %4 = vector.broadcast %3 : vector<1x32xf32> to vector<38x32xf32>
    %5 = arith.addf %2, %4 : vector<38x32xf32>
    %c0_5 = arith.constant 0 : index
    %c0_6 = arith.constant 0 : index
    %6 = vector.load %arg4[%c0_5, %c0_6] : memref<1x32xf32, #tpu.memory_space<vmem>>, vector<1x32xf32>
    %c0_7 = arith.constant 0 : index
    %c0_8 = arith.constant 0 : index
    %7 = vector.load %arg5[%c0_7, %c0_8] : memref<1x32xf32, #tpu.memory_space<vmem>>, vector<1x32xf32>
    %cst_9 = arith.constant dense<0.000000e+00> : vector<38xf32>
    %8 = vector.multi_reduction <add>, %5, %cst_9 [1] : vector<38x32xf32> to vector<38xf32>
    %9 = vector.shape_cast %8 : vector<38xf32> to vector<38x1xf32>
    %cst_10 = arith.constant 3.200000e+01 : f32
    %10 = vector.broadcast %cst_10 : f32 to vector<38x1xf32>
    %11 = arith.divf %9, %10 : vector<38x1xf32>
    %12 = vector.broadcast %11 : vector<38x1xf32> to vector<38x32xf32>
    %13 = arith.subf %5, %12 : vector<38x32xf32>
    %14 = arith.mulf %13, %13 : vector<38x32xf32>
    %cst_11 = arith.constant dense<0.000000e+00> : vector<38xf32>
    %15 = vector.multi_reduction <add>, %14, %cst_11 [1] : vector<38x32xf32> to vector<38xf32>
    %16 = vector.shape_cast %15 : vector<38xf32> to vector<38x1xf32>
    %cst_12 = arith.constant 3.200000e+01 : f32
    %17 = vector.broadcast %cst_12 : f32 to vector<38x1xf32>
    %18 = arith.divf %16, %17 : vector<38x1xf32>
    %19 = vector.broadcast %11 : vector<38x1xf32> to vector<38x32xf32>
    %20 = arith.subf %5, %19 : vector<38x32xf32>
    %cst_13 = arith.constant 9.99999974E-6 : f32
    %21 = vector.broadcast %cst_13 : f32 to vector<38x1xf32>
    %22 = arith.addf %18, %21 : vector<38x1xf32>
    %23 = math.rsqrt %22 : vector<38x1xf32>
    %24 = vector.broadcast %23 : vector<38x1xf32> to vector<38x32xf32>
    %25 = arith.mulf %20, %24 : vector<38x32xf32>
    %26 = vector.broadcast %6 : vector<1x32xf32> to vector<38x32xf32>
    %27 = arith.mulf %25, %26 : vector<38x32xf32>
    %28 = vector.broadcast %7 : vector<1x32xf32> to vector<38x32xf32>
    %29 = arith.addf %27, %28 : vector<38x32xf32>
    %cst_14 = arith.constant 5.000000e-01 : f32
    %30 = vector.broadcast %cst_14 : f32 to vector<38x32xf32>
    %31 = arith.mulf %30, %29 : vector<38x32xf32>
    %cst_15 = arith.constant 4.471500e-02 : f32
    %32 = vector.broadcast %cst_15 : f32 to vector<38x32xf32>
    %33 = arith.mulf %32, %29 : vector<38x32xf32>
    %34 = arith.mulf %33, %29 : vector<38x32xf32>
    %35 = arith.mulf %34, %29 : vector<38x32xf32>
    %36 = arith.addf %29, %35 : vector<38x32xf32>
    %cst_16 = arith.constant 0.797884583 : f32
    %37 = vector.broadcast %cst_16 : f32 to vector<38x32xf32>
    %38 = arith.mulf %37, %36 : vector<38x32xf32>
    %39 = math.tanh %38 : vector<38x32xf32>
    %cst_17 = arith.constant 1.000000e+00 : f32
    %40 = vector.broadcast %cst_17 : f32 to vector<38x32xf32>
    %41 = arith.addf %40, %39 : vector<38x32xf32>
    %42 = arith.mulf %31, %41 : vector<38x32xf32>
    %c0_18 = arith.constant 0 : index
    %c0_19 = arith.constant 0 : index
    %43 = vector.load %arg6[%c0_18, %c0_19] : memref<38x32xf32, #tpu.memory_space<vmem>>, vector<38x32xf32>
    tpu.vector_store %arg6[%c0_18, %c0_19], %42 {strides = array<i32>} : memref<38x32xf32, #tpu.memory_space<vmem>>, vector<38x32xf32>,
    return
  }
  func.func @transform_0(%arg0: i32) -> (i32, i32) {
    %c0_i32 = arith.constant 0 : i32
    %c0_i32_0 = arith.constant 0 : i32
    %c0_i32_1 = arith.constant 0 : i32
    return %c0_i32, %c0_i32_0 : i32, i32
  }
  func.func @transform_1(%arg0: i32) -> (i32, i32) {
    %c0_i32 = arith.constant 0 : i32
    %c0_i32_0 = arith.constant 0 : i32
    %c0_i32_1 = arith.constant 0 : i32
    return %c0_i32, %c0_i32_0 : i32, i32
  }
  func.func @transform_2(%arg0: i32) -> (i32, i32) {
    %c0_i32 = arith.constant 0 : i32
    %c0_i32_0 = arith.constant 0 : i32
    %c0_i32_1 = arith.constant 0 : i32
    return %c0_i32, %c0_i32_0 : i32, i32
  }
  func.func @transform_3(%arg0: i32) -> (i32, i32) {
    %c0_i32 = arith.constant 0 : i32
    %c0_i32_0 = arith.constant 0 : i32
    %c0_i32_1 = arith.constant 0 : i32
    return %c0_i32, %c0_i32_0 : i32, i32
  }
  func.func @transform_4(%arg0: i32) -> (i32, i32) {
    %c0_i32 = arith.constant 0 : i32
    %c0_i32_0 = arith.constant 0 : i32
    %c0_i32_1 = arith.constant 0 : i32
    return %c0_i32, %c0_i32_0 : i32, i32
  }
  func.func @transform_5(%arg0: i32) -> (i32, i32) {
    %c0_i32 = arith.constant 0 : i32
    %c0_i32_0 = arith.constant 0 : i32
    %c0_i32_1 = arith.constant 0 : i32
    return %c0_i32, %c0_i32_0 : i32, i32
  }
}

module attributes {stable_mosaic.version = 11 : i64} {
  func.func @_ln_linear_kernel(%arg0: i32, %arg1: memref<38x32xf32, #tpu.memory_space<vmem>>, %arg2: memref<1x32xf32, #tpu.memory_space<vmem>>, %arg3: memref<1x32xf32, #tpu.memory_space<vmem>>, %arg4: memref<32x64xf32, #tpu.memory_space<vmem>>, %arg5: memref<1x64xf32, #tpu.memory_space<vmem>>, %arg6: memref<38x64xf32, #tpu.memory_space<vmem>>) attributes {dimension_semantics = [#tpu.dimension_semantics<arbitrary>], iteration_bounds = array<i64: 1>, scalar_prefetch = 0 : i64, scratch_operands = 0 : i64, tpu.core_type = #tpu.core_type<tc>, window_params = [{pipeline_mode = #tpu.pipeline_mode<synchronous>, transform_indices = @transform_0, window_bounds = array<i64: 38, 32>}, {pipeline_mode = #tpu.pipeline_mode<synchronous>, transform_indices = @transform_1, window_bounds = array<i64: 1, 32>}, {pipeline_mode = #tpu.pipeline_mode<synchronous>, transform_indices = @transform_2, window_bounds = array<i64: 1, 32>}, {pipeline_mode = #tpu.pipeline_mode<synchronous>, transform_indices = @transform_3, window_bounds = array<i64: 32, 64>}, {pipeline_mode = #tpu.pipeline_mode<synchronous>, transform_indices = @transform_4, window_bounds = array<i64: 1, 64>}, {pipeline_mode = #tpu.pipeline_mode<synchronous>, transform_indices = @transform_5, window_bounds = array<i64: 38, 64>}]} {
    %c0 = arith.constant 0 : index
    %c0_0 = arith.constant 0 : index
    %0 = vector.load %arg1[%c0, %c0_0] : memref<38x32xf32, #tpu.memory_space<vmem>>, vector<38x32xf32>
    %c0_1 = arith.constant 0 : index
    %c0_2 = arith.constant 0 : index
    %1 = vector.load %arg2[%c0_1, %c0_2] : memref<1x32xf32, #tpu.memory_space<vmem>>, vector<1x32xf32>
    %c0_3 = arith.constant 0 : index
    %c0_4 = arith.constant 0 : index
    %2 = vector.load %arg3[%c0_3, %c0_4] : memref<1x32xf32, #tpu.memory_space<vmem>>, vector<1x32xf32>
    %cst = arith.constant dense<0.000000e+00> : vector<38xf32>
    %3 = vector.multi_reduction <add>, %0, %cst [1] : vector<38x32xf32> to vector<38xf32>
    %4 = vector.shape_cast %3 : vector<38xf32> to vector<38x1xf32>
    %cst_5 = arith.constant 3.200000e+01 : f32
    %5 = vector.broadcast %cst_5 : f32 to vector<38x1xf32>
    %6 = arith.divf %4, %5 : vector<38x1xf32>
    %7 = vector.broadcast %6 : vector<38x1xf32> to vector<38x32xf32>
    %8 = arith.subf %0, %7 : vector<38x32xf32>
    %9 = arith.mulf %8, %8 : vector<38x32xf32>
    %cst_6 = arith.constant dense<0.000000e+00> : vector<38xf32>
    %10 = vector.multi_reduction <add>, %9, %cst_6 [1] : vector<38x32xf32> to vector<38xf32>
    %11 = vector.shape_cast %10 : vector<38xf32> to vector<38x1xf32>
    %cst_7 = arith.constant 3.200000e+01 : f32
    %12 = vector.broadcast %cst_7 : f32 to vector<38x1xf32>
    %13 = arith.divf %11, %12 : vector<38x1xf32>
    %14 = vector.broadcast %6 : vector<38x1xf32> to vector<38x32xf32>
    %15 = arith.subf %0, %14 : vector<38x32xf32>
    %cst_8 = arith.constant 9.99999974E-6 : f32
    %16 = vector.broadcast %cst_8 : f32 to vector<38x1xf32>
    %17 = arith.addf %13, %16 : vector<38x1xf32>
    %18 = math.rsqrt %17 : vector<38x1xf32>
    %19 = vector.broadcast %18 : vector<38x1xf32> to vector<38x32xf32>
    %20 = arith.mulf %15, %19 : vector<38x32xf32>
    %21 = vector.broadcast %1 : vector<1x32xf32> to vector<38x32xf32>
    %22 = arith.mulf %20, %21 : vector<38x32xf32>
    %23 = vector.broadcast %2 : vector<1x32xf32> to vector<38x32xf32>
    %24 = arith.addf %22, %23 : vector<38x32xf32>
    %c0_9 = arith.constant 0 : index
    %c0_10 = arith.constant 0 : index
    %25 = vector.load %arg4[%c0_9, %c0_10] : memref<32x64xf32, #tpu.memory_space<vmem>>, vector<32x64xf32>
    %cst_11 = arith.constant dense<0.000000e+00> : vector<38x64xf32>
    %26 = tpu.matmul %24, %25, %cst_11 {dimension_numbers = #tpu.dot_dimension_numbers<[1], [0], [0], [1], [0, 0, 1, 1], [], []>} : vector<38x32xf32>, vector<32x64xf32>, vector<38x64xf32> -> vector<38x64xf32>
    %c0_12 = arith.constant 0 : index
    %c0_13 = arith.constant 0 : index
    %27 = vector.load %arg5[%c0_12, %c0_13] : memref<1x64xf32, #tpu.memory_space<vmem>>, vector<1x64xf32>
    %28 = vector.broadcast %27 : vector<1x64xf32> to vector<38x64xf32>
    %29 = arith.addf %26, %28 : vector<38x64xf32>
    %c0_14 = arith.constant 0 : index
    %c0_15 = arith.constant 0 : index
    %30 = vector.load %arg6[%c0_14, %c0_15] : memref<38x64xf32, #tpu.memory_space<vmem>>, vector<38x64xf32>
    tpu.vector_store %arg6[%c0_14, %c0_15], %29 {strides = array<i32>} : memref<38x64xf32, #tpu.memory_space<vmem>>, vector<38x64xf32>,
    return
  }
  func.func @transform_0(%arg0: i32) -> (i32, i32) {
    %c0_i32 = arith.constant 0 : i32
    %c0_i32_0 = arith.constant 0 : i32
    %c0_i32_1 = arith.constant 0 : i32
    return %c0_i32, %c0_i32_0 : i32, i32
  }
  func.func @transform_1(%arg0: i32) -> (i32, i32) {
    %c0_i32 = arith.constant 0 : i32
    %c0_i32_0 = arith.constant 0 : i32
    %c0_i32_1 = arith.constant 0 : i32
    return %c0_i32, %c0_i32_0 : i32, i32
  }
  func.func @transform_2(%arg0: i32) -> (i32, i32) {
    %c0_i32 = arith.constant 0 : i32
    %c0_i32_0 = arith.constant 0 : i32
    %c0_i32_1 = arith.constant 0 : i32
    return %c0_i32, %c0_i32_0 : i32, i32
  }
  func.func @transform_3(%arg0: i32) -> (i32, i32) {
    %c0_i32 = arith.constant 0 : i32
    %c0_i32_0 = arith.constant 0 : i32
    %c0_i32_1 = arith.constant 0 : i32
    return %c0_i32, %c0_i32_0 : i32, i32
  }
  func.func @transform_4(%arg0: i32) -> (i32, i32) {
    %c0_i32 = arith.constant 0 : i32
    %c0_i32_0 = arith.constant 0 : i32
    %c0_i32_1 = arith.constant 0 : i32
    return %c0_i32, %c0_i32_0 : i32, i32
  }
  func.func @transform_5(%arg0: i32) -> (i32, i32) {
    %c0_i32 = arith.constant 0 : i32
    %c0_i32_0 = arith.constant 0 : i32
    %c0_i32_1 = arith.constant 0 : i32
    return %c0_i32, %c0_i32_0 : i32, i32
  }
}

module attributes {stable_mosaic.version = 11 : i64} {
  func.func @_linear_kernel(%arg0: i32, %arg1: memref<40x512xf32, #tpu.memory_space<vmem>>, %arg2: memref<512x64xf32, #tpu.memory_space<vmem>>, %arg3: memref<1x64xf32, #tpu.memory_space<vmem>>, %arg4: memref<40x64xf32, #tpu.memory_space<vmem>>) attributes {dimension_semantics = [#tpu.dimension_semantics<arbitrary>], iteration_bounds = array<i64: 1>, scalar_prefetch = 0 : i64, scratch_operands = 0 : i64, tpu.core_type = #tpu.core_type<tc>, window_params = [{pipeline_mode = #tpu.pipeline_mode<synchronous>, transform_indices = @transform_0, window_bounds = array<i64: 40, 512>}, {pipeline_mode = #tpu.pipeline_mode<synchronous>, transform_indices = @transform_1, window_bounds = array<i64: 512, 64>}, {pipeline_mode = #tpu.pipeline_mode<synchronous>, transform_indices = @transform_2, window_bounds = array<i64: 1, 64>}, {pipeline_mode = #tpu.pipeline_mode<synchronous>, transform_indices = @transform_3, window_bounds = array<i64: 40, 64>}]} {
    %c0 = arith.constant 0 : index
    %c0_0 = arith.constant 0 : index
    %0 = vector.load %arg1[%c0, %c0_0] : memref<40x512xf32, #tpu.memory_space<vmem>>, vector<40x512xf32>
    %c0_1 = arith.constant 0 : index
    %c0_2 = arith.constant 0 : index
    %1 = vector.load %arg2[%c0_1, %c0_2] : memref<512x64xf32, #tpu.memory_space<vmem>>, vector<512x64xf32>
    %cst = arith.constant dense<0.000000e+00> : vector<40x64xf32>
    %2 = tpu.matmul %0, %1, %cst {dimension_numbers = #tpu.dot_dimension_numbers<[1], [0], [0], [1], [0, 0, 1, 1], [], []>} : vector<40x512xf32>, vector<512x64xf32>, vector<40x64xf32> -> vector<40x64xf32>
    %c0_3 = arith.constant 0 : index
    %c0_4 = arith.constant 0 : index
    %3 = vector.load %arg3[%c0_3, %c0_4] : memref<1x64xf32, #tpu.memory_space<vmem>>, vector<1x64xf32>
    %4 = vector.broadcast %3 : vector<1x64xf32> to vector<40x64xf32>
    %5 = arith.addf %2, %4 : vector<40x64xf32>
    %cst_5 = arith.constant 5.000000e-01 : f32
    %6 = vector.broadcast %cst_5 : f32 to vector<40x64xf32>
    %7 = arith.mulf %6, %5 : vector<40x64xf32>
    %cst_6 = arith.constant 4.471500e-02 : f32
    %8 = vector.broadcast %cst_6 : f32 to vector<40x64xf32>
    %9 = arith.mulf %8, %5 : vector<40x64xf32>
    %10 = arith.mulf %9, %5 : vector<40x64xf32>
    %11 = arith.mulf %10, %5 : vector<40x64xf32>
    %12 = arith.addf %5, %11 : vector<40x64xf32>
    %cst_7 = arith.constant 0.797884583 : f32
    %13 = vector.broadcast %cst_7 : f32 to vector<40x64xf32>
    %14 = arith.mulf %13, %12 : vector<40x64xf32>
    %15 = math.tanh %14 : vector<40x64xf32>
    %cst_8 = arith.constant 1.000000e+00 : f32
    %16 = vector.broadcast %cst_8 : f32 to vector<40x64xf32>
    %17 = arith.addf %16, %15 : vector<40x64xf32>
    %18 = arith.mulf %7, %17 : vector<40x64xf32>
    %c0_9 = arith.constant 0 : index
    %c0_10 = arith.constant 0 : index
    %19 = vector.load %arg4[%c0_9, %c0_10] : memref<40x64xf32, #tpu.memory_space<vmem>>, vector<40x64xf32>
    tpu.vector_store %arg4[%c0_9, %c0_10], %18 {strides = array<i32>} : memref<40x64xf32, #tpu.memory_space<vmem>>, vector<40x64xf32>,
    return
  }
  func.func @transform_0(%arg0: i32) -> (i32, i32) {
    %c0_i32 = arith.constant 0 : i32
    %c0_i32_0 = arith.constant 0 : i32
    %c0_i32_1 = arith.constant 0 : i32
    return %c0_i32, %c0_i32_0 : i32, i32
  }
  func.func @transform_1(%arg0: i32) -> (i32, i32) {
    %c0_i32 = arith.constant 0 : i32
    %c0_i32_0 = arith.constant 0 : i32
    %c0_i32_1 = arith.constant 0 : i32
    return %c0_i32, %c0_i32_0 : i32, i32
  }
  func.func @transform_2(%arg0: i32) -> (i32, i32) {
    %c0_i32 = arith.constant 0 : i32
    %c0_i32_0 = arith.constant 0 : i32
    %c0_i32_1 = arith.constant 0 : i32
    return %c0_i32, %c0_i32_0 : i32, i32
  }
  func.func @transform_3(%arg0: i32) -> (i32, i32) {
    %c0_i32 = arith.constant 0 : i32
    %c0_i32_0 = arith.constant 0 : i32
    %c0_i32_1 = arith.constant 0 : i32
    return %c0_i32, %c0_i32_0 : i32, i32
  }
}

module attributes {stable_mosaic.version = 11 : i64} {
  func.func @_add_ln_kernel(%arg0: i32, %arg1: memref<38x64xf32, #tpu.memory_space<vmem>>, %arg2: memref<38x64xf32, #tpu.memory_space<vmem>>, %arg3: memref<1x64xf32, #tpu.memory_space<vmem>>, %arg4: memref<1x64xf32, #tpu.memory_space<vmem>>, %arg5: memref<38x64xf32, #tpu.memory_space<vmem>>) attributes {dimension_semantics = [#tpu.dimension_semantics<arbitrary>], iteration_bounds = array<i64: 1>, scalar_prefetch = 0 : i64, scratch_operands = 0 : i64, tpu.core_type = #tpu.core_type<tc>, window_params = [{pipeline_mode = #tpu.pipeline_mode<synchronous>, transform_indices = @transform_0, window_bounds = array<i64: 38, 64>}, {pipeline_mode = #tpu.pipeline_mode<synchronous>, transform_indices = @transform_1, window_bounds = array<i64: 38, 64>}, {pipeline_mode = #tpu.pipeline_mode<synchronous>, transform_indices = @transform_2, window_bounds = array<i64: 1, 64>}, {pipeline_mode = #tpu.pipeline_mode<synchronous>, transform_indices = @transform_3, window_bounds = array<i64: 1, 64>}, {pipeline_mode = #tpu.pipeline_mode<synchronous>, transform_indices = @transform_4, window_bounds = array<i64: 38, 64>}]} {
    %c0 = arith.constant 0 : index
    %c0_0 = arith.constant 0 : index
    %0 = vector.load %arg1[%c0, %c0_0] : memref<38x64xf32, #tpu.memory_space<vmem>>, vector<38x64xf32>
    %c0_1 = arith.constant 0 : index
    %c0_2 = arith.constant 0 : index
    %1 = vector.load %arg2[%c0_1, %c0_2] : memref<38x64xf32, #tpu.memory_space<vmem>>, vector<38x64xf32>
    %2 = arith.addf %0, %1 : vector<38x64xf32>
    %c0_3 = arith.constant 0 : index
    %c0_4 = arith.constant 0 : index
    %3 = vector.load %arg3[%c0_3, %c0_4] : memref<1x64xf32, #tpu.memory_space<vmem>>, vector<1x64xf32>
    %c0_5 = arith.constant 0 : index
    %c0_6 = arith.constant 0 : index
    %4 = vector.load %arg4[%c0_5, %c0_6] : memref<1x64xf32, #tpu.memory_space<vmem>>, vector<1x64xf32>
    %cst = arith.constant dense<0.000000e+00> : vector<38xf32>
    %5 = vector.multi_reduction <add>, %2, %cst [1] : vector<38x64xf32> to vector<38xf32>
    %6 = vector.shape_cast %5 : vector<38xf32> to vector<38x1xf32>
    %cst_7 = arith.constant 6.400000e+01 : f32
    %7 = vector.broadcast %cst_7 : f32 to vector<38x1xf32>
    %8 = arith.divf %6, %7 : vector<38x1xf32>
    %9 = vector.broadcast %8 : vector<38x1xf32> to vector<38x64xf32>
    %10 = arith.subf %2, %9 : vector<38x64xf32>
    %11 = arith.mulf %10, %10 : vector<38x64xf32>
    %cst_8 = arith.constant dense<0.000000e+00> : vector<38xf32>
    %12 = vector.multi_reduction <add>, %11, %cst_8 [1] : vector<38x64xf32> to vector<38xf32>
    %13 = vector.shape_cast %12 : vector<38xf32> to vector<38x1xf32>
    %cst_9 = arith.constant 6.400000e+01 : f32
    %14 = vector.broadcast %cst_9 : f32 to vector<38x1xf32>
    %15 = arith.divf %13, %14 : vector<38x1xf32>
    %16 = vector.broadcast %8 : vector<38x1xf32> to vector<38x64xf32>
    %17 = arith.subf %2, %16 : vector<38x64xf32>
    %cst_10 = arith.constant 9.99999974E-6 : f32
    %18 = vector.broadcast %cst_10 : f32 to vector<38x1xf32>
    %19 = arith.addf %15, %18 : vector<38x1xf32>
    %20 = math.rsqrt %19 : vector<38x1xf32>
    %21 = vector.broadcast %20 : vector<38x1xf32> to vector<38x64xf32>
    %22 = arith.mulf %17, %21 : vector<38x64xf32>
    %23 = vector.broadcast %3 : vector<1x64xf32> to vector<38x64xf32>
    %24 = arith.mulf %22, %23 : vector<38x64xf32>
    %25 = vector.broadcast %4 : vector<1x64xf32> to vector<38x64xf32>
    %26 = arith.addf %24, %25 : vector<38x64xf32>
    %c0_11 = arith.constant 0 : index
    %c0_12 = arith.constant 0 : index
    %27 = vector.load %arg5[%c0_11, %c0_12] : memref<38x64xf32, #tpu.memory_space<vmem>>, vector<38x64xf32>
    tpu.vector_store %arg5[%c0_11, %c0_12], %26 {strides = array<i32>} : memref<38x64xf32, #tpu.memory_space<vmem>>, vector<38x64xf32>,
    return
  }
  func.func @transform_0(%arg0: i32) -> (i32, i32) {
    %c0_i32 = arith.constant 0 : i32
    %c0_i32_0 = arith.constant 0 : i32
    %c0_i32_1 = arith.constant 0 : i32
    return %c0_i32, %c0_i32_0 : i32, i32
  }
  func.func @transform_1(%arg0: i32) -> (i32, i32) {
    %c0_i32 = arith.constant 0 : i32
    %c0_i32_0 = arith.constant 0 : i32
    %c0_i32_1 = arith.constant 0 : i32
    return %c0_i32, %c0_i32_0 : i32, i32
  }
  func.func @transform_2(%arg0: i32) -> (i32, i32) {
    %c0_i32 = arith.constant 0 : i32
    %c0_i32_0 = arith.constant 0 : i32
    %c0_i32_1 = arith.constant 0 : i32
    return %c0_i32, %c0_i32_0 : i32, i32
  }
  func.func @transform_3(%arg0: i32) -> (i32, i32) {
    %c0_i32 = arith.constant 0 : i32
    %c0_i32_0 = arith.constant 0 : i32
    %c0_i32_1 = arith.constant 0 : i32
    return %c0_i32, %c0_i32_0 : i32, i32
  }
  func.func @transform_4(%arg0: i32) -> (i32, i32) {
    %c0_i32 = arith.constant 0 : i32
    %c0_i32_0 = arith.constant 0 : i32
    %c0_i32_1 = arith.constant 0 : i32
    return %c0_i32, %c0_i32_0 : i32, i32
  }
}

module attributes {stable_mosaic.version = 11 : i64} {
  func.func @_encoder_layer_kernel(%arg0: i32, %arg1: memref<1x19x64xf32, #tpu.memory_space<vmem>>, %arg2: memref<1x64xf32, #tpu.memory_space<vmem>>, %arg3: memref<1x64xf32, #tpu.memory_space<vmem>>, %arg4: memref<64x192xf32, #tpu.memory_space<vmem>>, %arg5: memref<1x192xf32, #tpu.memory_space<vmem>>, %arg6: memref<64x64xf32, #tpu.memory_space<vmem>>, %arg7: memref<1x64xf32, #tpu.memory_space<vmem>>, %arg8: memref<1x64xf32, #tpu.memory_space<vmem>>, %arg9: memref<1x64xf32, #tpu.memory_space<vmem>>, %arg10: memref<64x128xf32, #tpu.memory_space<vmem>>, %arg11: memref<1x128xf32, #tpu.memory_space<vmem>>, %arg12: memref<128x64xf32, #tpu.memory_space<vmem>>, %arg13: memref<1x64xf32, #tpu.memory_space<vmem>>, %arg14: memref<1x19x64xf32, #tpu.memory_space<vmem>>) attributes {dimension_semantics = [#tpu.dimension_semantics<parallel>], iteration_bounds = array<i64: 2>, scalar_prefetch = 0 : i64, scratch_operands = 0 : i64, tpu.core_type = #tpu.core_type<tc>, window_params = [{transform_indices = @transform_0, window_bounds = array<i64: 1, 19, 64>}, {pipeline_mode = #tpu.pipeline_mode<synchronous>, transform_indices = @transform_1, window_bounds = array<i64: 1, 64>}, {pipeline_mode = #tpu.pipeline_mode<synchronous>, transform_indices = @transform_2, window_bounds = array<i64: 1, 64>}, {pipeline_mode = #tpu.pipeline_mode<synchronous>, transform_indices = @transform_3, window_bounds = array<i64: 64, 192>}, {pipeline_mode = #tpu.pipeline_mode<synchronous>, transform_indices = @transform_4, window_bounds = array<i64: 1, 192>}, {pipeline_mode = #tpu.pipeline_mode<synchronous>, transform_indices = @transform_5, window_bounds = array<i64: 64, 64>}, {pipeline_mode = #tpu.pipeline_mode<synchronous>, transform_indices = @transform_6, window_bounds = array<i64: 1, 64>}, {pipeline_mode = #tpu.pipeline_mode<synchronous>, transform_indices = @transform_7, window_bounds = array<i64: 1, 64>}, {pipeline_mode = #tpu.pipeline_mode<synchronous>, transform_indices = @transform_8, window_bounds = array<i64: 1, 64>}, {pipeline_mode = #tpu.pipeline_mode<synchronous>, transform_indices = @transform_9, window_bounds = array<i64: 64, 128>}, {pipeline_mode = #tpu.pipeline_mode<synchronous>, transform_indices = @transform_10, window_bounds = array<i64: 1, 128>}, {pipeline_mode = #tpu.pipeline_mode<synchronous>, transform_indices = @transform_11, window_bounds = array<i64: 128, 64>}, {pipeline_mode = #tpu.pipeline_mode<synchronous>, transform_indices = @transform_12, window_bounds = array<i64: 1, 64>}, {transform_indices = @transform_13, window_bounds = array<i64: 1, 19, 64>}]} {
    %c0 = arith.constant 0 : index
    %c0_0 = arith.constant 0 : index
    %c0_1 = arith.constant 0 : index
    %0 = vector.load %arg1[%c0, %c0_0, %c0_1] : memref<1x19x64xf32, #tpu.memory_space<vmem>>, vector<1x19x64xf32>
    %1 = vector.shape_cast %0 : vector<1x19x64xf32> to vector<19x64xf32>
    %c0_2 = arith.constant 0 : index
    %c0_3 = arith.constant 0 : index
    %2 = vector.load %arg2[%c0_2, %c0_3] : memref<1x64xf32, #tpu.memory_space<vmem>>, vector<1x64xf32>
    %c0_4 = arith.constant 0 : index
    %c0_5 = arith.constant 0 : index
    %3 = vector.load %arg3[%c0_4, %c0_5] : memref<1x64xf32, #tpu.memory_space<vmem>>, vector<1x64xf32>
    %cst = arith.constant dense<0.000000e+00> : vector<19xf32>
    %4 = vector.multi_reduction <add>, %1, %cst [1] : vector<19x64xf32> to vector<19xf32>
    %5 = vector.shape_cast %4 : vector<19xf32> to vector<19x1xf32>
    %cst_6 = arith.constant 6.400000e+01 : f32
    %6 = vector.broadcast %cst_6 : f32 to vector<19x1xf32>
    %7 = arith.divf %5, %6 : vector<19x1xf32>
    %8 = vector.broadcast %7 : vector<19x1xf32> to vector<19x64xf32>
    %9 = arith.subf %1, %8 : vector<19x64xf32>
    %10 = arith.mulf %9, %9 : vector<19x64xf32>
    %cst_7 = arith.constant dense<0.000000e+00> : vector<19xf32>
    %11 = vector.multi_reduction <add>, %10, %cst_7 [1] : vector<19x64xf32> to vector<19xf32>
    %12 = vector.shape_cast %11 : vector<19xf32> to vector<19x1xf32>
    %cst_8 = arith.constant 6.400000e+01 : f32
    %13 = vector.broadcast %cst_8 : f32 to vector<19x1xf32>
    %14 = arith.divf %12, %13 : vector<19x1xf32>
    %15 = vector.broadcast %7 : vector<19x1xf32> to vector<19x64xf32>
    %16 = arith.subf %1, %15 : vector<19x64xf32>
    %cst_9 = arith.constant 9.99999974E-6 : f32
    %17 = vector.broadcast %cst_9 : f32 to vector<19x1xf32>
    %18 = arith.addf %14, %17 : vector<19x1xf32>
    %19 = math.rsqrt %18 : vector<19x1xf32>
    %20 = vector.broadcast %19 : vector<19x1xf32> to vector<19x64xf32>
    %21 = arith.mulf %16, %20 : vector<19x64xf32>
    %22 = vector.broadcast %2 : vector<1x64xf32> to vector<19x64xf32>
    %23 = arith.mulf %21, %22 : vector<19x64xf32>
    %24 = vector.broadcast %3 : vector<1x64xf32> to vector<19x64xf32>
    %25 = arith.addf %23, %24 : vector<19x64xf32>
    %c0_10 = arith.constant 0 : index
    %c0_11 = arith.constant 0 : index
    %26 = vector.load %arg4[%c0_10, %c0_11] : memref<64x192xf32, #tpu.memory_space<vmem>>, vector<64x192xf32>
    %cst_12 = arith.constant dense<0.000000e+00> : vector<19x192xf32>
    %27 = tpu.matmul %25, %26, %cst_12 {dimension_numbers = #tpu.dot_dimension_numbers<[1], [0], [0], [1], [0, 0, 1, 1], [], []>} : vector<19x64xf32>, vector<64x192xf32>, vector<19x192xf32> -> vector<19x192xf32>
    %c0_13 = arith.constant 0 : index
    %c0_14 = arith.constant 0 : index
    %28 = vector.load %arg5[%c0_13, %c0_14] : memref<1x192xf32, #tpu.memory_space<vmem>>, vector<1x192xf32>
    %29 = vector.broadcast %28 : vector<1x192xf32> to vector<19x192xf32>
    %30 = arith.addf %27, %29 : vector<19x192xf32>
    %31 = vector.extract_strided_slice %30 {offsets = [0, 0], sizes = [19, 16], strides = [1, 1]} : vector<19x192xf32> to vector<19x16xf32>
    %32 = vector.extract_strided_slice %30 {offsets = [0, 64], sizes = [19, 16], strides = [1, 1]} : vector<19x192xf32> to vector<19x16xf32>
    %33 = vector.extract_strided_slice %30 {offsets = [0, 128], sizes = [19, 16], strides = [1, 1]} : vector<19x192xf32> to vector<19x16xf32>
    %34 = tpu.transpose %32, [1, 0] : vector<19x16xf32> -> vector<16x19xf32>
    %cst_15 = arith.constant dense<0.000000e+00> : vector<19x19xf32>
    %35 = tpu.matmul %31, %34, %cst_15 {dimension_numbers = #tpu.dot_dimension_numbers<[1], [0], [0], [1], [0, 0, 1, 1], [], []>} : vector<19x16xf32>, vector<16x19xf32>, vector<19x19xf32> -> vector<19x19xf32>
    %cst_16 = arith.constant dense<0xFF800000> : vector<19xf32>
    %36 = vector.multi_reduction <maximumf>, %35, %cst_16 [1] : vector<19x19xf32> to vector<19xf32>
    %37 = vector.shape_cast %36 : vector<19xf32> to vector<19x1xf32>
    %38 = vector.broadcast %37 : vector<19x1xf32> to vector<19x19xf32>
    %39 = arith.subf %35, %38 : vector<19x19xf32>
    %40 = math.exp %39 : vector<19x19xf32>
    %cst_17 = arith.constant dense<0.000000e+00> : vector<19xf32>
    %41 = vector.multi_reduction <add>, %40, %cst_17 [1] : vector<19x19xf32> to vector<19xf32>
    %42 = vector.shape_cast %41 : vector<19xf32> to vector<19x1xf32>
    %43 = tpu.reciprocal %42 {approx = true} : vector<19x1xf32> -> vector<19x1xf32>
    %44 = vector.broadcast %43 : vector<19x1xf32> to vector<19x19xf32>
    %45 = arith.mulf %40, %44 : vector<19x19xf32>
    %cst_18 = arith.constant dense<0.000000e+00> : vector<19x16xf32>
    %46 = tpu.matmul %45, %33, %cst_18 {dimension_numbers = #tpu.dot_dimension_numbers<[1], [0], [0], [1], [0, 0, 1, 1], [], []>} : vector<19x19xf32>, vector<19x16xf32>, vector<19x16xf32> -> vector<19x16xf32>
    %c0_19 = arith.constant 0 : index
    %c0_20 = arith.constant 0 : index
    %47 = vector.load %arg6[%c0_19, %c0_20] : memref<64x64xf32, #tpu.memory_space<vmem>>, vector<16x64xf32>
    %cst_21 = arith.constant dense<0.000000e+00> : vector<19x64xf32>
    %48 = tpu.matmul %46, %47, %cst_21 {dimension_numbers = #tpu.dot_dimension_numbers<[1], [0], [0], [1], [0, 0, 1, 1], [], []>} : vector<19x16xf32>, vector<16x64xf32>, vector<19x64xf32> -> vector<19x64xf32>
    %49 = vector.extract_strided_slice %30 {offsets = [0, 16], sizes = [19, 16], strides = [1, 1]} : vector<19x192xf32> to vector<19x16xf32>
    %50 = vector.extract_strided_slice %30 {offsets = [0, 80], sizes = [19, 16], strides = [1, 1]} : vector<19x192xf32> to vector<19x16xf32>
    %51 = vector.extract_strided_slice %30 {offsets = [0, 144], sizes = [19, 16], strides = [1, 1]} : vector<19x192xf32> to vector<19x16xf32>
    %52 = tpu.transpose %50, [1, 0] : vector<19x16xf32> -> vector<16x19xf32>
    %cst_22 = arith.constant dense<0.000000e+00> : vector<19x19xf32>
    %53 = tpu.matmul %49, %52, %cst_22 {dimension_numbers = #tpu.dot_dimension_numbers<[1], [0], [0], [1], [0, 0, 1, 1], [], []>} : vector<19x16xf32>, vector<16x19xf32>, vector<19x19xf32> -> vector<19x19xf32>
    %cst_23 = arith.constant dense<0xFF800000> : vector<19xf32>
    %54 = vector.multi_reduction <maximumf>, %53, %cst_23 [1] : vector<19x19xf32> to vector<19xf32>
    %55 = vector.shape_cast %54 : vector<19xf32> to vector<19x1xf32>
    %56 = vector.broadcast %55 : vector<19x1xf32> to vector<19x19xf32>
    %57 = arith.subf %53, %56 : vector<19x19xf32>
    %58 = math.exp %57 : vector<19x19xf32>
    %cst_24 = arith.constant dense<0.000000e+00> : vector<19xf32>
    %59 = vector.multi_reduction <add>, %58, %cst_24 [1] : vector<19x19xf32> to vector<19xf32>
    %60 = vector.shape_cast %59 : vector<19xf32> to vector<19x1xf32>
    %61 = tpu.reciprocal %60 {approx = true} : vector<19x1xf32> -> vector<19x1xf32>
    %62 = vector.broadcast %61 : vector<19x1xf32> to vector<19x19xf32>
    %63 = arith.mulf %58, %62 : vector<19x19xf32>
    %cst_25 = arith.constant dense<0.000000e+00> : vector<19x16xf32>
    %64 = tpu.matmul %63, %51, %cst_25 {dimension_numbers = #tpu.dot_dimension_numbers<[1], [0], [0], [1], [0, 0, 1, 1], [], []>} : vector<19x19xf32>, vector<19x16xf32>, vector<19x16xf32> -> vector<19x16xf32>
    %c16 = arith.constant 16 : index
    %c0_26 = arith.constant 0 : index
    %65 = vector.load %arg6[%c16, %c0_26] : memref<64x64xf32, #tpu.memory_space<vmem>>, vector<16x64xf32>
    %cst_27 = arith.constant dense<0.000000e+00> : vector<19x64xf32>
    %66 = tpu.matmul %64, %65, %cst_27 {dimension_numbers = #tpu.dot_dimension_numbers<[1], [0], [0], [1], [0, 0, 1, 1], [], []>} : vector<19x16xf32>, vector<16x64xf32>, vector<19x64xf32> -> vector<19x64xf32>
    %67 = arith.addf %48, %66 : vector<19x64xf32>
    %68 = vector.extract_strided_slice %30 {offsets = [0, 32], sizes = [19, 16], strides = [1, 1]} : vector<19x192xf32> to vector<19x16xf32>
    %69 = vector.extract_strided_slice %30 {offsets = [0, 96], sizes = [19, 16], strides = [1, 1]} : vector<19x192xf32> to vector<19x16xf32>
    %70 = vector.extract_strided_slice %30 {offsets = [0, 160], sizes = [19, 16], strides = [1, 1]} : vector<19x192xf32> to vector<19x16xf32>
    %71 = tpu.transpose %69, [1, 0] : vector<19x16xf32> -> vector<16x19xf32>
    %cst_28 = arith.constant dense<0.000000e+00> : vector<19x19xf32>
    %72 = tpu.matmul %68, %71, %cst_28 {dimension_numbers = #tpu.dot_dimension_numbers<[1], [0], [0], [1], [0, 0, 1, 1], [], []>} : vector<19x16xf32>, vector<16x19xf32>, vector<19x19xf32> -> vector<19x19xf32>
    %cst_29 = arith.constant dense<0xFF800000> : vector<19xf32>
    %73 = vector.multi_reduction <maximumf>, %72, %cst_29 [1] : vector<19x19xf32> to vector<19xf32>
    %74 = vector.shape_cast %73 : vector<19xf32> to vector<19x1xf32>
    %75 = vector.broadcast %74 : vector<19x1xf32> to vector<19x19xf32>
    %76 = arith.subf %72, %75 : vector<19x19xf32>
    %77 = math.exp %76 : vector<19x19xf32>
    %cst_30 = arith.constant dense<0.000000e+00> : vector<19xf32>
    %78 = vector.multi_reduction <add>, %77, %cst_30 [1] : vector<19x19xf32> to vector<19xf32>
    %79 = vector.shape_cast %78 : vector<19xf32> to vector<19x1xf32>
    %80 = tpu.reciprocal %79 {approx = true} : vector<19x1xf32> -> vector<19x1xf32>
    %81 = vector.broadcast %80 : vector<19x1xf32> to vector<19x19xf32>
    %82 = arith.mulf %77, %81 : vector<19x19xf32>
    %cst_31 = arith.constant dense<0.000000e+00> : vector<19x16xf32>
    %83 = tpu.matmul %82, %70, %cst_31 {dimension_numbers = #tpu.dot_dimension_numbers<[1], [0], [0], [1], [0, 0, 1, 1], [], []>} : vector<19x19xf32>, vector<19x16xf32>, vector<19x16xf32> -> vector<19x16xf32>
    %c32 = arith.constant 32 : index
    %c0_32 = arith.constant 0 : index
    %84 = vector.load %arg6[%c32, %c0_32] : memref<64x64xf32, #tpu.memory_space<vmem>>, vector<16x64xf32>
    %cst_33 = arith.constant dense<0.000000e+00> : vector<19x64xf32>
    %85 = tpu.matmul %83, %84, %cst_33 {dimension_numbers = #tpu.dot_dimension_numbers<[1], [0], [0], [1], [0, 0, 1, 1], [], []>} : vector<19x16xf32>, vector<16x64xf32>, vector<19x64xf32> -> vector<19x64xf32>
    %86 = arith.addf %67, %85 : vector<19x64xf32>
    %87 = vector.extract_strided_slice %30 {offsets = [0, 48], sizes = [19, 16], strides = [1, 1]} : vector<19x192xf32> to vector<19x16xf32>
    %88 = vector.extract_strided_slice %30 {offsets = [0, 112], sizes = [19, 16], strides = [1, 1]} : vector<19x192xf32> to vector<19x16xf32>
    %89 = vector.extract_strided_slice %30 {offsets = [0, 176], sizes = [19, 16], strides = [1, 1]} : vector<19x192xf32> to vector<19x16xf32>
    %90 = tpu.transpose %88, [1, 0] : vector<19x16xf32> -> vector<16x19xf32>
    %cst_34 = arith.constant dense<0.000000e+00> : vector<19x19xf32>
    %91 = tpu.matmul %87, %90, %cst_34 {dimension_numbers = #tpu.dot_dimension_numbers<[1], [0], [0], [1], [0, 0, 1, 1], [], []>} : vector<19x16xf32>, vector<16x19xf32>, vector<19x19xf32> -> vector<19x19xf32>
    %cst_35 = arith.constant dense<0xFF800000> : vector<19xf32>
    %92 = vector.multi_reduction <maximumf>, %91, %cst_35 [1] : vector<19x19xf32> to vector<19xf32>
    %93 = vector.shape_cast %92 : vector<19xf32> to vector<19x1xf32>
    %94 = vector.broadcast %93 : vector<19x1xf32> to vector<19x19xf32>
    %95 = arith.subf %91, %94 : vector<19x19xf32>
    %96 = math.exp %95 : vector<19x19xf32>
    %cst_36 = arith.constant dense<0.000000e+00> : vector<19xf32>
    %97 = vector.multi_reduction <add>, %96, %cst_36 [1] : vector<19x19xf32> to vector<19xf32>
    %98 = vector.shape_cast %97 : vector<19xf32> to vector<19x1xf32>
    %99 = tpu.reciprocal %98 {approx = true} : vector<19x1xf32> -> vector<19x1xf32>
    %100 = vector.broadcast %99 : vector<19x1xf32> to vector<19x19xf32>
    %101 = arith.mulf %96, %100 : vector<19x19xf32>
    %cst_37 = arith.constant dense<0.000000e+00> : vector<19x16xf32>
    %102 = tpu.matmul %101, %89, %cst_37 {dimension_numbers = #tpu.dot_dimension_numbers<[1], [0], [0], [1], [0, 0, 1, 1], [], []>} : vector<19x19xf32>, vector<19x16xf32>, vector<19x16xf32> -> vector<19x16xf32>
    %c48 = arith.constant 48 : index
    %c0_38 = arith.constant 0 : index
    %103 = vector.load %arg6[%c48, %c0_38] : memref<64x64xf32, #tpu.memory_space<vmem>>, vector<16x64xf32>
    %cst_39 = arith.constant dense<0.000000e+00> : vector<19x64xf32>
    %104 = tpu.matmul %102, %103, %cst_39 {dimension_numbers = #tpu.dot_dimension_numbers<[1], [0], [0], [1], [0, 0, 1, 1], [], []>} : vector<19x16xf32>, vector<16x64xf32>, vector<19x64xf32> -> vector<19x64xf32>
    %105 = arith.addf %86, %104 : vector<19x64xf32>
    %106 = arith.addf %1, %105 : vector<19x64xf32>
    %c0_40 = arith.constant 0 : index
    %c0_41 = arith.constant 0 : index
    %107 = vector.load %arg7[%c0_40, %c0_41] : memref<1x64xf32, #tpu.memory_space<vmem>>, vector<1x64xf32>
    %108 = vector.broadcast %107 : vector<1x64xf32> to vector<19x64xf32>
    %109 = arith.addf %106, %108 : vector<19x64xf32>
    %c0_42 = arith.constant 0 : index
    %c0_43 = arith.constant 0 : index
    %110 = vector.load %arg8[%c0_42, %c0_43] : memref<1x64xf32, #tpu.memory_space<vmem>>, vector<1x64xf32>
    %c0_44 = arith.constant 0 : index
    %c0_45 = arith.constant 0 : index
    %111 = vector.load %arg9[%c0_44, %c0_45] : memref<1x64xf32, #tpu.memory_space<vmem>>, vector<1x64xf32>
    %cst_46 = arith.constant dense<0.000000e+00> : vector<19xf32>
    %112 = vector.multi_reduction <add>, %109, %cst_46 [1] : vector<19x64xf32> to vector<19xf32>
    %113 = vector.shape_cast %112 : vector<19xf32> to vector<19x1xf32>
    %cst_47 = arith.constant 6.400000e+01 : f32
    %114 = vector.broadcast %cst_47 : f32 to vector<19x1xf32>
    %115 = arith.divf %113, %114 : vector<19x1xf32>
    %116 = vector.broadcast %115 : vector<19x1xf32> to vector<19x64xf32>
    %117 = arith.subf %109, %116 : vector<19x64xf32>
    %118 = arith.mulf %117, %117 : vector<19x64xf32>
    %cst_48 = arith.constant dense<0.000000e+00> : vector<19xf32>
    %119 = vector.multi_reduction <add>, %118, %cst_48 [1] : vector<19x64xf32> to vector<19xf32>
    %120 = vector.shape_cast %119 : vector<19xf32> to vector<19x1xf32>
    %cst_49 = arith.constant 6.400000e+01 : f32
    %121 = vector.broadcast %cst_49 : f32 to vector<19x1xf32>
    %122 = arith.divf %120, %121 : vector<19x1xf32>
    %123 = vector.broadcast %115 : vector<19x1xf32> to vector<19x64xf32>
    %124 = arith.subf %109, %123 : vector<19x64xf32>
    %cst_50 = arith.constant 9.99999974E-6 : f32
    %125 = vector.broadcast %cst_50 : f32 to vector<19x1xf32>
    %126 = arith.addf %122, %125 : vector<19x1xf32>
    %127 = math.rsqrt %126 : vector<19x1xf32>
    %128 = vector.broadcast %127 : vector<19x1xf32> to vector<19x64xf32>
    %129 = arith.mulf %124, %128 : vector<19x64xf32>
    %130 = vector.broadcast %110 : vector<1x64xf32> to vector<19x64xf32>
    %131 = arith.mulf %129, %130 : vector<19x64xf32>
    %132 = vector.broadcast %111 : vector<1x64xf32> to vector<19x64xf32>
    %133 = arith.addf %131, %132 : vector<19x64xf32>
    %c0_51 = arith.constant 0 : index
    %c0_52 = arith.constant 0 : index
    %134 = vector.load %arg10[%c0_51, %c0_52] : memref<64x128xf32, #tpu.memory_space<vmem>>, vector<64x128xf32>
    %cst_53 = arith.constant dense<0.000000e+00> : vector<19x128xf32>
    %135 = tpu.matmul %133, %134, %cst_53 {dimension_numbers = #tpu.dot_dimension_numbers<[1], [0], [0], [1], [0, 0, 1, 1], [], []>} : vector<19x64xf32>, vector<64x128xf32>, vector<19x128xf32> -> vector<19x128xf32>
    %c0_54 = arith.constant 0 : index
    %c0_55 = arith.constant 0 : index
    %136 = vector.load %arg11[%c0_54, %c0_55] : memref<1x128xf32, #tpu.memory_space<vmem>>, vector<1x128xf32>
    %137 = vector.broadcast %136 : vector<1x128xf32> to vector<19x128xf32>
    %138 = arith.addf %135, %137 : vector<19x128xf32>
    %cst_56 = arith.constant 5.000000e-01 : f32
    %139 = vector.broadcast %cst_56 : f32 to vector<19x128xf32>
    %140 = arith.mulf %139, %138 : vector<19x128xf32>
    %cst_57 = arith.constant 4.471500e-02 : f32
    %141 = vector.broadcast %cst_57 : f32 to vector<19x128xf32>
    %142 = arith.mulf %141, %138 : vector<19x128xf32>
    %143 = arith.mulf %142, %138 : vector<19x128xf32>
    %144 = arith.mulf %143, %138 : vector<19x128xf32>
    %145 = arith.addf %138, %144 : vector<19x128xf32>
    %cst_58 = arith.constant 0.797884583 : f32
    %146 = vector.broadcast %cst_58 : f32 to vector<19x128xf32>
    %147 = arith.mulf %146, %145 : vector<19x128xf32>
    %148 = math.tanh %147 : vector<19x128xf32>
    %cst_59 = arith.constant 1.000000e+00 : f32
    %149 = vector.broadcast %cst_59 : f32 to vector<19x128xf32>
    %150 = arith.addf %149, %148 : vector<19x128xf32>
    %151 = arith.mulf %140, %150 : vector<19x128xf32>
    %c0_60 = arith.constant 0 : index
    %c0_61 = arith.constant 0 : index
    %152 = vector.load %arg12[%c0_60, %c0_61] : memref<128x64xf32, #tpu.memory_space<vmem>>, vector<128x64xf32>
    %cst_62 = arith.constant dense<0.000000e+00> : vector<19x64xf32>
    %153 = tpu.matmul %151, %152, %cst_62 {dimension_numbers = #tpu.dot_dimension_numbers<[1], [0], [0], [1], [0, 0, 1, 1], [], []>} : vector<19x128xf32>, vector<128x64xf32>, vector<19x64xf32> -> vector<19x64xf32>
    %c0_63 = arith.constant 0 : index
    %c0_64 = arith.constant 0 : index
    %154 = vector.load %arg13[%c0_63, %c0_64] : memref<1x64xf32, #tpu.memory_space<vmem>>, vector<1x64xf32>
    %155 = vector.broadcast %154 : vector<1x64xf32> to vector<19x64xf32>
    %156 = arith.addf %153, %155 : vector<19x64xf32>
    %157 = arith.addf %109, %156 : vector<19x64xf32>
    %c0_65 = arith.constant 0 : index
    %c0_66 = arith.constant 0 : index
    %c0_67 = arith.constant 0 : index
    %158 = vector.load %arg14[%c0_65, %c0_66, %c0_67] : memref<1x19x64xf32, #tpu.memory_space<vmem>>, vector<1x19x64xf32>
    %159 = vector.shape_cast %158 : vector<1x19x64xf32> to vector<19x64xf32>
    %160 = vector.shape_cast %157 : vector<19x64xf32> to vector<1x19x64xf32>
    tpu.vector_store %arg14[%c0_65, %c0_66, %c0_67], %160 {strides = array<i32>} : memref<1x19x64xf32, #tpu.memory_space<vmem>>, vector<1x19x64xf32>,
    return
  }
  func.func @transform_0(%arg0: i32) -> (i32, i32, i32) {
    %c0_i32 = arith.constant 0 : i32
    %c0_i32_0 = arith.constant 0 : i32
    %c0_i32_1 = arith.constant 0 : i32
    return %arg0, %c0_i32, %c0_i32_0 : i32, i32, i32
  }
  func.func @transform_1(%arg0: i32) -> (i32, i32) {
    %c0_i32 = arith.constant 0 : i32
    %c0_i32_0 = arith.constant 0 : i32
    %c0_i32_1 = arith.constant 0 : i32
    return %c0_i32, %c0_i32_0 : i32, i32
  }
  func.func @transform_2(%arg0: i32) -> (i32, i32) {
    %c0_i32 = arith.constant 0 : i32
    %c0_i32_0 = arith.constant 0 : i32
    %c0_i32_1 = arith.constant 0 : i32
    return %c0_i32, %c0_i32_0 : i32, i32
  }
  func.func @transform_3(%arg0: i32) -> (i32, i32) {
    %c0_i32 = arith.constant 0 : i32
    %c0_i32_0 = arith.constant 0 : i32
    %c0_i32_1 = arith.constant 0 : i32
    return %c0_i32, %c0_i32_0 : i32, i32
  }
  func.func @transform_4(%arg0: i32) -> (i32, i32) {
    %c0_i32 = arith.constant 0 : i32
    %c0_i32_0 = arith.constant 0 : i32
    %c0_i32_1 = arith.constant 0 : i32
    return %c0_i32, %c0_i32_0 : i32, i32
  }
  func.func @transform_5(%arg0: i32) -> (i32, i32) {
    %c0_i32 = arith.constant 0 : i32
    %c0_i32_0 = arith.constant 0 : i32
    %c0_i32_1 = arith.constant 0 : i32
    return %c0_i32, %c0_i32_0 : i32, i32
  }
  func.func @transform_6(%arg0: i32) -> (i32, i32) {
    %c0_i32 = arith.constant 0 : i32
    %c0_i32_0 = arith.constant 0 : i32
    %c0_i32_1 = arith.constant 0 : i32
    return %c0_i32, %c0_i32_0 : i32, i32
  }
  func.func @transform_7(%arg0: i32) -> (i32, i32) {
    %c0_i32 = arith.constant 0 : i32
    %c0_i32_0 = arith.constant 0 : i32
    %c0_i32_1 = arith.constant 0 : i32
    return %c0_i32, %c0_i32_0 : i32, i32
  }
  func.func @transform_8(%arg0: i32) -> (i32, i32) {
    %c0_i32 = arith.constant 0 : i32
    %c0_i32_0 = arith.constant 0 : i32
    %c0_i32_1 = arith.constant 0 : i32
    return %c0_i32, %c0_i32_0 : i32, i32
  }
  func.func @transform_9(%arg0: i32) -> (i32, i32) {
    %c0_i32 = arith.constant 0 : i32
    %c0_i32_0 = arith.constant 0 : i32
    %c0_i32_1 = arith.constant 0 : i32
    return %c0_i32, %c0_i32_0 : i32, i32
  }
  func.func @transform_10(%arg0: i32) -> (i32, i32) {
    %c0_i32 = arith.constant 0 : i32
    %c0_i32_0 = arith.constant 0 : i32
    %c0_i32_1 = arith.constant 0 : i32
    return %c0_i32, %c0_i32_0 : i32, i32
  }
  func.func @transform_11(%arg0: i32) -> (i32, i32) {
    %c0_i32 = arith.constant 0 : i32
    %c0_i32_0 = arith.constant 0 : i32
    %c0_i32_1 = arith.constant 0 : i32
    return %c0_i32, %c0_i32_0 : i32, i32
  }
  func.func @transform_12(%arg0: i32) -> (i32, i32) {
    %c0_i32 = arith.constant 0 : i32
    %c0_i32_0 = arith.constant 0 : i32
    %c0_i32_1 = arith.constant 0 : i32
    return %c0_i32, %c0_i32_0 : i32, i32
  }
  func.func @transform_13(%arg0: i32) -> (i32, i32, i32) {
    %c0_i32 = arith.constant 0 : i32
    %c0_i32_0 = arith.constant 0 : i32
    %c0_i32_1 = arith.constant 0 : i32
    return %arg0, %c0_i32, %c0_i32_0 : i32, i32, i32
  }
}

module attributes {stable_mosaic.version = 11 : i64} {
  func.func @_linear_kernel(%arg0: i32, %arg1: memref<38x64xf32, #tpu.memory_space<vmem>>, %arg2: memref<64x128xf32, #tpu.memory_space<vmem>>, %arg3: memref<1x128xf32, #tpu.memory_space<vmem>>, %arg4: memref<38x128xf32, #tpu.memory_space<vmem>>) attributes {dimension_semantics = [#tpu.dimension_semantics<arbitrary>], iteration_bounds = array<i64: 1>, scalar_prefetch = 0 : i64, scratch_operands = 0 : i64, tpu.core_type = #tpu.core_type<tc>, window_params = [{pipeline_mode = #tpu.pipeline_mode<synchronous>, transform_indices = @transform_0, window_bounds = array<i64: 38, 64>}, {pipeline_mode = #tpu.pipeline_mode<synchronous>, transform_indices = @transform_1, window_bounds = array<i64: 64, 128>}, {pipeline_mode = #tpu.pipeline_mode<synchronous>, transform_indices = @transform_2, window_bounds = array<i64: 1, 128>}, {pipeline_mode = #tpu.pipeline_mode<synchronous>, transform_indices = @transform_3, window_bounds = array<i64: 38, 128>}]} {
    %c0 = arith.constant 0 : index
    %c0_0 = arith.constant 0 : index
    %0 = vector.load %arg1[%c0, %c0_0] : memref<38x64xf32, #tpu.memory_space<vmem>>, vector<38x64xf32>
    %c0_1 = arith.constant 0 : index
    %c0_2 = arith.constant 0 : index
    %1 = vector.load %arg2[%c0_1, %c0_2] : memref<64x128xf32, #tpu.memory_space<vmem>>, vector<64x128xf32>
    %cst = arith.constant dense<0.000000e+00> : vector<38x128xf32>
    %2 = tpu.matmul %0, %1, %cst {dimension_numbers = #tpu.dot_dimension_numbers<[1], [0], [0], [1], [0, 0, 1, 1], [], []>} : vector<38x64xf32>, vector<64x128xf32>, vector<38x128xf32> -> vector<38x128xf32>
    %c0_3 = arith.constant 0 : index
    %c0_4 = arith.constant 0 : index
    %3 = vector.load %arg3[%c0_3, %c0_4] : memref<1x128xf32, #tpu.memory_space<vmem>>, vector<1x128xf32>
    %4 = vector.broadcast %3 : vector<1x128xf32> to vector<38x128xf32>
    %5 = arith.addf %2, %4 : vector<38x128xf32>
    %c0_5 = arith.constant 0 : index
    %c0_6 = arith.constant 0 : index
    %6 = vector.load %arg4[%c0_5, %c0_6] : memref<38x128xf32, #tpu.memory_space<vmem>>, vector<38x128xf32>
    tpu.vector_store %arg4[%c0_5, %c0_6], %5 {strides = array<i32>} : memref<38x128xf32, #tpu.memory_space<vmem>>, vector<38x128xf32>,
    return
  }
  func.func @transform_0(%arg0: i32) -> (i32, i32) {
    %c0_i32 = arith.constant 0 : i32
    %c0_i32_0 = arith.constant 0 : i32
    %c0_i32_1 = arith.constant 0 : i32
    return %c0_i32, %c0_i32_0 : i32, i32
  }
  func.func @transform_1(%arg0: i32) -> (i32, i32) {
    %c0_i32 = arith.constant 0 : i32
    %c0_i32_0 = arith.constant 0 : i32
    %c0_i32_1 = arith.constant 0 : i32
    return %c0_i32, %c0_i32_0 : i32, i32
  }
  func.func @transform_2(%arg0: i32) -> (i32, i32) {
    %c0_i32 = arith.constant 0 : i32
    %c0_i32_0 = arith.constant 0 : i32
    %c0_i32_1 = arith.constant 0 : i32
    return %c0_i32, %c0_i32_0 : i32, i32
  }
  func.func @transform_3(%arg0: i32) -> (i32, i32) {
    %c0_i32 = arith.constant 0 : i32
    %c0_i32_0 = arith.constant 0 : i32
    %c0_i32_1 = arith.constant 0 : i32
    return %c0_i32, %c0_i32_0 : i32, i32
  }
}

</mosaic_0001>

<bundles_post_ra>
// kernel: fwd.9
= control target key start
LH: loop header
LB: loop body
LE: loop exit
PB: predicated region body
PF: predicated region fallthrough
CT: control target
= control target key end

     0   :  { %vm49_vm0 = vcmask 130048   ;;  %vm277_vm1 = vcmask 261120   ;;  %vm335_vm2 = vcmask 259072   ;;  %s1565_s1 = inlined_call_operand.vmem [shape: f32[16,32], index: 1, kind: input, shape index: {}]   ;;  %s1566_s0 = inlined_call_operand.vmem [shape: f32[158,16], index: 0, kind: input, shape index: {}]   ;;  %s1567_s2 = inlined_call_operand.vmem [shape: f32[1,32], index: 2, kind: input, shape index: {}, may-alias: {2,4}]   ;;  %s1568_s3 = inlined_call_operand.vmem [shape: f32[1,32], index: 3, kind: input, shape index: {}]   ;;  %s1569_s4 = inlined_call_operand.vmem [shape: f32[1,32], index: 4, kind: input, shape index: {}, may-alias: {2,4}]   ;;  %s1570_s5 = inlined_call_operand.vmem [shape: f32[158,32], index: 5, kind: output, shape index: {}]  }
   0x1   :  { %v40_v0 = vld [vmem:[%s1565_s1] sm:$0xff]  ;;  %v41_v1 = vld [vmem:[%s1565_s1 + $0x8] sm:$0xff]  ;;  %v30_v4 = vld [vmem:[%s1566_s0 + $0x50] sm:$0xff] }
   0x2   :  { %v20_v2 = vld [vmem:[%s1566_s0] sm:$0xff]  ;;  %v875_v3 = vpack.c.bf16 %v41_v1, %v40_v0  ;;  %860 = vmatprep.mubr.msk.f32.mxu1 %vm49_vm0, %v30_v4  ;;  %v21_v5 = vld [vmem:[%s1566_s0 + $0x8] sm:$0xff]  ;;  %v31_v6 = vld [vmem:[%s1566_s0 + $0x58] sm:$0xff] }
   0x3   :  { %845 = vmatprep.mubr.msk.f32.mxu0 %vm49_vm0, %v20_v2  ;;  %v22_v7 = vld [vmem:[%s1566_s0 + $0x10] sm:$0xff]  ;;  %v32_v8 = vld [vmem:[%s1566_s0 + $0x60] sm:$0xff]  ;;  %v23_v9 = vld [vmem:[%s1566_s0 + $0x18] sm:$0xff] }
   0x4   :  { %876 = vmatprep.subr.bf16.mxu0 %v875_v3  ;;  %879 = vmatprep.subr.bf16.mxu1 %v875_v3  ;;  %v33_v10 = vld [vmem:[%s1566_s0 + $0x68] sm:$0xff]  ;;  %v24_v11 = vld [vmem:[%s1566_s0 + $0x20] sm:$0xff]  ;;  %v34_v12 = vld [vmem:[%s1566_s0 + $0x70] sm:$0xff] }
   0x5   :  { %878 = vmatpush3.bf16.msra.mxu0 %v875_v3  ;;  %880 = vmatpush3.bf16.msra.mxu1 %v875_v3  ;;  %v25_v13 = vld [vmem:[%s1566_s0 + $0x28] sm:$0xff]  ;;  %v35_v14 = vld [vmem:[%s1566_s0 + $0x78] sm:$0xff]  ;;  %v26_v15 = vld [vmem:[%s1566_s0 + $0x30] sm:$0xff] }
   0x6   :  { %v36_v16 = vld [vmem:[%s1566_s0 + $0x80] sm:$0xff]  ;;  %v27_v17 = vld [vmem:[%s1566_s0 + $0x38] sm:$0xff]  ;;  %v37_v18 = vld [vmem:[%s1566_s0 + $0x88] sm:$0xff] }
   0x7   :  { %v28_v19 = vld [vmem:[%s1566_s0 + $0x40] sm:$0xff]  ;;  %v38_v20 = vld [vmem:[%s1566_s0 + $0x90] sm:$0xff]  ;;  %v29_v21 = vld [vmem:[%s1566_s0 + $0x48] sm:$0xff] }
   0x8   :  { %846 = vmatmul.mubr.msk.f32.vlgmr.msra.gmra.mrb[0].mxu0 %vm49_vm0, %v21_v5  ;;  %861 = vmatmul.mubr.msk.f32.vlgmr.msra.gmra.mrb[0].mxu1 %vm49_vm0, %v31_v6  ;;  %v39_v22 = vld [vmem:[%s1566_s0 + $0x98] sm:$0x3f]  ;;  %v1080_v23 = vld [vmem:[%s1567_s2] ss:$0 sm:$0xff] }
   0x9   :  { %848 = vmatprep.mubr.msk.f32.mxu0 %vm49_vm0, %v22_v7  ;;  %863 = vmatprep.mubr.msk.f32.mxu1 %vm49_vm0, %v32_v8 }
   0xc   :  { %849 = vmatmul.mubr.msk.f32.gmra.mrb[2].mxu0 %vm49_vm0, %v23_v9  ;;  %864 = vmatmul.mubr.msk.f32.gmra.mrb[2].mxu1 %vm49_vm0, %v33_v10 }
   0xd   :  { %851 = vmatprep.mubr.msk.f32.mxu0 %vm49_vm0, %v24_v11  ;;  %866 = vmatprep.mubr.msk.f32.mxu1 %vm49_vm0, %v34_v12 }
  0x10   :  { %852 = vmatmul.mubr.msk.f32.gmra.mrb[4].mxu0 %vm49_vm0, %v25_v13  ;;  %867 = vmatmul.mubr.msk.f32.gmra.mrb[4].mxu1 %vm49_vm0, %v35_v14 }
  0x11   :  { %854 = vmatprep.mubr.msk.f32.mxu0 %vm49_vm0, %v26_v15  ;;  %869 = vmatprep.mubr.msk.f32.mxu1 %vm49_vm0, %v36_v16 }
  0x14   :  { %855 = vmatmul.mubr.msk.f32.gmra.mrb[6].mxu0 %vm49_vm0, %v27_v17  ;;  %870 = vmatmul.mubr.msk.f32.gmra.mrb[6].mxu1 %vm49_vm0, %v37_v18 }
  0x15   :  { %857 = vmatprep.mubr.msk.f32.mxu0 %vm49_vm0, %v28_v19  ;;  %872 = vmatprep.mubr.msk.f32.mxu1 %vm49_vm0, %v38_v20 }
  0x18   :  { %858 = vmatmul.mubr.msk.f32.gmra.mrb[8].mxu0 %vm49_vm0, %v29_v21  ;;  %873 = vmatmul.mubr.msk.f32.gmra.mrb[8].mxu1 %vm49_vm0, %v39_v22 }
  0xdb   :  { %v847_v24 = vpop.f32.mrb[0].mxu0  ;;  %v862_v25 = vpop.f32.mrb[0].mxu1 }
  0xdc   :  { %v1083_v26 = vadd.f32 %v847_v24, %v1080_v23  ;;  %v1086_v27 = vadd.f32 %v862_v25, %v1080_v23  ;;  %v176_v28 = vpop.f32.mrb[1].mxu0  ;;  %v226_v29 = vpop.f32.mrb[1].mxu1 }
  0xdd   :  { %v1089_v30 = vadd.f32 %v1080_v23, %v176_v28  ;;  %v1102_v39 = vadd.f32 %v1080_v23, %v226_v29 }
  0xde   :  { %v311_v31 = vsel %vm277_vm1, %v1086_v27, 0.0  ;;  %v281_v32 = vsel %vm277_vm1, %v1083_v26, 0.0 }
  0xdf   :  { %312 = vadd.xlane.f32.xlu1 %v311_v31  ;;  %282 = vadd.xlane.f32.xlu0 %v281_v32  ;;  %v850_v33 = vpop.f32.mrb[2].mxu0  ;;  %v865_v34 = vpop.f32.mrb[2].mxu1  ;;  %v278_v41 = vsel %vm277_vm1, %v1089_v30, 0.0  ;;  %v308_v49 = vsel %vm277_vm1, %v1102_v39, 0.0 }
  0xe0   :  { %v1096_v35 = vadd.f32 %v850_v33, %v1080_v23  ;;  %v186_v36 = vpop.f32.mrb[3].mxu0  ;;  %v1099_v37 = vadd.f32 %v865_v34, %v1080_v23  ;;  %v236_v38 = vpop.f32.mrb[3].mxu1 }
  0xe1   :  { %v1111_v47 = vadd.f32 %v1080_v23, %v186_v36  ;;  %v1114_v48 = vadd.f32 %v1080_v23, %v236_v38 }
  0xe2   :  { %v287_v40 = vsel %vm277_vm1, %v1096_v35, 0.0  ;;  %v317_v44 = vsel %vm277_vm1, %v1099_v37, 0.0 }
  0xe3   :  { %288 = vadd.xlane.f32.xlu1 %v287_v40  ;;  %279 = vadd.xlane.f32.xlu0 %v278_v41  ;;  %v853_v42 = vpop.f32.mrb[4].mxu0  ;;  %v868_v43 = vpop.f32.mrb[4].mxu1  ;;  %v284_v56 = vsel %vm277_vm1, %v1111_v47, 0.0  ;;  %v314_v57 = vsel %vm277_vm1, %v1114_v48, 0.0 }
  0xe4   :  { %v196_v45 = vpop.f32.mrb[5].mxu0  ;;  %v246_v46 = vpop.f32.mrb[5].mxu1  ;;  %v1119_v52 = vadd.f32 %v853_v42, %v1080_v23  ;;  %v1129_v60 = vadd.f32 %v868_v43, %v1080_v23 }
  0xe5   :  { %v1122_v53 = vadd.f32 %v1080_v23, %v196_v45  ;;  %v1132_v61 = vadd.f32 %v1080_v23, %v246_v46 }
  0xe6   :  { %v293_v62 = vsel %vm277_vm1, %v1119_v52, 0.0  ;;  %v323_v4 = vsel %vm277_vm1, %v1129_v60, 0.0 }
  0xe7   :  { %318 = vadd.xlane.f32.xlu1 %v317_v44  ;;  %309 = vadd.xlane.f32.xlu0 %v308_v49  ;;  %v856_v50 = vpop.f32.mrb[6].mxu0  ;;  %v871_v51 = vpop.f32.mrb[6].mxu1  ;;  %v290_v63 = vsel %vm277_vm1, %v1122_v53, 0.0  ;;  %v320_v5 = vsel %vm277_vm1, %v1132_v61, 0.0 }
  0xe8   :  { %v206_v54 = vpop.f32.mrb[7].mxu0  ;;  %v256_v55 = vpop.f32.mrb[7].mxu1  ;;  %v1139_v2 = vadd.f32 %v856_v50, %v1080_v23  ;;  %v1149_v6 = vadd.f32 %v871_v51, %v1080_v23 }
  0xe9   :  { %v1142_v3 = vadd.f32 %v1080_v23, %v206_v54  ;;  %v1152_v7 = vadd.f32 %v1080_v23, %v256_v55 }
  0xea   :  { %v299_v8 = vsel %vm277_vm1, %v1139_v2, 0.0  ;;  %v329_v12 = vsel %vm277_vm1, %v1149_v6, 0.0 }
  0xeb   :  { %285 = vadd.xlane.f32.xlu1 %v284_v56  ;;  %315 = vadd.xlane.f32.xlu0 %v314_v57  ;;  %v859_v58 = vpop.f32.mrb[8].mxu0  ;;  %v874_v59 = vpop.f32.mrb[8].mxu1  ;;  %v296_v9 = vsel %vm277_vm1, %v1142_v3, 0.0  ;;  %v326_v13 = vsel %vm277_vm1, %v1152_v7, 0.0 }
  0xec   :  { %v216_v0 = vpop.f32.mrb[9].mxu0  ;;  %v266_v1 = vpop.f32.mrb[9].mxu1  ;;  %v1159_v10 = vadd.f32 %v859_v58, %v1080_v23  ;;  %v1169_v14 = vadd.f32 %v874_v59, %v1080_v23 }
  0xed   :  { %v1162_v11 = vadd.f32 %v1080_v23, %v216_v0  ;;  %v1172_v15 = vadd.f32 %v1080_v23, %v266_v1 }
  0xee   :  { %v305_v16 = vsel %vm277_vm1, %v1159_v10, 0.0  ;;  %v336_v18 = vsel %vm335_vm2, %v1169_v14, 0.0 }
  0xef   :  { %294 = vadd.xlane.f32.xlu1 %v293_v62  ;;  %291 = vadd.xlane.f32.xlu0 %v290_v63  ;;  %v302_v17 = vsel %vm277_vm1, %v1162_v11, 0.0  ;;  %v332_v19 = vsel %vm277_vm1, %v1172_v15, 0.0 }
  0xf3   :  { %324 = vadd.xlane.f32.xlu1 %v323_v4  ;;  %321 = vadd.xlane.f32.xlu0 %v320_v5 }
  0xf7   :  { %300 = vadd.xlane.f32.xlu1 %v299_v8  ;;  %297 = vadd.xlane.f32.xlu0 %v296_v9 }
  0xfb   :  { %330 = vadd.xlane.f32.xlu1 %v329_v12  ;;  %327 = vadd.xlane.f32.xlu0 %v326_v13 }
  0xff   :  { %306 = vadd.xlane.f32.xlu1 %v305_v16  ;;  %303 = vadd.xlane.f32.xlu0 %v302_v17 }
 0x103   :  { %337 = vadd.xlane.f32.xlu1 %v336_v18  ;;  %333 = vadd.xlane.f32.xlu0 %v332_v19 }
 0x16c   :  { %v313_v20 = vpop.xlane.xlu1 %312  ;;  %v283_v21 = vpop.xlane.xlu0 %282 }
 0x16d   :  { %v351_v22 = vmul.f32 0.03125, %v313_v20  ;;  %v341_v23 = vmul.f32 0.03125, %v283_v21 }
 0x16f   :  { %v1183_v24 = vsub.f32 %v1086_v27, %v351_v22  ;;  %v1186_v25 = vsub.f32 %v1083_v26, %v341_v23 }
 0x170   :  { %v289_v28 = vpop.xlane.xlu1 %288  ;;  %v280_v29 = vpop.xlane.xlu0 %279 }
 0x171   :  { %v343_v31 = vmul.f32 0.03125, %v289_v28  ;;  %v340_v32 = vmul.f32 0.03125, %v280_v29  ;;  %v381_v33 = vmul.f32 %v1186_v25, %v1186_v25  ;;  %v391_v27 = vmul.f32 %v1183_v24, %v1183_v24 }
 0x173   :  { %v1191_v34 = vsub.f32 %v1096_v35, %v343_v31  ;;  %v1194_v36 = vsub.f32 %v1089_v30, %v340_v32  ;;  %v403_v38 = vsel %vm277_vm1, %v381_v33, 0.0  ;;  %v433_v45 = vsel %vm277_vm1, %v391_v27, 0.0 }
 0x174   :  { %v319_v26 = vpop.xlane.xlu1 %318  ;;  %404 = vadd.xlane.f32.xlu1 %v403_v38  ;;  %v310_v40 = vpop.xlane.xlu0 %309 }
 0x175   :  { %v353_v41 = vmul.f32 0.03125, %v319_v26  ;;  %v350_v42 = vmul.f32 0.03125, %v310_v40  ;;  %v380_v43 = vmul.f32 %v1194_v36, %v1194_v36  ;;  %v383_v35 = vmul.f32 %v1191_v34, %v1191_v34 }
 0x177   :  { %v1204_v44 = vsub.f32 %v1099_v37, %v353_v41  ;;  %v1207_v30 = vsub.f32 %v1102_v39, %v350_v42  ;;  %v400_v46 = vsel %vm277_vm1, %v380_v43, 0.0  ;;  %v409_v56 = vsel %vm277_vm1, %v383_v35, 0.0 }
 0x178   :  { %434 = vadd.xlane.f32.xlu1 %v433_v45  ;;  %v286_v49 = vpop.xlane.xlu1 %285  ;;  %401 = vadd.xlane.f32.xlu0 %v400_v46  ;;  %v316_v50 = vpop.xlane.xlu0 %315 }
 0x179   :  { %v342_v51 = vmul.f32 0.03125, %v286_v49  ;;  %v352_v54 = vmul.f32 0.03125, %v316_v50  ;;  %v390_v55 = vmul.f32 %v1207_v30, %v1207_v30  ;;  %v393_v58 = vmul.f32 %v1204_v44, %v1204_v44 }
 0x17b   :  { %v1215_v37 = vsub.f32 %v1111_v47, %v342_v51  ;;  %v1218_v39 = vsub.f32 %v1114_v48, %v352_v54  ;;  %v430_v57 = vsel %vm277_vm1, %v390_v55, 0.0  ;;  %v439_v5 = vsel %vm277_vm1, %v393_v58, 0.0 }
 0x17c   :  { %410 = vadd.xlane.f32.xlu1 %v409_v56  ;;  %v295_v59 = vpop.xlane.xlu1 %294  ;;  %431 = vadd.xlane.f32.xlu0 %v430_v57  ;;  %v292_v62 = vpop.xlane.xlu0 %291 }
 0x17d   :  { %v345_v63 = vmul.f32 0.03125, %v295_v59  ;;  %v344_v0 = vmul.f32 0.03125, %v292_v62  ;;  %v382_v1 = vmul.f32 %v1215_v37, %v1215_v37  ;;  %v392_v47 = vmul.f32 %v1218_v39, %v1218_v39 }
 0x17f   :  { %v1228_v48 = vsub.f32 %v1119_v52, %v345_v63  ;;  %v1231_v4 = vsub.f32 %v1122_v53, %v344_v0  ;;  %v406_v8 = vsel %vm277_vm1, %v382_v1, 0.0  ;;  %v436_v18 = vsel %vm277_vm1, %v392_v47, 0.0 }
 0x180   :  { %440 = vadd.xlane.f32.xlu1 %v439_v5  ;;  %v325_v9 = vpop.xlane.xlu1 %324  ;;  %407 = vadd.xlane.f32.xlu0 %v406_v8  ;;  %v322_v12 = vpop.xlane.xlu0 %321 }
 0x181   :  { %v355_v13 = vmul.f32 0.03125, %v325_v9  ;;  %v354_v16 = vmul.f32 0.03125, %v322_v12  ;;  %v385_v17 = vmul.f32 %v1228_v48, %v1228_v48  ;;  %v384_v20 = vmul.f32 %v1231_v4, %v1231_v4 }
 0x183   :  { %v1239_v52 = vsub.f32 %v1129_v60, %v355_v13  ;;  %v1242_v53 = vsub.f32 %v1132_v61, %v354_v16  ;;  %v415_v19 = vsel %vm277_vm1, %v385_v17, 0.0  ;;  %v412_v33 = vsel %vm277_vm1, %v384_v20, 0.0 }
 0x184   :  { %416 = vadd.xlane.f32.xlu1 %v415_v19  ;;  %v301_v21 = vpop.xlane.xlu1 %300  ;;  %437 = vadd.xlane.f32.xlu0 %v436_v18  ;;  %v298_v22 = vpop.xlane.xlu0 %297 }
 0x185   :  { %v347_v23 = vmul.f32 0.03125, %v301_v21  ;;  %v346_v28 = vmul.f32 0.03125, %v298_v22  ;;  %v395_v29 = vmul.f32 %v1239_v52, %v1239_v52  ;;  %v394_v60 = vmul.f32 %v1242_v53, %v1242_v53 }
 0x187   :  { %v1252_v61 = vsub.f32 %v1139_v2, %v347_v23  ;;  %v1255_v31 = vsub.f32 %v1142_v3, %v346_v28  ;;  %v445_v32 = vsel %vm277_vm1, %v395_v29, 0.0  ;;  %v442_v42 = vsel %vm277_vm1, %v394_v60, 0.0 }
 0x188   :  { %446 = vadd.xlane.f32.xlu1 %v445_v32  ;;  %v331_v38 = vpop.xlane.xlu1 %330  ;;  %413 = vadd.xlane.f32.xlu0 %v412_v33  ;;  %v328_v27 = vpop.xlane.xlu0 %327 }
 0x189   :  { %v357_v26 = vmul.f32 0.03125, %v331_v38  ;;  %v356_v40 = vmul.f32 0.03125, %v328_v27  ;;  %v387_v41 = vmul.f32 %v1252_v61, %v1252_v61  ;;  %v386_v35 = vmul.f32 %v1255_v31, %v1255_v31 }
 0x18b   :  { %v1263_v2 = vsub.f32 %v1149_v6, %v357_v26  ;;  %v1266_v3 = vsub.f32 %v1152_v7, %v356_v40  ;;  %v421_v43 = vsel %vm277_vm1, %v387_v41, 0.0  ;;  %v418_v56 = vsel %vm277_vm1, %v386_v35, 0.0 }
 0x18c   :  { %422 = vadd.xlane.f32.xlu1 %v421_v43  ;;  %v307_v45 = vpop.xlane.xlu1 %306  ;;  %443 = vadd.xlane.f32.xlu0 %v442_v42  ;;  %v304_v46 = vpop.xlane.xlu0 %303  ;;  %v1305_v42 = vld [vmem:[%s1568_s3] ss:$0 sm:$0xff] }
 0x18d   :  { %v349_v49 = vmul.f32 0.03125, %v307_v45  ;;  %v348_v50 = vmul.f32 0.03125, %v304_v46  ;;  %v397_v51 = vmul.f32 %v1263_v2, %v1263_v2  ;;  %v396_v6 = vmul.f32 %v1266_v3, %v1266_v3 }
 0x18f   :  { %v1276_v7 = vsub.f32 %v1159_v10, %v349_v49  ;;  %v1279_v54 = vsub.f32 %v1162_v11, %v348_v50  ;;  %v451_v55 = vsel %vm277_vm1, %v397_v51, 0.0  ;;  %v448_v0 = vsel %vm277_vm1, %v396_v6, 0.0  ;;  %v1311_v50 = vld [vmem:[%s1569_s4] ss:$0 sm:$0xff] }
 0x190   :  { %452 = vadd.xlane.f32.xlu1 %v451_v55  ;;  %v338_v57 = vpop.xlane.xlu1 %337  ;;  %419 = vadd.xlane.f32.xlu0 %v418_v56  ;;  %v334_v58 = vpop.xlane.xlu0 %333 }
 0x191   :  { %v359_v59 = vmul.f32 0.03125, %v338_v57  ;;  %v358_v62 = vmul.f32 0.03125, %v334_v58  ;;  %v389_v63 = vmul.f32 %v1276_v7, %v1276_v7  ;;  %v388_v47 = vmul.f32 %v1279_v54, %v1279_v54 }
 0x193   :  { %v1287_v10 = vsub.f32 %v1169_v14, %v359_v59  ;;  %v1290_v11 = vsub.f32 %v1172_v15, %v358_v62  ;;  %v427_v1 = vsel %vm277_vm1, %v389_v63, 0.0  ;;  %v424_v9 = vsel %vm277_vm1, %v388_v47, 0.0 }
 0x194   :  { %428 = vadd.xlane.f32.xlu1 %v427_v1  ;;  %449 = vadd.xlane.f32.xlu0 %v448_v0 }
 0x195   :  { %v399_v5 = vmul.f32 %v1287_v10, %v1287_v10  ;;  %v398_v14 = vmul.f32 %v1290_v11, %v1290_v11 }
 0x197   :  { %v457_v8 = vsel %vm335_vm2, %v399_v5, 0.0  ;;  %v454_v15 = vsel %vm277_vm1, %v398_v14, 0.0 }
 0x198   :  { %458 = vadd.xlane.f32.xlu1 %v457_v8  ;;  %425 = vadd.xlane.f32.xlu0 %v424_v9 }
 0x19c   :  { %455 = vadd.xlane.f32.xlu0 %v454_v15 }
 0x201   :  { %v405_v12 = vpop.xlane.xlu1 %404 }
 0x202   :  { %v461_v13 = vmul.f32 0.03125, %v405_v12 }
 0x204   :  { %v481_v16 = vadd.f32 1e-05, %v461_v13 }
 0x205   :  { %v435_v17 = vpop.xlane.xlu1 %434  ;;  %v402_v18 = vpop.xlane.xlu0 %401 }
 0x206   :  { %881 = vrsqrt.f32 %v481_v16  ;;  %v471_v19 = vmul.f32 0.03125, %v435_v17  ;;  %v460_v20 = vmul.f32 0.03125, %v402_v18 }
 0x208   :  { %v491_v21 = vadd.f32 1e-05, %v471_v19  ;;  %v480_v22 = vadd.f32 1e-05, %v460_v20 }
 0x209   :  { %v411_v23 = vpop.xlane.xlu1 %410  ;;  %v432_v28 = vpop.xlane.xlu0 %431 }
 0x20a   :  { %883 = vrsqrt.f32 %v491_v21  ;;  %v463_v29 = vmul.f32 0.03125, %v411_v23  ;;  %v470_v60 = vmul.f32 0.03125, %v432_v28 }
 0x20b   :  { %885 = vrsqrt.f32 %v480_v22 }
 0x20c   :  { %v483_v32 = vadd.f32 1e-05, %v463_v29  ;;  %v490_v33 = vadd.f32 1e-05, %v470_v60 }
 0x20d   :  { %v441_v38 = vpop.xlane.xlu1 %440  ;;  %v408_v27 = vpop.xlane.xlu0 %407 }
 0x20e   :  { %887 = vrsqrt.f32 %v483_v32  ;;  %v473_v26 = vmul.f32 0.03125, %v441_v38  ;;  %v462_v40 = vmul.f32 0.03125, %v408_v27 }
 0x20f   :  { %889 = vrsqrt.f32 %v490_v33 }
 0x210   :  { %v882_v41 = vpop.eup %881  ;;  %v493_v43 = vadd.f32 1e-05, %v473_v26  ;;  %v482_v35 = vadd.f32 1e-05, %v462_v40 }
 0x211   :  { %v521_v45 = vmul.f32 %v882_v41, %v1186_v25  ;;  %v417_v46 = vpop.xlane.xlu1 %416  ;;  %v438_v49 = vpop.xlane.xlu0 %437 }
 0x212   :  { %891 = vrsqrt.f32 %v493_v43  ;;  %v465_v51 = vmul.f32 0.03125, %v417_v46  ;;  %v472_v6 = vmul.f32 0.03125, %v438_v49 }
 0x213   :  { %v547_v55 = vmul.f32 %v1305_v42, %v521_v45  ;;  %893 = vrsqrt.f32 %v482_v35 }
 0x214   :  { %v884_v56 = vpop.eup %883  ;;  %v485_v57 = vadd.f32 1e-05, %v465_v51  ;;  %v492_v58 = vadd.f32 1e-05, %v472_v6 }
 0x215   :  { %v886_v59 = vpop.eup %885  ;;  %v573_v62 = vadd.f32 %v1311_v50, %v547_v55  ;;  %v531_v25 = vmul.f32 %v884_v56, %v1183_v24  ;;  %v447_v63 = vpop.xlane.xlu1 %446 }
 0x216   :  { %v414_v0 = vpop.xlane.xlu0 %413  ;;  %v520_v1 = vmul.f32 %v886_v59, %v1194_v36  ;;  %895 = vrsqrt.f32 %v485_v57  ;;  %v475_v47 = vmul.f32 0.03125, %v447_v63 }
 0x217   :  { %v464_v5 = vmul.f32 0.03125, %v414_v0  ;;  %v613_v8 = vmul.f32 0.044715, %v573_v62  ;;  %v557_v9 = vmul.f32 %v1305_v42, %v531_v25  ;;  %897 = vrsqrt.f32 %v492_v58 }
 0x218   :  { %v888_v14 = vpop.eup %887  ;;  %v546_v15 = vmul.f32 %v1305_v42, %v520_v1  ;;  %v495_v12 = vadd.f32 1e-05, %v475_v47  ;;  %v1331_v41 = vmul.f32 0.5, %v573_v62 }
 0x219   :  { %v484_v13 = vadd.f32 1e-05, %v464_v5  ;;  %v890_v16 = vpop.eup %889  ;;  %v633_v17 = vmul.f32 %v613_v8, %v573_v62  ;;  %v583_v24 = vadd.f32 %v1311_v50, %v557_v9  ;;  %v523_v18 = vmul.f32 %v888_v14, %v1191_v34  ;;  %v423_v27 = vpop.xlane.xlu1 %422 }
 0x21a   :  { %v572_v36 = vadd.f32 %v1311_v50, %v546_v15  ;;  %v530_v19 = vmul.f32 %v890_v16, %v1207_v30  ;;  %899 = vrsqrt.f32 %v495_v12  ;;  %v467_v55 = vmul.f32 0.03125, %v423_v27 }
 0x21b   :  { %v653_v20 = vmul.f32 %v633_v17, %v573_v62  ;;  %v623_v21 = vmul.f32 0.044715, %v583_v24  ;;  %v549_v22 = vmul.f32 %v1305_v42, %v523_v18  ;;  %901 = vrsqrt.f32 %v484_v13 }
 0x21c   :  { %v892_v23 = vpop.eup %891  ;;  %v612_v28 = vmul.f32 0.044715, %v572_v36  ;;  %v556_v29 = vmul.f32 %v1305_v42, %v530_v19  ;;  %v1347_v9 = vmul.f32 0.5, %v583_v24  ;;  %v1351_v13 = vmul.f32 0.5, %v572_v36 }
 0x21d   :  { %v894_v60 = vpop.eup %893  ;;  %v673_v32 = vadd.f32 %v653_v20, %v573_v62  ;;  %v643_v33 = vmul.f32 %v623_v21, %v583_v24  ;;  %v575_v38 = vadd.f32 %v1311_v50, %v549_v22  ;;  %v533_v34 = vmul.f32 %v892_v23, %v1204_v44  ;;  %v1335_v44 = vpop.xlane.xlu0 %443 }
 0x21e   :  { %v632_v26 = vmul.f32 %v612_v28, %v572_v36  ;;  %v1328_v30 = vadd.f32 %v1311_v50, %v556_v29  ;;  %v522_v40 = vmul.f32 %v894_v60, %v1215_v37  ;;  %v453_v27 = vpop.xlane.xlu1 %452 }
 0x21f   :  { %v693_v43 = vmul.f32 0.7978846, %v673_v32  ;;  %v663_v35 = vmul.f32 %v643_v33, %v583_v24  ;;  %v615_v45 = vmul.f32 0.044715, %v575_v38  ;;  %v559_v6 = vmul.f32 %v1305_v42, %v533_v34 }
 0x220   :  { %v896_v46 = vpop.eup %895  ;;  %v652_v49 = vmul.f32 %v632_v26, %v572_v36  ;;  %v622_v51 = vmul.f32 0.044715, %v1328_v30  ;;  %v548_v37 = vmul.f32 %v1305_v42, %v522_v40  ;;  %v487_v40 = vadd.f32 1e-05, %v467_v55 }
 0x221   :  { %v898_v56 = vpop.eup %897  ;;  %903 = vtanh.f32 %v693_v43  ;;  %v683_v57 = vadd.f32 %v663_v35, %v583_v24  ;;  %v635_v58 = vmul.f32 %v615_v45, %v575_v38  ;;  %v1340_v25 = vadd.f32 %v1311_v50, %v559_v6  ;;  %v1357_v19 = vpop.xlane.xlu0 %419 }
 0x222   :  { %v672_v59 = vadd.f32 %v652_v49, %v572_v36  ;;  %v642_v62 = vmul.f32 %v622_v51, %v1328_v30  ;;  %v525_v63 = vmul.f32 %v896_v46, %v1228_v48  ;;  %v1344_v47 = vadd.f32 %v1311_v50, %v548_v37 }
 0x223   :  { %v703_v0 = vmul.f32 0.7978846, %v683_v57  ;;  %v655_v1 = vmul.f32 %v635_v58, %v575_v38  ;;  %v532_v5 = vmul.f32 %v898_v56, %v1218_v39  ;;  %v625_v12 = vmul.f32 0.044715, %v1340_v25 }
 0x224   :  { %v900_v8 = vpop.eup %899  ;;  %v692_v14 = vmul.f32 0.7978846, %v672_v59  ;;  %v662_v15 = vmul.f32 %v642_v62, %v1328_v30  ;;  %v614_v48 = vmul.f32 0.044715, %v1344_v47  ;;  %v551_v24 = vmul.f32 %v1305_v42, %v525_v63 }
 0x225   :  { %905 = vtanh.f32 %v703_v0  ;;  %v675_v16 = vadd.f32 %v655_v1, %v575_v38  ;;  %v902_v17 = vpop.eup %901  ;;  %v645_v39 = vmul.f32 %v625_v12, %v1340_v25  ;;  %v558_v22 = vmul.f32 %v1305_v42, %v532_v5  ;;  %v450_v57 = vpop.xlane.xlu0 %449 }
 0x226   :  { %907 = vtanh.f32 %v692_v14  ;;  %v682_v18 = vadd.f32 %v662_v15, %v1328_v30  ;;  %v634_v21 = vmul.f32 %v614_v48, %v1344_v47  ;;  %v535_v36 = vmul.f32 %v900_v8, %v1239_v52  ;;  %v429_v8 = vpop.xlane.xlu1 %428 }
 0x227   :  { %v695_v20 = vmul.f32 0.7978846, %v675_v16  ;;  %v665_v28 = vmul.f32 %v645_v39, %v1340_v25  ;;  %v1364_v29 = vadd.f32 %v1311_v50, %v551_v24  ;;  %v524_v60 = vmul.f32 %v902_v17, %v1231_v4 }
 0x228   :  { %v702_v23 = vmul.f32 0.7978846, %v682_v18  ;;  %v654_v32 = vmul.f32 %v634_v21, %v1344_v47  ;;  %v1369_v33 = vadd.f32 %v1311_v50, %v558_v22  ;;  %v561_v34 = vmul.f32 %v1305_v42, %v535_v36 }
 0x229   :  { %909 = vtanh.f32 %v695_v20  ;;  %v685_v52 = vadd.f32 %v665_v28, %v1340_v25  ;;  %v617_v26 = vmul.f32 0.044715, %v1364_v29  ;;  %v595_v35 = vmul.f32 0.5, %v575_v38  ;;  %v426_v21 = vpop.xlane.xlu0 %425 }
 0x22a   :  { %911 = vtanh.f32 %v702_v23  ;;  %v674_v45 = vadd.f32 %v654_v32, %v1344_v47  ;;  %v624_v4 = vmul.f32 0.044715, %v1369_v33  ;;  %v1377_v46 = vadd.f32 %v1311_v50, %v561_v34 }
 0x22b   :  { %v904_v43 = vpop.eup %903  ;;  %v705_v51 = vmul.f32 0.7978846, %v685_v52  ;;  %v637_v6 = vmul.f32 %v617_v26, %v1364_v29  ;;  %v550_v56 = vmul.f32 %v1305_v42, %v524_v60  ;;  %v602_v58 = vmul.f32 0.5, %v1328_v30  ;;  %v459_v26 = vpop.xlane.xlu1 %458 }
 0x22c   :  { %v733_v49 = vadd.f32 1.0, %v904_v43  ;;  %v694_v37 = vmul.f32 0.7978846, %v674_v45  ;;  %v644_v55 = vmul.f32 %v624_v4, %v1369_v33  ;;  %v627_v38 = vmul.f32 0.044715, %v1377_v46 }
 0x22d   :  { %913 = vtanh.f32 %v705_v51  ;;  %v657_v62 = vmul.f32 %v637_v6, %v1364_v29  ;;  %v1387_v63 = vadd.f32 %v1311_v50, %v550_v56  ;;  %v474_v30 = vmul.f32 0.03125, %v1335_v44 }
 0x22e   :  { %v753_v59 = vmul.f32 %v733_v49, %v1331_v41  ;;  %915 = vtanh.f32 %v694_v37  ;;  %v664_v1 = vmul.f32 %v644_v55, %v1369_v33  ;;  %v647_v5 = vmul.f32 %v627_v38, %v1377_v46  ;;  %v456_v55 = vpop.xlane.xlu0 %455 }
 0x22f   :  { %v906_v0 = vpop.eup %905  ;;  %v605_v15 = vmul.f32 0.5, %v1340_v25  ;;  %v677_v12 = vadd.f32 %v657_v62, %v1364_v29  ;;  %v616_v16 = vmul.f32 0.044715, %v1387_v63  ;;  %917 = vrsqrt.f32 %v487_v40 }
 0x230   :  { %v908_v14 = vpop.eup %907  ;;  %773 = vst.msk [vmem:[%s1570_s5 + $0x8] sm:$0xff] %vm277_vm1, %v753_v59  ;;  %v743_v41 = vadd.f32 1.0, %v906_v0  ;;  %v684_v17 = vadd.f32 %v664_v1, %v1369_v33  ;;  %v667_v18 = vmul.f32 %v647_v5, %v1377_v46  ;;  %v494_v20 = vadd.f32 1e-05, %v474_v30 }
 0x231   :  { %v732_v48 = vadd.f32 1.0, %v908_v14  ;;  %v697_v39 = vmul.f32 0.7978846, %v677_v12  ;;  %v636_v24 = vmul.f32 %v616_v16, %v1387_v63  ;;  %v477_v28 = vmul.f32 0.03125, %v453_v27 }
 0x232   :  { %v763_v44 = vmul.f32 %v743_v41, %v1347_v9  ;;  %v704_v36 = vmul.f32 0.7978846, %v684_v17  ;;  %v687_v23 = vadd.f32 %v667_v18, %v1377_v46  ;;  %v466_v34 = vmul.f32 0.03125, %v1357_v19 }
 0x233   :  { %v910_v22 = vpop.eup %909  ;;  %v752_v25 = vmul.f32 %v732_v48, %v1351_v13  ;;  %919 = vtanh.f32 %v697_v39  ;;  %v656_v9 = vmul.f32 %v636_v24, %v1387_v63  ;;  %v497_v52 = vadd.f32 1e-05, %v477_v28 }
 0x234   :  { %v912_v60 = vpop.eup %911  ;;  %783 = vst.msk [vmem:[%s1570_s5 + $0x58] sm:$0xff] %vm277_vm1, %v763_v44  ;;  %v735_v32 = vadd.f32 1.0, %v910_v22  ;;  %921 = vtanh.f32 %v704_v36  ;;  %v707_v27 = vmul.f32 0.7978846, %v687_v23  ;;  %v486_v45 = vadd.f32 1e-05, %v466_v34 }
 0x235   :  { %772 = vst.msk [vmem:[%s1570_s5] sm:$0xff] %vm277_vm1, %v752_v25  ;;  %v742_v13 = vadd.f32 1.0, %v912_v60  ;;  %v676_v43 = vadd.f32 %v656_v9, %v1387_v63  ;;  %923 = vrsqrt.f32 %v494_v20  ;;  %v469_v49 = vmul.f32 0.03125, %v429_v8 }
 0x236   :  { %v755_v40 = vmul.f32 %v735_v32, %v595_v35  ;;  %925 = vtanh.f32 %v707_v27  ;;  %v476_v51 = vmul.f32 0.03125, %v450_v57  ;;  %v479_v56 = vmul.f32 0.03125, %v459_v26 }
 0x237   :  { %v762_v4 = vmul.f32 %v742_v13, %v602_v58  ;;  %v914_v19 = vpop.eup %913  ;;  %v696_v6 = vmul.f32 0.7978846, %v676_v43  ;;  %927 = vrsqrt.f32 %v497_v52  ;;  %v468_v37 = vmul.f32 0.03125, %v426_v21 }
 0x238   :  { %775 = vst.msk [vmem:[%s1570_s5 + $0x18] sm:$0xff] %vm277_vm1, %v755_v40  ;;  %v916_v35 = vpop.eup %915  ;;  %v745_v58 = vadd.f32 1.0, %v914_v19  ;;  %929 = vrsqrt.f32 %v486_v45  ;;  %v489_v57 = vadd.f32 1e-05, %v469_v49  ;;  %v496_v38 = vadd.f32 1e-05, %v476_v51 }
 0x239   :  { %782 = vst.msk [vmem:[%s1570_s5 + $0x50] sm:$0xff] %vm277_vm1, %v762_v4  ;;  %v594_v59 = vmul.f32 0.5, %v1344_v47  ;;  %v734_v62 = vadd.f32 1.0, %v916_v35  ;;  %931 = vtanh.f32 %v696_v6  ;;  %v499_v0 = vadd.f32 1e-05, %v479_v56  ;;  %v918_v1 = vpop.eup %917 }
 0x23a   :  { %v765_v5 = vmul.f32 %v745_v58, %v605_v15  ;;  %933 = vrsqrt.f32 %v489_v57  ;;  %v478_v30 = vmul.f32 0.03125, %v456_v55  ;;  %v527_v14 = vmul.f32 %v918_v1, %v1252_v61 }
 0x23b   :  { %v754_v8 = vmul.f32 %v734_v62, %v594_v59  ;;  %935 = vrsqrt.f32 %v496_v38  ;;  %v488_v41 = vadd.f32 1e-05, %v468_v37  ;;  %v597_v61 = vmul.f32 0.5, %v1364_v29 }
 0x23c   :  { %785 = vst.msk [vmem:[%s1570_s5 + $0x68] sm:$0xff] %vm277_vm1, %v765_v5  ;;  %937 = vrsqrt.f32 %v499_v0  ;;  %v498_v12 = vadd.f32 1e-05, %v478_v30  ;;  %v553_v15 = vmul.f32 %v1305_v42, %v527_v14  ;;  %v604_v18 = vmul.f32 0.5, %v1369_v33 }
 0x23d   :  { %v920_v47 = vpop.eup %919  ;;  %774 = vst.msk [vmem:[%s1570_s5 + $0x10] sm:$0xff] %vm277_vm1, %v754_v8  ;;  %939 = vrsqrt.f32 %v488_v41  ;;  %v607_v36 = vmul.f32 0.5, %v1377_v46  ;;  %v596_v13 = vmul.f32 0.5, %v1387_v63 }
 0x23e   :  { %v922_v16 = vpop.eup %921  ;;  %v737_v48 = vadd.f32 1.0, %v920_v47  ;;  %v1438_v39 = vadd.f32 %v1311_v50, %v553_v15  ;;  %941 = vrsqrt.f32 %v498_v12 }
 0x23f   :  { %v924_v17 = vpop.eup %923  ;;  %v744_v44 = vadd.f32 1.0, %v922_v16 }
 0x240   :  { %v926_v24 = vpop.eup %925  ;;  %v757_v20 = vmul.f32 %v737_v48, %v597_v61  ;;  %v534_v21 = vmul.f32 %v924_v17, %v1242_v53  ;;  %v619_v29 = vmul.f32 0.044715, %v1438_v39 }
 0x241   :  { %v928_v22 = vpop.eup %927  ;;  %v764_v25 = vmul.f32 %v744_v44, %v604_v18  ;;  %v747_v23 = vadd.f32 1.0, %v926_v24 }
 0x242   :  { %v930_v28 = vpop.eup %929  ;;  %777 = vst.msk [vmem:[%s1570_s5 + $0x28] sm:$0xff] %vm277_vm1, %v757_v20  ;;  %v560_v33 = vmul.f32 %v1305_v42, %v534_v21  ;;  %v537_v60 = vmul.f32 %v928_v22, %v1263_v2  ;;  %v639_v46 = vmul.f32 %v619_v29, %v1438_v39 }
 0x243   :  { %v932_v32 = vpop.eup %931  ;;  %784 = vst.msk [vmem:[%s1570_s5 + $0x60] sm:$0xff] %vm277_vm1, %v764_v25  ;;  %v767_v53 = vmul.f32 %v747_v23, %v607_v36  ;;  %v526_v9 = vmul.f32 %v930_v28, %v1255_v31 }
 0x244   :  { %v934_v34 = vpop.eup %933  ;;  %v736_v27 = vadd.f32 1.0, %v932_v32  ;;  %v1457_v52 = vadd.f32 %v1311_v50, %v560_v33  ;;  %v563_v2 = vmul.f32 %v1305_v42, %v537_v60  ;;  %v659_v40 = vmul.f32 %v639_v46, %v1438_v39 }
 0x245   :  { %v936_v26 = vpop.eup %935  ;;  %787 = vst.msk [vmem:[%s1570_s5 + $0x78] sm:$0xff] %vm277_vm1, %v767_v53  ;;  %v552_v43 = vmul.f32 %v1305_v42, %v526_v9  ;;  %v529_v31 = vmul.f32 %v934_v34, %v1276_v7 }
 0x246   :  { %v938_v45 = vpop.eup %937  ;;  %v756_v63 = vmul.f32 %v736_v27, %v596_v13  ;;  %v626_v4 = vmul.f32 0.044715, %v1457_v52  ;;  %v1469_v49 = vadd.f32 %v1311_v50, %v563_v2  ;;  %v679_v51 = vadd.f32 %v659_v40, %v1438_v39 }
 0x247   :  { %v1473_v19 = vadd.f32 %v1311_v50, %v552_v43  ;;  %v555_v6 = vmul.f32 %v1305_v42, %v529_v31  ;;  %v536_v56 = vmul.f32 %v936_v26, %v1266_v3  ;;  %v539_v55 = vmul.f32 %v938_v45, %v1287_v10  ;;  %v940_v35 = vpop.eup %939 }
 0x248   :  { %776 = vst.msk [vmem:[%s1570_s5 + $0x20] sm:$0xff] %vm277_vm1, %v756_v63  ;;  %v646_v7 = vmul.f32 %v626_v4, %v1457_v52  ;;  %v629_v37 = vmul.f32 0.044715, %v1469_v49  ;;  %v699_v58 = vmul.f32 0.7978846, %v679_v51  ;;  %v942_v59 = vpop.eup %941  ;;  %v528_v15 = vmul.f32 %v940_v35, %v1279_v54 }
 0x249   :  { %v618_v57 = vmul.f32 0.044715, %v1473_v19  ;;  %v1486_v38 = vadd.f32 %v1311_v50, %v555_v6  ;;  %v562_v0 = vmul.f32 %v1305_v42, %v536_v56  ;;  %v565_v1 = vmul.f32 %v1305_v42, %v539_v55 }
 0x24a   :  { %v666_v3 = vmul.f32 %v646_v7, %v1457_v52  ;;  %v649_v62 = vmul.f32 %v629_v37, %v1469_v49  ;;  %943 = vtanh.f32 %v699_v58  ;;  %v538_v16 = vmul.f32 %v942_v59, %v1290_v11 }
 0x24b   :  { %v638_v5 = vmul.f32 %v618_v57, %v1473_v19  ;;  %v621_v10 = vmul.f32 0.044715, %v1486_v38  ;;  %v1497_v14 = vadd.f32 %v1311_v50, %v562_v0  ;;  %v1500_v41 = vadd.f32 %v1311_v50, %v565_v1 }
 0x24c   :  { %v686_v30 = vadd.f32 %v666_v3, %v1457_v52  ;;  %v669_v8 = vmul.f32 %v649_v62, %v1469_v49  ;;  %v554_v22 = vmul.f32 %v1305_v42, %v528_v15  ;;  %v564_v36 = vmul.f32 %v1305_v42, %v538_v16 }
 0x24d   :  { %v658_v12 = vmul.f32 %v638_v5, %v1473_v19  ;;  %v641_v47 = vmul.f32 %v621_v10, %v1486_v38  ;;  %v628_v17 = vmul.f32 0.044715, %v1497_v14  ;;  %v631_v24 = vmul.f32 0.044715, %v1500_v41 }
 0x24e   :  { %v706_v61 = vmul.f32 0.7978846, %v686_v30  ;;  %v689_v48 = vadd.f32 %v669_v8, %v1469_v49  ;;  %v580_v29 = vadd.f32 %v1311_v50, %v554_v22  ;;  %v590_v60 = vadd.f32 %v1311_v50, %v564_v36 }
 0x24f   :  { %v678_v18 = vadd.f32 %v658_v12, %v1473_v19  ;;  %v661_v44 = vmul.f32 %v641_v47, %v1486_v38  ;;  %v648_v21 = vmul.f32 %v628_v17, %v1497_v14  ;;  %v651_v25 = vmul.f32 %v631_v24, %v1500_v41 }
 0x250   :  { %945 = vtanh.f32 %v706_v61  ;;  %v709_v20 = vmul.f32 0.7978846, %v689_v48  ;;  %v620_v53 = vmul.f32 0.044715, %v580_v29  ;;  %v630_v34 = vmul.f32 0.044715, %v590_v60 }
 0x251   :  { %v698_v54 = vmul.f32 0.7978846, %v678_v18  ;;  %v681_v11 = vadd.f32 %v661_v44, %v1486_v38  ;;  %v668_v23 = vmul.f32 %v648_v21, %v1497_v14  ;;  %v671_v33 = vmul.f32 %v651_v25, %v1500_v41 }
 0x252   :  { %947 = vtanh.f32 %v709_v20  ;;  %v599_v42 = vmul.f32 0.5, %v1438_v39  ;;  %v640_v2 = vmul.f32 %v620_v53, %v580_v29  ;;  %v650_v40 = vmul.f32 %v630_v34, %v590_v60 }
 0x253   :  { %949 = vtanh.f32 %v698_v54  ;;  %v701_v28 = vmul.f32 0.7978846, %v681_v11  ;;  %v688_v32 = vadd.f32 %v668_v23, %v1497_v14  ;;  %v691_v9 = vadd.f32 %v671_v33, %v1500_v41 }
 0x254   :  { %v944_v46 = vpop.eup %943  ;;  %v660_v31 = vmul.f32 %v640_v2, %v580_v29  ;;  %v670_v50 = vmul.f32 %v650_v40, %v590_v60  ;;  %v606_v4 = vmul.f32 0.5, %v1457_v52  ;;  %v609_v55 = vmul.f32 0.5, %v1469_v49 }
 0x255   :  { %951 = vtanh.f32 %v701_v28  ;;  %v739_v13 = vadd.f32 1.0, %v944_v46  ;;  %v708_v27 = vmul.f32 0.7978846, %v688_v32  ;;  %v711_v26 = vmul.f32 0.7978846, %v691_v9 }
 0x256   :  { %v680_v63 = vadd.f32 %v660_v31, %v580_v29  ;;  %v690_v51 = vadd.f32 %v670_v50, %v590_v60  ;;  %v598_v57 = vmul.f32 0.5, %v1473_v19  ;;  %v601_v0 = vmul.f32 0.5, %v1486_v38 }
 0x257   :  { %v759_v43 = vmul.f32 %v739_v13, %v599_v42  ;;  %953 = vtanh.f32 %v708_v27  ;;  %v608_v10 = vmul.f32 0.5, %v1497_v14  ;;  %v611_v38 = vmul.f32 0.5, %v1500_v41 }
 0x258   :  { %955 = vtanh.f32 %v711_v26  ;;  %v700_v56 = vmul.f32 0.7978846, %v680_v63  ;;  %v710_v58 = vmul.f32 0.7978846, %v690_v51  ;;  %v600_v16 = vmul.f32 0.5, %v580_v29 }
 0x259   :  { %779 = vst.msk [vmem:[%s1570_s5 + $0x38] sm:$0xff] %vm277_vm1, %v759_v43  ;;  %v610_v48 = vmul.f32 0.5, %v590_v60 }
 0x25a   :  { %v946_v45 = vpop.eup %945  ;;  %957 = vtanh.f32 %v700_v56 }
 0x25b   :  { %v746_v39 = vadd.f32 1.0, %v946_v45  ;;  %959 = vtanh.f32 %v710_v58 }
 0x25c   :  { %v948_v6 = vpop.eup %947 }
 0x25d   :  { %v950_v7 = vpop.eup %949  ;;  %v766_v37 = vmul.f32 %v746_v39, %v606_v4  ;;  %v749_v35 = vadd.f32 1.0, %v948_v6 }
 0x25e   :  { %v738_v59 = vadd.f32 1.0, %v950_v7 }
 0x25f   :  { %v952_v3 = vpop.eup %951  ;;  %786 = vst.msk [vmem:[%s1570_s5 + $0x70] sm:$0xff] %vm277_vm1, %v766_v37  ;;  %v769_v52 = vmul.f32 %v749_v35, %v609_v55 }
 0x260   :  { %v758_v62 = vmul.f32 %v738_v59, %v598_v57  ;;  %v741_v1 = vadd.f32 1.0, %v952_v3 }
 0x261   :  { %789 = vst.msk [vmem:[%s1570_s5 + $0x88] sm:$0xff] %vm277_vm1, %v769_v52  ;;  %v954_v49 = vpop.eup %953 }
 0x262   :  { %778 = vst.msk [vmem:[%s1570_s5 + $0x30] sm:$0xff] %vm277_vm1, %v758_v62  ;;  %v761_v19 = vmul.f32 %v741_v1, %v601_v0  ;;  %v956_v5 = vpop.eup %955  ;;  %v748_v30 = vadd.f32 1.0, %v954_v49 }
 0x263   :  { %v751_v8 = vadd.f32 1.0, %v956_v5 }
 0x264   :  { %781 = vst.msk [vmem:[%s1570_s5 + $0x48] sm:$0xff] %vm277_vm1, %v761_v19  ;;  %v768_v12 = vmul.f32 %v748_v30, %v608_v10  ;;  %v958_v15 = vpop.eup %957 }
 0x265   :  { %v771_v47 = vmul.f32 %v751_v8, %v611_v38  ;;  %v960_v14 = vpop.eup %959  ;;  %v740_v61 = vadd.f32 1.0, %v958_v15 }
 0x266   :  { %788 = vst.msk [vmem:[%s1570_s5 + $0x80] sm:$0xff] %vm277_vm1, %v768_v12  ;;  %v750_v17 = vadd.f32 1.0, %v960_v14 }
 0x267   :  { %791 = vst.msk [vmem:[%s1570_s5 + $0x98] sm:$0x3f] %vm335_vm2, %v771_v47  ;;  %v760_v41 = vmul.f32 %v740_v61, %v600_v16 }
 0x268   :  { %v770_v18 = vmul.f32 %v750_v17, %v610_v48 }
 0x269   :  { %780 = vst.msk [vmem:[%s1570_s5 + $0x40] sm:$0xff] %vm277_vm1, %v760_v41 }
 0x26a   :  { %790 = vst.msk [vmem:[%s1570_s5 + $0x90] sm:$0xff] %vm277_vm1, %v770_v18 }

// kernel: fwd.10
= control target key start
LH: loop header
LB: loop body
LE: loop exit
PB: predicated region body
PF: predicated region fallthrough
CT: control target
= control target key end

     0   :  { %vm49_vm0 = vcmask 785408   ;;  %vm197_vm1 = vcmask 261120   ;;  %vm225_vm2 = vcmask 259072   ;;  %s935_s1 = inlined_call_operand.vmem [shape: f32[96,32], index: 1, kind: input, shape index: {}]   ;;  %s936_s0 = inlined_call_operand.vmem [shape: f32[78,96], index: 0, kind: input, shape index: {}]   ;;  %s937_s2 = inlined_call_operand.vmem [shape: f32[1,32], index: 2, kind: input, shape index: {}, may-alias: {2,4}]   ;;  %s938_s3 = inlined_call_operand.vmem [shape: f32[1,32], index: 3, kind: input, shape index: {}]   ;;  %s939_s4 = inlined_call_operand.vmem [shape: f32[1,32], index: 4, kind: input, shape index: {}, may-alias: {2,4}]   ;;  %s940_s5 = inlined_call_operand.vmem [shape: f32[78,32], index: 5, kind: output, shape index: {}]  }
   0x1   :  { %v30_v0 = vld [vmem:[%s935_s1] sm:$0xff]  ;;  %v31_v1 = vld [vmem:[%s935_s1 + $0x8] sm:$0xff]  ;;  %v32_v2 = vld [vmem:[%s935_s1 + $0x10] sm:$0xff] }
   0x2   :  { %v540_v3 = vpack.c.bf16 %v31_v1, %v30_v0  ;;  %v33_v4 = vld [vmem:[%s935_s1 + $0x18] sm:$0xff]  ;;  %v34_v6 = vld [vmem:[%s935_s1 + $0x20] sm:$0xff]  ;;  %v35_v7 = vld [vmem:[%s935_s1 + $0x28] sm:$0xff] }
   0x3   :  { %v544_v5 = vpack.c.bf16 %v33_v4, %v32_v2  ;;  %v20_v8 = vld [vmem:[%s936_s0] sm:$0xff]  ;;  %v26_v9 = vld [vmem:[%s936_s0 + $0x30] sm:$0xff]  ;;  %v548_v10 = vpack.c.bf16 %v35_v7, %v34_v6  ;;  %v37_v12 = vld [vmem:[%s935_s1 + $0x38] sm:$0xff] }
   0x4   :  { %541 = vmatprep.subr.bf16.mxu0 %v540_v3  ;;  %564 = vmatprep.subr.bf16.mxu1 %v540_v3  ;;  %v36_v11 = vld [vmem:[%s935_s1 + $0x30] sm:$0xff]  ;;  %v38_v14 = vld [vmem:[%s935_s1 + $0x40] sm:$0xff]  ;;  %v39_v15 = vld [vmem:[%s935_s1 + $0x48] sm:$0xff] }
   0x5   :  { %543 = vmatpush3.bf16.msra.mxu0 %v540_v3  ;;  %570 = vmatpush3.bf16.msra.mxu1 %v540_v3  ;;  %v552_v13 = vpack.c.bf16 %v37_v12, %v36_v11  ;;  %v556_v16 = vpack.c.bf16 %v39_v15, %v38_v14  ;;  %v40_v17 = vld [vmem:[%s935_s1 + $0x50] sm:$0xff]  ;;  %v41_v18 = vld [vmem:[%s935_s1 + $0x58] sm:$0xff]  ;;  %v21_v20 = vld [vmem:[%s936_s0 + $0x8] sm:$0xff] }
   0x6   :  { %545 = vmatprep.subr.bf16.mxu0 %v544_v5  ;;  %565 = vmatprep.subr.bf16.mxu1 %v544_v5  ;;  %v560_v19 = vpack.c.bf16 %v41_v18, %v40_v17  ;;  %v27_v21 = vld [vmem:[%s936_s0 + $0x38] sm:$0xff]  ;;  %v22_v22 = vld [vmem:[%s936_s0 + $0x10] sm:$0xff]  ;;  %v28_v23 = vld [vmem:[%s936_s0 + $0x40] sm:$0xff] }
   0x7   :  { %525 = vmatprep.mubr.msk.f32.mxu0 %vm49_vm0, %v20_v8  ;;  %534 = vmatprep.mubr.msk.f32.mxu1 %vm49_vm0, %v26_v9  ;;  %v23_v24 = vld [vmem:[%s936_s0 + $0x18] sm:$0xff]  ;;  %v29_v25 = vld [vmem:[%s936_s0 + $0x48] sm:$0x3f]  ;;  %v24_v26 = vld [vmem:[%s936_s0 + $0x20] sm:$0xff] }
   0x8   :  { %v25_v27 = vld [vmem:[%s936_s0 + $0x28] sm:$0xff]  ;;  %v466_v28 = vld [vmem:[%s937_s2] ss:$0 sm:$0xff] }
   0x9   :  { %547 = vmatpush3.bf16.msra.mxu0 %v544_v5  ;;  %571 = vmatpush3.bf16.msra.mxu1 %v544_v5 }
   0xa   :  { %549 = vmatprep.subr.bf16.mxu0 %v548_v10  ;;  %566 = vmatprep.subr.bf16.mxu1 %v548_v10 }
   0xd   :  { %551 = vmatpush3.bf16.msra.mxu0 %v548_v10  ;;  %572 = vmatpush3.bf16.msra.mxu1 %v548_v10 }
   0xe   :  { %553 = vmatprep.subr.bf16.mxu0 %v552_v13  ;;  %567 = vmatprep.subr.bf16.mxu1 %v552_v13 }
  0x11   :  { %555 = vmatpush3.bf16.msra.mxu0 %v552_v13  ;;  %573 = vmatpush3.bf16.msra.mxu1 %v552_v13 }
  0x12   :  { %557 = vmatprep.subr.bf16.mxu0 %v556_v16  ;;  %568 = vmatprep.subr.bf16.mxu1 %v556_v16 }
  0x15   :  { %559 = vmatpush3.bf16.msra.mxu0 %v556_v16  ;;  %574 = vmatpush3.bf16.msra.mxu1 %v556_v16 }
  0x16   :  { %561 = vmatprep.subr.bf16.mxu0 %v560_v19  ;;  %569 = vmatprep.subr.bf16.mxu1 %v560_v19 }
  0x19   :  { %563 = vmatpush3.bf16.msra.mxu0 %v560_v19  ;;  %575 = vmatpush3.bf16.msra.mxu1 %v560_v19 }
  0x1c   :  { %526 = vmatmul.mubr.msk.f32.vlgmr.msra.gmra.mrb[0].mxu0 %vm49_vm0, %v21_v20  ;;  %535 = vmatmul.mubr.msk.f32.vlgmr.msra.gmra.mrb[0].mxu1 %vm49_vm0, %v27_v21 }
  0x1d   :  { %528 = vmatprep.mubr.msk.f32.mxu0 %vm49_vm0, %v22_v22  ;;  %537 = vmatprep.mubr.msk.f32.mxu1 %vm49_vm0, %v28_v23 }
  0x20   :  { %529 = vmatmul.mubr.msk.f32.gmra.mrb[2].mxu0 %vm49_vm0, %v23_v24  ;;  %538 = vmatmul.mubr.msk.f32.gmra.mrb[2].mxu1 %vm49_vm0, %v29_v25 }
  0x21   :  { %531 = vmatprep.mubr.msk.f32.mxu0 %vm49_vm0, %v24_v26 }
  0x24   :  { %532 = vmatmul.mubr.msk.f32.gmra.mrb[4].mxu0 %vm49_vm0, %v25_v27 }
  0xef   :  { %v527_v29 = vpop.f32.mrb[0].mxu0  ;;  %v536_v30 = vpop.f32.mrb[0].mxu1 }
  0xf0   :  { %v152_v31 = vadd.f32 %v527_v29, %v466_v28  ;;  %v182_v32 = vadd.f32 %v536_v30, %v466_v28  ;;  %v146_v33 = vpop.f32.mrb[1].mxu0  ;;  %v176_v34 = vpop.f32.mrb[1].mxu1 }
  0xf1   :  { %v147_v35 = vadd.f32 %v466_v28, %v146_v33  ;;  %v177_v44 = vadd.f32 %v466_v28, %v176_v34 }
  0xf2   :  { %v219_v36 = vsel %vm197_vm1, %v182_v32, 0.0  ;;  %v201_v37 = vsel %vm197_vm1, %v152_v31, 0.0 }
  0xf3   :  { %220 = vadd.xlane.f32.xlu1 %v219_v36  ;;  %202 = vadd.xlane.f32.xlu0 %v201_v37  ;;  %v530_v38 = vpop.f32.mrb[2].mxu0  ;;  %v539_v39 = vpop.f32.mrb[2].mxu1  ;;  %v198_v46 = vsel %vm197_vm1, %v147_v35, 0.0  ;;  %v216_v52 = vsel %vm197_vm1, %v177_v44, 0.0 }
  0xf4   :  { %v162_v40 = vadd.f32 %v530_v38, %v466_v28  ;;  %v156_v41 = vpop.f32.mrb[3].mxu0  ;;  %v186_v42 = vpop.f32.mrb[3].mxu1  ;;  %v192_v53 = vadd.f32 %v539_v39, %v466_v28 }
  0xf5   :  { %v157_v43 = vadd.f32 %v466_v28, %v156_v41  ;;  %v187_v54 = vadd.f32 %v466_v28, %v186_v42 }
  0xf6   :  { %v207_v45 = vsel %vm197_vm1, %v162_v40, 0.0  ;;  %v226_v57 = vsel %vm225_vm2, %v192_v53, 0.0 }
  0xf7   :  { %208 = vadd.xlane.f32.xlu1 %v207_v45  ;;  %199 = vadd.xlane.f32.xlu0 %v198_v46  ;;  %v533_v47 = vpop.f32.mrb[4].mxu0  ;;  %v204_v50 = vsel %vm197_vm1, %v157_v43, 0.0  ;;  %v222_v58 = vsel %vm197_vm1, %v187_v54, 0.0 }
  0xf8   :  { %v172_v48 = vadd.f32 %v533_v47, %v466_v28  ;;  %v166_v49 = vpop.f32.mrb[5].mxu0 }
  0xf9   :  { %v167_v51 = vadd.f32 %v466_v28, %v166_v49 }
  0xfa   :  { %v213_v55 = vsel %vm197_vm1, %v172_v48, 0.0 }
  0xfb   :  { %205 = vadd.xlane.f32.xlu1 %v204_v50  ;;  %217 = vadd.xlane.f32.xlu0 %v216_v52  ;;  %v210_v56 = vsel %vm197_vm1, %v167_v51, 0.0 }
  0xff   :  { %214 = vadd.xlane.f32.xlu1 %v213_v55  ;;  %211 = vadd.xlane.f32.xlu0 %v210_v56 }
 0x103   :  { %227 = vadd.xlane.f32.xlu1 %v226_v57  ;;  %223 = vadd.xlane.f32.xlu0 %v222_v58 }
 0x180   :  { %v221_v59 = vpop.xlane.xlu1 %220  ;;  %v203_v60 = vpop.xlane.xlu0 %202 }
 0x181   :  { %v237_v61 = vmul.f32 0.03125, %v221_v59  ;;  %v231_v62 = vmul.f32 0.03125, %v203_v60 }
 0x183   :  { %v735_v63 = vsub.f32 %v182_v32, %v237_v61  ;;  %v737_v0 = vsub.f32 %v152_v31, %v231_v62 }
 0x184   :  { %v209_v1 = vpop.xlane.xlu1 %208  ;;  %v200_v2 = vpop.xlane.xlu0 %199 }
 0x185   :  { %v233_v3 = vmul.f32 0.03125, %v209_v1  ;;  %v230_v4 = vmul.f32 0.03125, %v200_v2  ;;  %v251_v5 = vmul.f32 %v737_v0, %v737_v0  ;;  %v257_v6 = vmul.f32 %v735_v63, %v735_v63 }
 0x187   :  { %v743_v7 = vsub.f32 %v162_v40, %v233_v3  ;;  %v745_v8 = vsub.f32 %v147_v35, %v230_v4  ;;  %v263_v9 = vsel %vm197_vm1, %v251_v5, 0.0  ;;  %v281_v15 = vsel %vm197_vm1, %v257_v6, 0.0  ;;  %v788_v3 = vld [vmem:[%s938_s3] ss:$0 sm:$0xff] }
 0x188   :  { %264 = vadd.xlane.f32.xlu1 %v263_v9  ;;  %v206_v10 = vpop.xlane.xlu1 %205  ;;  %v218_v11 = vpop.xlane.xlu0 %217 }
 0x189   :  { %v232_v12 = vmul.f32 0.03125, %v206_v10  ;;  %v236_v13 = vmul.f32 0.03125, %v218_v11  ;;  %v250_v14 = vmul.f32 %v745_v8, %v745_v8  ;;  %v253_v19 = vmul.f32 %v743_v7, %v743_v7  ;;  %v794_v11 = vld [vmem:[%s939_s4] ss:$0 sm:$0xff] }
 0x18b   :  { %v751_v16 = vsub.f32 %v157_v43, %v232_v12  ;;  %v753_v17 = vsub.f32 %v177_v44, %v236_v13  ;;  %v260_v18 = vsel %vm197_vm1, %v250_v14, 0.0  ;;  %v269_v28 = vsel %vm197_vm1, %v253_v19, 0.0 }
 0x18c   :  { %282 = vadd.xlane.f32.xlu1 %v281_v15  ;;  %v215_v20 = vpop.xlane.xlu1 %214  ;;  %261 = vadd.xlane.f32.xlu0 %v260_v18  ;;  %v212_v21 = vpop.xlane.xlu0 %211 }
 0x18d   :  { %v235_v22 = vmul.f32 0.03125, %v215_v20  ;;  %v234_v23 = vmul.f32 0.03125, %v212_v21  ;;  %v256_v24 = vmul.f32 %v753_v17, %v753_v17  ;;  %v252_v25 = vmul.f32 %v751_v16, %v751_v16 }
 0x18f   :  { %v762_v26 = vsub.f32 %v172_v48, %v235_v22  ;;  %v764_v27 = vsub.f32 %v167_v51, %v234_v23  ;;  %v278_v29 = vsel %vm197_vm1, %v256_v24, 0.0  ;;  %v266_v35 = vsel %vm197_vm1, %v252_v25, 0.0 }
 0x190   :  { %270 = vadd.xlane.f32.xlu1 %v269_v28  ;;  %v228_v30 = vpop.xlane.xlu1 %227  ;;  %279 = vadd.xlane.f32.xlu0 %v278_v29  ;;  %v224_v31 = vpop.xlane.xlu0 %223 }
 0x191   :  { %v239_v32 = vmul.f32 0.03125, %v228_v30  ;;  %v238_v33 = vmul.f32 0.03125, %v224_v31  ;;  %v255_v34 = vmul.f32 %v762_v26, %v762_v26  ;;  %v254_v39 = vmul.f32 %v764_v27, %v764_v27 }
 0x193   :  { %v771_v36 = vsub.f32 %v192_v53, %v239_v32  ;;  %v773_v37 = vsub.f32 %v187_v54, %v238_v33  ;;  %v275_v38 = vsel %vm197_vm1, %v255_v34, 0.0  ;;  %v272_v42 = vsel %vm197_vm1, %v254_v39, 0.0 }
 0x194   :  { %276 = vadd.xlane.f32.xlu1 %v275_v38  ;;  %267 = vadd.xlane.f32.xlu0 %v266_v35 }
 0x195   :  { %v259_v40 = vmul.f32 %v771_v36, %v771_v36  ;;  %v258_v43 = vmul.f32 %v773_v37, %v773_v37 }
 0x197   :  { %v287_v41 = vsel %vm225_vm2, %v259_v40, 0.0  ;;  %v284_v44 = vsel %vm197_vm1, %v258_v43, 0.0 }
 0x198   :  { %288 = vadd.xlane.f32.xlu1 %v287_v41  ;;  %273 = vadd.xlane.f32.xlu0 %v272_v42 }
 0x19c   :  { %285 = vadd.xlane.f32.xlu0 %v284_v44 }
 0x215   :  { %v265_v45 = vpop.xlane.xlu1 %264 }
 0x216   :  { %v291_v46 = vmul.f32 0.03125, %v265_v45 }
 0x218   :  { %v301_v47 = vadd.f32 1e-05, %v291_v46 }
 0x219   :  { %v283_v48 = vpop.xlane.xlu1 %282  ;;  %v262_v49 = vpop.xlane.xlu0 %261 }
 0x21a   :  { %576 = vrsqrt.f32 %v301_v47  ;;  %v297_v50 = vmul.f32 0.03125, %v283_v48  ;;  %v290_v51 = vmul.f32 0.03125, %v262_v49 }
 0x21c   :  { %v307_v52 = vadd.f32 1e-05, %v297_v50  ;;  %v300_v53 = vadd.f32 1e-05, %v290_v51 }
 0x21d   :  { %v271_v54 = vpop.xlane.xlu1 %270  ;;  %v280_v55 = vpop.xlane.xlu0 %279 }
 0x21e   :  { %578 = vrsqrt.f32 %v307_v52  ;;  %v293_v56 = vmul.f32 0.03125, %v271_v54  ;;  %v296_v57 = vmul.f32 0.03125, %v280_v55 }
 0x21f   :  { %580 = vrsqrt.f32 %v300_v53 }
 0x220   :  { %v303_v58 = vadd.f32 1e-05, %v293_v56  ;;  %v306_v59 = vadd.f32 1e-05, %v296_v57 }
 0x221   :  { %v277_v60 = vpop.xlane.xlu1 %276  ;;  %v268_v61 = vpop.xlane.xlu0 %267 }
 0x222   :  { %582 = vrsqrt.f32 %v303_v58  ;;  %v295_v62 = vmul.f32 0.03125, %v277_v60  ;;  %v292_v1 = vmul.f32 0.03125, %v268_v61 }
 0x223   :  { %584 = vrsqrt.f32 %v306_v59 }
 0x224   :  { %v577_v2 = vpop.eup %576  ;;  %v305_v4 = vadd.f32 1e-05, %v295_v62  ;;  %v302_v5 = vadd.f32 1e-05, %v292_v1 }
 0x225   :  { %v321_v6 = vmul.f32 %v577_v2, %v737_v0  ;;  %v289_v9 = vpop.xlane.xlu1 %288  ;;  %v274_v10 = vpop.xlane.xlu0 %273 }
 0x226   :  { %586 = vrsqrt.f32 %v305_v4  ;;  %v299_v12 = vmul.f32 0.03125, %v289_v9  ;;  %v294_v13 = vmul.f32 0.03125, %v274_v10 }
 0x227   :  { %v337_v14 = vmul.f32 %v788_v3, %v321_v6  ;;  %588 = vrsqrt.f32 %v302_v5 }
 0x228   :  { %v579_v15 = vpop.eup %578  ;;  %v309_v18 = vadd.f32 1e-05, %v299_v12  ;;  %v304_v19 = vadd.f32 1e-05, %v294_v13 }
 0x229   :  { %v581_v20 = vpop.eup %580  ;;  %v798_v21 = vadd.f32 %v794_v11, %v337_v14  ;;  %v327_v0 = vmul.f32 %v579_v15, %v735_v63  ;;  %v286_v22 = vpop.xlane.xlu0 %285 }
 0x22a   :  { %v320_v23 = vmul.f32 %v581_v20, %v745_v8  ;;  %590 = vrsqrt.f32 %v309_v18  ;;  %v298_v24 = vmul.f32 0.03125, %v286_v22 }
 0x22b   :  { %v373_v25 = vmul.f32 0.044715, %v798_v21  ;;  %v343_v28 = vmul.f32 %v788_v3, %v327_v0  ;;  %592 = vrsqrt.f32 %v304_v19 }
 0x22c   :  { %v583_v29 = vpop.eup %582  ;;  %v336_v30 = vmul.f32 %v788_v3, %v320_v23  ;;  %v308_v31 = vadd.f32 1e-05, %v298_v24 }
 0x22d   :  { %v585_v32 = vpop.eup %584  ;;  %v383_v33 = vmul.f32 %v373_v25, %v798_v21  ;;  %v807_v34 = vadd.f32 %v794_v11, %v343_v28  ;;  %v323_v63 = vmul.f32 %v583_v29, %v743_v7 }
 0x22e   :  { %v811_v8 = vadd.f32 %v794_v11, %v336_v30  ;;  %v326_v35 = vmul.f32 %v585_v32, %v753_v17  ;;  %594 = vrsqrt.f32 %v308_v31 }
 0x22f   :  { %v393_v38 = vmul.f32 %v383_v33, %v798_v21  ;;  %v379_v39 = vmul.f32 0.044715, %v807_v34  ;;  %v339_v40 = vmul.f32 %v788_v3, %v323_v63 }
 0x230   :  { %v587_v41 = vpop.eup %586  ;;  %v372_v42 = vmul.f32 0.044715, %v811_v8  ;;  %v342_v43 = vmul.f32 %v788_v3, %v326_v35  ;;  %v363_v35 = vmul.f32 0.5, %v798_v21 }
 0x231   :  { %v589_v44 = vpop.eup %588  ;;  %v403_v7 = vadd.f32 %v393_v38, %v798_v21  ;;  %v389_v45 = vmul.f32 %v379_v39, %v807_v34  ;;  %v822_v46 = vadd.f32 %v794_v11, %v339_v40  ;;  %v325_v17 = vmul.f32 %v587_v41, %v762_v26 }
 0x232   :  { %v382_v47 = vmul.f32 %v372_v42, %v811_v8  ;;  %v827_v48 = vadd.f32 %v794_v11, %v342_v43  ;;  %v322_v49 = vmul.f32 %v589_v44, %v751_v16 }
 0x233   :  { %v413_v50 = vmul.f32 0.7978846, %v403_v7  ;;  %v399_v51 = vmul.f32 %v389_v45, %v807_v34  ;;  %v375_v52 = vmul.f32 0.044715, %v822_v46  ;;  %v341_v56 = vmul.f32 %v788_v3, %v325_v17 }
 0x234   :  { %v591_v53 = vpop.eup %590  ;;  %v392_v54 = vmul.f32 %v382_v47, %v811_v8  ;;  %v378_v55 = vmul.f32 0.044715, %v827_v48  ;;  %v338_v16 = vmul.f32 %v788_v3, %v322_v49  ;;  %v369_v17 = vmul.f32 0.5, %v807_v34 }
 0x235   :  { %v593_v26 = vpop.eup %592  ;;  %596 = vtanh.f32 %v413_v50  ;;  %v409_v57 = vadd.f32 %v399_v51, %v807_v34  ;;  %v385_v58 = vmul.f32 %v375_v52, %v822_v46  ;;  %v841_v61 = vadd.f32 %v794_v11, %v341_v56 }
 0x236   :  { %v402_v59 = vadd.f32 %v392_v54, %v811_v8  ;;  %v388_v60 = vmul.f32 %v378_v55, %v827_v48  ;;  %v329_v62 = vmul.f32 %v591_v53, %v771_v36  ;;  %v846_v4 = vadd.f32 %v794_v11, %v338_v16 }
 0x237   :  { %v419_v1 = vmul.f32 0.7978846, %v409_v57  ;;  %v395_v2 = vmul.f32 %v385_v58, %v822_v46  ;;  %v324_v5 = vmul.f32 %v593_v26, %v764_v27  ;;  %v377_v12 = vmul.f32 0.044715, %v841_v61 }
 0x238   :  { %v595_v6 = vpop.eup %594  ;;  %v412_v9 = vmul.f32 0.7978846, %v402_v59  ;;  %v398_v10 = vmul.f32 %v388_v60, %v827_v48  ;;  %v374_v14 = vmul.f32 0.044715, %v846_v4  ;;  %v345_v18 = vmul.f32 %v788_v3, %v329_v62 }
 0x239   :  { %598 = vtanh.f32 %v419_v1  ;;  %v405_v13 = vadd.f32 %v395_v2, %v822_v46  ;;  %v387_v15 = vmul.f32 %v377_v12, %v841_v61  ;;  %v340_v20 = vmul.f32 %v788_v3, %v324_v5 }
 0x23a   :  { %600 = vtanh.f32 %v412_v9  ;;  %v408_v36 = vadd.f32 %v398_v10, %v827_v48  ;;  %v384_v27 = vmul.f32 %v374_v14, %v846_v4  ;;  %v328_v0 = vmul.f32 %v595_v6, %v773_v37 }
 0x23b   :  { %v415_v19 = vmul.f32 0.7978846, %v405_v13  ;;  %v397_v23 = vmul.f32 %v387_v15, %v841_v61  ;;  %v861_v24 = vadd.f32 %v794_v11, %v345_v18  ;;  %v865_v28 = vadd.f32 %v794_v11, %v340_v20 }
 0x23c   :  { %v418_v22 = vmul.f32 0.7978846, %v408_v36  ;;  %v394_v25 = vmul.f32 %v384_v27, %v846_v4  ;;  %v344_v29 = vmul.f32 %v788_v3, %v328_v0  ;;  %v362_v50 = vmul.f32 0.5, %v811_v8 }
 0x23d   :  { %602 = vtanh.f32 %v415_v19  ;;  %v407_v30 = vadd.f32 %v397_v23, %v841_v61  ;;  %v381_v31 = vmul.f32 0.044715, %v861_v24  ;;  %v376_v33 = vmul.f32 0.044715, %v865_v28 }
 0x23e   :  { %604 = vtanh.f32 %v418_v22  ;;  %v404_v32 = vadd.f32 %v394_v25, %v846_v4  ;;  %v873_v63 = vadd.f32 %v794_v11, %v344_v29  ;;  %v365_v34 = vmul.f32 0.5, %v822_v46 }
 0x23f   :  { %v597_v37 = vpop.eup %596  ;;  %v417_v39 = vmul.f32 0.7978846, %v407_v30  ;;  %v391_v40 = vmul.f32 %v381_v31, %v861_v24  ;;  %v386_v41 = vmul.f32 %v376_v33, %v865_v28  ;;  %v368_v59 = vmul.f32 0.5, %v827_v48 }
 0x240   :  { %v433_v38 = vadd.f32 1.0, %v597_v37  ;;  %v414_v3 = vmul.f32 0.7978846, %v404_v32  ;;  %v380_v42 = vmul.f32 0.044715, %v873_v63  ;;  %v367_v48 = vmul.f32 0.5, %v841_v61 }
 0x241   :  { %606 = vtanh.f32 %v417_v39  ;;  %v401_v44 = vmul.f32 %v391_v40, %v861_v24  ;;  %v396_v11 = vmul.f32 %v386_v41, %v865_v28  ;;  %v364_v9 = vmul.f32 0.5, %v846_v4 }
 0x242   :  { %v443_v43 = vmul.f32 %v433_v38, %v363_v35  ;;  %608 = vtanh.f32 %v414_v3  ;;  %v390_v45 = vmul.f32 %v380_v42, %v873_v63  ;;  %v371_v61 = vmul.f32 0.5, %v861_v24 }
 0x243   :  { %v599_v7 = vpop.eup %598  ;;  %v411_v49 = vadd.f32 %v401_v44, %v861_v24  ;;  %v406_v52 = vadd.f32 %v396_v11, %v865_v28  ;;  %v366_v4 = vmul.f32 0.5, %v865_v28  ;;  %v370_v0 = vmul.f32 0.5, %v873_v63 }
 0x244   :  { %v601_v21 = vpop.eup %600  ;;  %453 = vst.msk [vmem:[%s940_s5 + $0x8] sm:$0xff] %vm197_vm1, %v443_v43  ;;  %v439_v47 = vadd.f32 1.0, %v599_v7  ;;  %v400_v53 = vmul.f32 %v390_v45, %v873_v63 }
 0x245   :  { %v432_v51 = vadd.f32 1.0, %v601_v21  ;;  %v421_v55 = vmul.f32 0.7978846, %v411_v49  ;;  %v416_v57 = vmul.f32 0.7978846, %v406_v52 }
 0x246   :  { %v449_v54 = vmul.f32 %v439_v47, %v369_v17  ;;  %v410_v58 = vadd.f32 %v400_v53, %v873_v63 }
 0x247   :  { %v603_v56 = vpop.eup %602  ;;  %v442_v26 = vmul.f32 %v432_v51, %v362_v50  ;;  %610 = vtanh.f32 %v421_v55 }
 0x248   :  { %v605_v16 = vpop.eup %604  ;;  %459 = vst.msk [vmem:[%s940_s5 + $0x38] sm:$0xff] %vm197_vm1, %v449_v54  ;;  %v435_v8 = vadd.f32 1.0, %v603_v56  ;;  %612 = vtanh.f32 %v416_v57  ;;  %v420_v62 = vmul.f32 0.7978846, %v410_v58 }
 0x249   :  { %452 = vst.msk [vmem:[%s940_s5] sm:$0xff] %vm197_vm1, %v442_v26  ;;  %v438_v60 = vadd.f32 1.0, %v605_v16 }
 0x24a   :  { %v445_v1 = vmul.f32 %v435_v8, %v365_v34  ;;  %614 = vtanh.f32 %v420_v62 }
 0x24b   :  { %v448_v2 = vmul.f32 %v438_v60, %v368_v59  ;;  %v607_v5 = vpop.eup %606 }
 0x24c   :  { %455 = vst.msk [vmem:[%s940_s5 + $0x18] sm:$0xff] %vm197_vm1, %v445_v1  ;;  %v609_v46 = vpop.eup %608  ;;  %v437_v6 = vadd.f32 1.0, %v607_v5 }
 0x24d   :  { %458 = vst.msk [vmem:[%s940_s5 + $0x30] sm:$0xff] %vm197_vm1, %v448_v2  ;;  %v434_v10 = vadd.f32 1.0, %v609_v46 }
 0x24e   :  { %v447_v12 = vmul.f32 %v437_v6, %v367_v48 }
 0x24f   :  { %v444_v13 = vmul.f32 %v434_v10, %v364_v9 }
 0x250   :  { %457 = vst.msk [vmem:[%s940_s5 + $0x28] sm:$0xff] %vm197_vm1, %v447_v12 }
 0x251   :  { %v611_v14 = vpop.eup %610  ;;  %454 = vst.msk [vmem:[%s940_s5 + $0x10] sm:$0xff] %vm197_vm1, %v444_v13 }
 0x252   :  { %v613_v36 = vpop.eup %612  ;;  %v441_v15 = vadd.f32 1.0, %v611_v14 }
 0x253   :  { %v436_v18 = vadd.f32 1.0, %v613_v36 }
 0x254   :  { %v615_v19 = vpop.eup %614  ;;  %v451_v27 = vmul.f32 %v441_v15, %v371_v61 }
 0x255   :  { %v446_v20 = vmul.f32 %v436_v18, %v366_v4  ;;  %v440_v22 = vadd.f32 1.0, %v615_v19 }
 0x256   :  { %461 = vst.msk [vmem:[%s940_s5 + $0x48] sm:$0x3f] %vm225_vm2, %v451_v27 }
 0x257   :  { %456 = vst.msk [vmem:[%s940_s5 + $0x20] sm:$0xff] %vm197_vm1, %v446_v20  ;;  %v450_v23 = vmul.f32 %v440_v22, %v370_v0 }
 0x259   :  { %460 = vst.msk [vmem:[%s940_s5 + $0x40] sm:$0xff] %vm197_vm1, %v450_v23 }

// kernel: fwd.11
= control target key start
LH: loop header
LB: loop body
LE: loop exit
PB: predicated region body
PF: predicated region fallthrough
CT: control target
= control target key end

     0   :  { %v387_v0 = vmov 0.0|0.0   ;;  %vm388_vm0 = vmmov 0   ;;  %v389_v6 = vmov 0.0   ;;  %vm40_vm1 = vcmask 523264   ;;  %s503_s1 = inlined_call_operand.vmem [shape: f32[64,32], index: 1, kind: input, shape index: {}]   ;;  %s504_s0 = inlined_call_operand.vmem [shape: f32[38,64], index: 0, kind: input, shape index: {}]   ;;  %s505_s2 = inlined_call_operand.vmem [shape: f32[1,32], index: 2, kind: input, shape index: {}, may-alias: {2,4}]   ;;  %s506_s3 = inlined_call_operand.vmem [shape: f32[1,32], index: 3, kind: input, shape index: {}]   ;;  %s507_s4 = inlined_call_operand.vmem [shape: f32[1,32], index: 4, kind: input, shape index: {}, may-alias: {2,4}]   ;;  %s508_s5 = inlined_call_operand.vmem [shape: f32[38,32], index: 5, kind: output, shape index: {}]  }
   0x1   :  { %344 = vmatprep.subr.bf16.mxu0 %v387_v0  ;;  %v25_v1 = vld [vmem:[%s503_s1] sm:$0xff]  ;;  %v26_v2 = vld [vmem:[%s503_s1 + $0x8] sm:$0xff]  ;;  %356 = vmatprep.subr.bf16.mxu1 %v387_v0  ;;  %v27_v3 = vld [vmem:[%s503_s1 + $0x10] sm:$0xff]  ;;  %vm148_vm2 = vcmask 261120   ;;  %vm161_vm3 = vcmask 259072  }
   0x2   :  { %v345_v4 = vpack.c.bf16 %v26_v2, %v25_v1  ;;  %v28_v5 = vld [vmem:[%s503_s1 + $0x18] sm:$0xff]  ;;  %329 = vmatprep.mubr.msk.f32.mxu0 %vm388_vm0, %v389_v6  ;;  %338 = vmatprep.mubr.msk.f32.mxu1 %vm388_vm0, %v389_v6  ;;  %v29_v8 = vld [vmem:[%s503_s1 + $0x20] sm:$0xff]  ;;  %v30_v9 = vld [vmem:[%s503_s1 + $0x28] sm:$0xff] }
   0x3   :  { %v348_v7 = vpack.c.bf16 %v28_v5, %v27_v3  ;;  %v351_v10 = vpack.c.bf16 %v30_v9, %v29_v8  ;;  %v31_v11 = vld [vmem:[%s503_s1 + $0x30] sm:$0xff]  ;;  %v32_v12 = vld [vmem:[%s503_s1 + $0x38] sm:$0xff]  ;;  %v20_v14 = vld [vmem:[%s504_s0] sm:$0xff] }
   0x4   :  { %346 = vmatpush3.bf16.msra.mxu0 %v345_v4  ;;  %360 = vmatpush3.bf16.msra.mxu1 %v345_v4  ;;  %v354_v13 = vpack.c.bf16 %v32_v12, %v31_v11  ;;  %v23_v15 = vld [vmem:[%s504_s0 + $0x18] sm:$0xff]  ;;  %v21_v16 = vld [vmem:[%s504_s0 + $0x8] sm:$0xff]  ;;  %v24_v17 = vld [vmem:[%s504_s0 + $0x20] sm:$0x3f] }
   0x5   :  { %347 = vmatprep.subr.bf16.mxu0 %v387_v0  ;;  %357 = vmatprep.subr.bf16.mxu1 %v387_v0  ;;  %v22_v18 = vld [vmem:[%s504_s0 + $0x10] sm:$0xff]  ;;  %v292_v19 = vld [vmem:[%s505_s2] ss:$0 sm:$0xff] }
   0x8   :  { %349 = vmatpush3.bf16.msra.mxu0 %v348_v7  ;;  %361 = vmatpush3.bf16.msra.mxu1 %v348_v7 }
   0x9   :  { %350 = vmatprep.subr.bf16.mxu0 %v387_v0  ;;  %358 = vmatprep.subr.bf16.mxu1 %v387_v0 }
   0xc   :  { %352 = vmatpush3.bf16.msra.mxu0 %v351_v10  ;;  %362 = vmatpush3.bf16.msra.mxu1 %v351_v10 }
   0xd   :  { %353 = vmatprep.subr.bf16.mxu0 %v387_v0  ;;  %359 = vmatprep.subr.bf16.mxu1 %v387_v0 }
  0x10   :  { %355 = vmatpush3.bf16.msra.mxu0 %v354_v13  ;;  %363 = vmatpush3.bf16.msra.mxu1 %v354_v13 }
  0x13   :  { %330 = vmatmul.mubr.msk.f32.vlgmr.msra.gmra.mrb[0].mxu0 %vm40_vm1, %v20_v14  ;;  %339 = vmatmul.mubr.msk.f32.vlgmr.msra.gmra.mrb[0].mxu1 %vm40_vm1, %v23_v15  ;;  %v298_v15 = vld [vmem:[%s506_s3] ss:$0 sm:$0xff] }
  0x14   :  { %332 = vmatprep.mubr.msk.f32.mxu0 %vm388_vm0, %v389_v6  ;;  %341 = vmatprep.mubr.msk.f32.mxu1 %vm388_vm0, %v389_v6 }
  0x17   :  { %333 = vmatmul.mubr.msk.f32.gmra.mrb[2].mxu0 %vm40_vm1, %v21_v16  ;;  %342 = vmatmul.mubr.msk.f32.gmra.mrb[2].mxu1 %vm40_vm1, %v24_v17 }
  0x18   :  { %335 = vmatprep.mubr.msk.f32.mxu0 %vm388_vm0, %v389_v6 }
  0x1b   :  { %336 = vmatmul.mubr.msk.f32.gmra.mrb[4].mxu0 %vm40_vm1, %v22_v18 }
  0xe6   :  { %v122_v20 = vpop.f32.mrb[0].mxu0  ;;  %v137_v21 = vpop.f32.mrb[0].mxu1 }
  0xe7   :  { %v123_v22 = vadd.f32 %v292_v19, %v122_v20  ;;  %v331_v23 = vpop.f32.mrb[1].mxu0  ;;  %v340_v24 = vpop.f32.mrb[1].mxu1  ;;  %v138_v37 = vadd.f32 %v292_v19, %v137_v21 }
  0xe9   :  { %v149_v25 = vsel %vm148_vm2, %v123_v22, 0.0  ;;  %v158_v39 = vsel %vm148_vm2, %v138_v37, 0.0 }
  0xea   :  { %150 = vadd.xlane.f32.xlu0 %v149_v25  ;;  %v127_v26 = vpop.f32.mrb[2].mxu0  ;;  %v142_v27 = vpop.f32.mrb[2].mxu1 }
  0xeb   :  { %v128_v28 = vadd.f32 %v292_v19, %v127_v26  ;;  %v334_v29 = vpop.f32.mrb[3].mxu0  ;;  %v143_v30 = vadd.f32 %v292_v19, %v142_v27  ;;  %v343_v31 = vpop.f32.mrb[3].mxu1 }
  0xed   :  { %v152_v32 = vsel %vm148_vm2, %v128_v28, 0.0  ;;  %v162_v36 = vsel %vm161_vm3, %v143_v30, 0.0 }
  0xee   :  { %153 = vadd.xlane.f32.xlu0 %v152_v32  ;;  %v132_v33 = vpop.f32.mrb[4].mxu0 }
  0xef   :  { %v133_v34 = vadd.f32 %v292_v19, %v132_v33  ;;  %v337_v35 = vpop.f32.mrb[5].mxu0  ;;  %v299_v19 = vld [vmem:[%s507_s4] ss:$0 sm:$0xff] }
  0xf1   :  { %v155_v38 = vsel %vm148_vm2, %v133_v34, 0.0 }
  0xf2   :  { %163 = vadd.xlane.f32.xlu0 %v162_v36  ;;  %156 = vadd.xlane.f32.xlu1 %v155_v38 }
  0xf6   :  { %159 = vadd.xlane.f32.xlu1 %v158_v39 }
 0x177   :  { %v151_v40 = vpop.xlane.xlu0 %150 }
 0x178   :  { %v166_v41 = vmul.f32 0.03125, %v151_v40 }
 0x17a   :  { %v171_v42 = vsub.f32 %v123_v22, %v166_v41 }
 0x17b   :  { %v154_v43 = vpop.xlane.xlu0 %153 }
 0x17c   :  { %v167_v44 = vmul.f32 0.03125, %v154_v43  ;;  %v176_v45 = vmul.f32 %v171_v42, %v171_v42 }
 0x17e   :  { %v172_v46 = vsub.f32 %v128_v28, %v167_v44  ;;  %v181_v47 = vsel %vm148_vm2, %v176_v45, 0.0 }
 0x17f   :  { %v164_v48 = vpop.xlane.xlu0 %163  ;;  %182 = vadd.xlane.f32.xlu1 %v181_v47  ;;  %v157_v49 = vpop.xlane.xlu1 %156 }
 0x180   :  { %v170_v50 = vmul.f32 0.03125, %v164_v48  ;;  %v168_v51 = vmul.f32 0.03125, %v157_v49  ;;  %v177_v52 = vmul.f32 %v172_v46, %v172_v46 }
 0x182   :  { %v175_v53 = vsub.f32 %v143_v30, %v170_v50  ;;  %v173_v54 = vsub.f32 %v133_v34, %v168_v51  ;;  %v184_v55 = vsel %vm148_vm2, %v177_v52, 0.0 }
 0x183   :  { %185 = vadd.xlane.f32.xlu0 %v184_v55  ;;  %v160_v56 = vpop.xlane.xlu1 %159 }
 0x184   :  { %v169_v57 = vmul.f32 0.03125, %v160_v56  ;;  %v178_v58 = vmul.f32 %v173_v54, %v173_v54  ;;  %v180_v61 = vmul.f32 %v175_v53, %v175_v53 }
 0x186   :  { %v174_v59 = vsub.f32 %v138_v37, %v169_v57  ;;  %v187_v60 = vsel %vm148_vm2, %v178_v58, 0.0  ;;  %v193_v63 = vsel %vm161_vm3, %v180_v61, 0.0 }
 0x187   :  { %188 = vadd.xlane.f32.xlu1 %v187_v60 }
 0x188   :  { %v179_v62 = vmul.f32 %v174_v59, %v174_v59 }
 0x18a   :  { %v190_v0 = vsel %vm148_vm2, %v179_v62, 0.0 }
 0x18b   :  { %194 = vadd.xlane.f32.xlu1 %v193_v63  ;;  %191 = vadd.xlane.f32.xlu0 %v190_v0 }
 0x20c   :  { %v183_v1 = vpop.xlane.xlu1 %182 }
 0x20d   :  { %v196_v2 = vmul.f32 0.03125, %v183_v1 }
 0x20f   :  { %v201_v3 = vadd.f32 1e-05, %v196_v2 }
 0x210   :  { %v186_v4 = vpop.xlane.xlu0 %185 }
 0x211   :  { %367 = vrsqrt.f32 %v201_v3  ;;  %v197_v5 = vmul.f32 0.03125, %v186_v4 }
 0x213   :  { %v202_v6 = vadd.f32 1e-05, %v197_v5 }
 0x214   :  { %v189_v7 = vpop.xlane.xlu1 %188 }
 0x215   :  { %369 = vrsqrt.f32 %v202_v6  ;;  %v198_v8 = vmul.f32 0.03125, %v189_v7 }
 0x217   :  { %v203_v9 = vadd.f32 1e-05, %v198_v8 }
 0x218   :  { %v192_v10 = vpop.xlane.xlu0 %191  ;;  %v195_v11 = vpop.xlane.xlu1 %194 }
 0x219   :  { %371 = vrsqrt.f32 %v203_v9  ;;  %v199_v12 = vmul.f32 0.03125, %v192_v10  ;;  %v200_v13 = vmul.f32 0.03125, %v195_v11 }
 0x21b   :  { %v368_v14 = vpop.eup %367  ;;  %v204_v16 = vadd.f32 1e-05, %v199_v12  ;;  %v205_v17 = vadd.f32 1e-05, %v200_v13 }
 0x21c   :  { %v211_v18 = vmul.f32 %v368_v14, %v171_v42 }
 0x21d   :  { %373 = vrsqrt.f32 %v204_v16 }
 0x21e   :  { %v222_v20 = vmul.f32 %v298_v15, %v211_v18  ;;  %375 = vrsqrt.f32 %v205_v17 }
 0x21f   :  { %v370_v21 = vpop.eup %369 }
 0x220   :  { %v233_v22 = vadd.f32 %v299_v19, %v222_v20  ;;  %v212_v23 = vmul.f32 %v370_v21, %v172_v46 }
 0x222   :  { %v243_v24 = vmul.f32 0.044715, %v233_v22  ;;  %v223_v25 = vmul.f32 %v298_v15, %v212_v23  ;;  %v238_v62 = vmul.f32 0.5, %v233_v22 }
 0x223   :  { %v372_v26 = vpop.eup %371 }
 0x224   :  { %v248_v27 = vmul.f32 %v243_v24, %v233_v22  ;;  %v234_v28 = vadd.f32 %v299_v19, %v223_v25  ;;  %v213_v29 = vmul.f32 %v372_v26, %v173_v54 }
 0x226   :  { %v253_v30 = vmul.f32 %v248_v27, %v233_v22  ;;  %v244_v31 = vmul.f32 0.044715, %v234_v28  ;;  %v224_v32 = vmul.f32 %v298_v15, %v213_v29  ;;  %v239_v4 = vmul.f32 0.5, %v234_v28 }
 0x227   :  { %v374_v33 = vpop.eup %373 }
 0x228   :  { %v376_v34 = vpop.eup %375  ;;  %v258_v35 = vadd.f32 %v253_v30, %v233_v22  ;;  %v249_v36 = vmul.f32 %v244_v31, %v234_v28  ;;  %v235_v37 = vadd.f32 %v299_v19, %v224_v32  ;;  %v214_v38 = vmul.f32 %v374_v33, %v174_v59 }
 0x229   :  { %v215_v39 = vmul.f32 %v376_v34, %v175_v53 }
 0x22a   :  { %v263_v40 = vmul.f32 0.7978846, %v258_v35  ;;  %v254_v41 = vmul.f32 %v249_v36, %v234_v28  ;;  %v245_v42 = vmul.f32 0.044715, %v235_v37  ;;  %v225_v43 = vmul.f32 %v298_v15, %v214_v38 }
 0x22b   :  { %v226_v44 = vmul.f32 %v298_v15, %v215_v39  ;;  %v240_v8 = vmul.f32 0.5, %v235_v37 }
 0x22c   :  { %377 = vtanh.f32 %v263_v40  ;;  %v259_v45 = vadd.f32 %v254_v41, %v234_v28  ;;  %v250_v46 = vmul.f32 %v245_v42, %v235_v37  ;;  %v236_v47 = vadd.f32 %v299_v19, %v225_v43 }
 0x22d   :  { %v237_v48 = vadd.f32 %v299_v19, %v226_v44 }
 0x22e   :  { %v264_v49 = vmul.f32 0.7978846, %v259_v45  ;;  %v255_v50 = vmul.f32 %v250_v46, %v235_v37  ;;  %v246_v51 = vmul.f32 0.044715, %v236_v47  ;;  %v241_v13 = vmul.f32 0.5, %v236_v47 }
 0x22f   :  { %v247_v52 = vmul.f32 0.044715, %v237_v48  ;;  %v242_v15 = vmul.f32 0.5, %v237_v48 }
 0x230   :  { %379 = vtanh.f32 %v264_v49  ;;  %v260_v54 = vadd.f32 %v255_v50, %v235_v37  ;;  %v251_v55 = vmul.f32 %v246_v51, %v236_v47 }
 0x231   :  { %v252_v56 = vmul.f32 %v247_v52, %v237_v48 }
 0x232   :  { %v265_v57 = vmul.f32 0.7978846, %v260_v54  ;;  %v256_v53 = vmul.f32 %v251_v55, %v236_v47 }
 0x233   :  { %v257_v58 = vmul.f32 %v252_v56, %v237_v48 }
 0x234   :  { %381 = vtanh.f32 %v265_v57  ;;  %v261_v59 = vadd.f32 %v256_v53, %v236_v47 }
 0x235   :  { %v262_v60 = vadd.f32 %v257_v58, %v237_v48 }
 0x236   :  { %v378_v61 = vpop.eup %377  ;;  %v266_v0 = vmul.f32 0.7978846, %v261_v59 }
 0x237   :  { %v273_v63 = vadd.f32 1.0, %v378_v61  ;;  %v267_v1 = vmul.f32 0.7978846, %v262_v60 }
 0x238   :  { %383 = vtanh.f32 %v266_v0 }
 0x239   :  { %v278_v2 = vmul.f32 %v273_v63, %v238_v62  ;;  %385 = vtanh.f32 %v267_v1 }
 0x23a   :  { %v380_v3 = vpop.eup %379 }
 0x23b   :  { %283 = vst.msk [vmem:[%s508_s5] sm:$0xff] %vm148_vm2, %v278_v2  ;;  %v274_v5 = vadd.f32 1.0, %v380_v3 }
 0x23d   :  { %v279_v6 = vmul.f32 %v274_v5, %v239_v4 }
 0x23e   :  { %v382_v7 = vpop.eup %381 }
 0x23f   :  { %284 = vst.msk [vmem:[%s508_s5 + $0x8] sm:$0xff] %vm148_vm2, %v279_v6  ;;  %v275_v9 = vadd.f32 1.0, %v382_v7 }
 0x241   :  { %v280_v10 = vmul.f32 %v275_v9, %v240_v8 }
 0x242   :  { %v384_v11 = vpop.eup %383 }
 0x243   :  { %285 = vst.msk [vmem:[%s508_s5 + $0x10] sm:$0xff] %vm148_vm2, %v280_v10  ;;  %v386_v12 = vpop.eup %385  ;;  %v276_v14 = vadd.f32 1.0, %v384_v11 }
 0x244   :  { %v277_v16 = vadd.f32 1.0, %v386_v12 }
 0x245   :  { %v281_v17 = vmul.f32 %v276_v14, %v241_v13 }
 0x246   :  { %v282_v18 = vmul.f32 %v277_v16, %v242_v15 }
 0x247   :  { %286 = vst.msk [vmem:[%s508_s5 + $0x18] sm:$0xff] %vm148_vm2, %v281_v17 }
 0x248   :  { %287 = vst.msk [vmem:[%s508_s5 + $0x20] sm:$0x3f] %vm161_vm3, %v282_v18 }

// kernel: fwd.12
= control target key start
LH: loop header
LB: loop body
LE: loop exit
PB: predicated region body
PF: predicated region fallthrough
CT: control target
= control target key end

     0   :  { %vm27_vm0 = vcmask 261120   ;;  %vm40_vm1 = vcmask 259072   ;;  %v307_v40 = vmov 0.0|0.0   ;;  %vm308_vm2 = vmmov 0   ;;  %s440_s0 = inlined_call_operand.vmem [shape: f32[38,32], index: 0, kind: input, shape index: {}]   ;;  %s441_s3 = inlined_call_operand.vmem [shape: f32[32,64], index: 3, kind: input, shape index: {}]   ;;  %s442_s1 = inlined_call_operand.vmem [shape: f32[1,32], index: 1, kind: input, shape index: {}]   ;;  %s443_s2 = inlined_call_operand.vmem [shape: f32[1,32], index: 2, kind: input, shape index: {}]   ;;  %s444_s4 = inlined_call_operand.vmem [shape: f32[1,64], index: 4, kind: input, shape index: {}]   ;;  %s445_s5 = inlined_call_operand.vmem [shape: f32[38,64], index: 5, kind: output, shape index: {}]  }
   0x1   :  { %v20_v0 = vld [vmem:[%s440_s0] sm:$0xff]  ;;  %v23_v1 = vld [vmem:[%s440_s0 + $0x18] sm:$0xff]  ;;  %v21_v2 = vld [vmem:[%s440_s0 + $0x8] sm:$0xff]  ;;  %284 = vmatprep.subr.bf16.mxu0 %v307_v40  ;;  %290 = vmatprep.subr.bf16.mxu1 %v307_v40  ;;  %v309_v42 = vmov 0.0   ;;  %vm233_vm3 = vcmask 523264   ;;  %vm238_vm4 = vcmask 521216  }
   0x2   :  { %v28_v3 = vsel %vm27_vm0, %v20_v0, 0.0  ;;  %v37_v4 = vsel %vm27_vm0, %v23_v1, 0.0  ;;  %v22_v5 = vld [vmem:[%s440_s0 + $0x10] sm:$0xff]  ;;  %v31_v6 = vsel %vm27_vm0, %v21_v2, 0.0  ;;  %v24_v8 = vld [vmem:[%s440_s0 + $0x20] sm:$0x3f]  ;;  %269 = vmatprep.mubr.msk.f32.mxu0 %vm308_vm2, %v309_v42  ;;  %278 = vmatprep.mubr.msk.f32.mxu1 %vm308_vm2, %v309_v42 }
   0x3   :  { %29 = vadd.xlane.f32.xlu0 %v28_v3  ;;  %38 = vadd.xlane.f32.xlu1 %v37_v4  ;;  %v34_v7 = vsel %vm27_vm0, %v22_v5, 0.0  ;;  %v41_v9 = vsel %vm40_vm1, %v24_v8, 0.0  ;;  %v117_v35 = vld [vmem:[%s441_s3] sm:$0xff]  ;;  %v118_v36 = vld [vmem:[%s441_s3 + $0x8] sm:$0xff]  ;;  %v119_v38 = vld [vmem:[%s441_s3 + $0x10] sm:$0xff] }
   0x4   :  { %v285_v37 = vpack.c.bf16 %v118_v36, %v117_v35  ;;  %v120_v39 = vld [vmem:[%s441_s3 + $0x18] sm:$0xff]  ;;  %v244_v59 = vld [vmem:[%s442_s1] ss:$0 sm:$0xff] }
   0x5   :  { %v288_v41 = vpack.c.bf16 %v120_v39, %v119_v38  ;;  %v245_v61 = vld [vmem:[%s443_s2] ss:$0 sm:$0xff] }
   0x6   :  { %286 = vmatpush3.bf16.msra.mxu0 %v285_v37  ;;  %292 = vmatpush3.bf16.msra.mxu1 %v285_v37 }
   0x7   :  { %32 = vadd.xlane.f32.xlu0 %v31_v6  ;;  %35 = vadd.xlane.f32.xlu1 %v34_v7 }
   0x8   :  { %287 = vmatprep.subr.bf16.mxu0 %v307_v40  ;;  %291 = vmatprep.subr.bf16.mxu1 %v307_v40 }
   0xa   :  { %289 = vmatpush3.bf16.msra.mxu0 %v288_v41  ;;  %293 = vmatpush3.bf16.msra.mxu1 %v288_v41 }
   0xb   :  { %42 = vadd.xlane.f32.xlu0 %v41_v9 }
  0x90   :  { %v30_v10 = vpop.xlane.xlu0 %29  ;;  %v39_v11 = vpop.xlane.xlu1 %38 }
  0x91   :  { %v45_v12 = vmul.f32 0.03125, %v30_v10  ;;  %v48_v13 = vmul.f32 0.03125, %v39_v11 }
  0x93   :  { %v360_v14 = vsub.f32 %v20_v0, %v45_v12  ;;  %v362_v15 = vsub.f32 %v23_v1, %v48_v13 }
  0x94   :  { %v33_v16 = vpop.xlane.xlu0 %32  ;;  %v36_v17 = vpop.xlane.xlu1 %35 }
  0x95   :  { %v46_v18 = vmul.f32 0.03125, %v33_v16  ;;  %v47_v19 = vmul.f32 0.03125, %v36_v17  ;;  %v55_v20 = vmul.f32 %v360_v14, %v360_v14  ;;  %v58_v21 = vmul.f32 %v362_v15, %v362_v15  ;;  %v246_v16 = vld [vmem:[%s444_s4] ss:$0 sm:$0xff] }
  0x97   :  { %v368_v22 = vsub.f32 %v21_v2, %v46_v18  ;;  %v370_v23 = vsub.f32 %v22_v5, %v47_v19  ;;  %v60_v24 = vsel %vm27_vm0, %v55_v20, 0.0  ;;  %v69_v27 = vsel %vm27_vm0, %v58_v21, 0.0 }
  0x98   :  { %61 = vadd.xlane.f32.xlu1 %v60_v24  ;;  %v43_v25 = vpop.xlane.xlu0 %42 }
  0x99   :  { %v49_v26 = vmul.f32 0.03125, %v43_v25  ;;  %v56_v28 = vmul.f32 %v368_v22, %v368_v22  ;;  %v57_v29 = vmul.f32 %v370_v23, %v370_v23 }
  0x9b   :  { %v378_v30 = vsub.f32 %v24_v8, %v49_v26  ;;  %v63_v31 = vsel %vm27_vm0, %v56_v28, 0.0  ;;  %v66_v32 = vsel %vm27_vm0, %v57_v29, 0.0 }
  0x9c   :  { %70 = vadd.xlane.f32.xlu1 %v69_v27  ;;  %64 = vadd.xlane.f32.xlu0 %v63_v31 }
  0x9d   :  { %v59_v33 = vmul.f32 %v378_v30, %v378_v30 }
  0x9f   :  { %v72_v34 = vsel %vm40_vm1, %v59_v33, 0.0 }
  0xa0   :  { %67 = vadd.xlane.f32.xlu0 %v66_v32  ;;  %73 = vadd.xlane.f32.xlu1 %v72_v34 }
 0x125   :  { %v62_v43 = vpop.xlane.xlu1 %61 }
 0x126   :  { %v75_v44 = vmul.f32 0.03125, %v62_v43 }
 0x128   :  { %v80_v45 = vadd.f32 1e-05, %v75_v44 }
 0x129   :  { %v71_v46 = vpop.xlane.xlu1 %70  ;;  %v65_v47 = vpop.xlane.xlu0 %64 }
 0x12a   :  { %297 = vrsqrt.f32 %v80_v45  ;;  %v78_v48 = vmul.f32 0.03125, %v71_v46  ;;  %v76_v49 = vmul.f32 0.03125, %v65_v47 }
 0x12c   :  { %v83_v50 = vadd.f32 1e-05, %v78_v48  ;;  %v81_v51 = vadd.f32 1e-05, %v76_v49 }
 0x12d   :  { %v74_v52 = vpop.xlane.xlu1 %73  ;;  %v68_v53 = vpop.xlane.xlu0 %67 }
 0x12e   :  { %299 = vrsqrt.f32 %v83_v50  ;;  %v79_v54 = vmul.f32 0.03125, %v74_v52  ;;  %v77_v55 = vmul.f32 0.03125, %v68_v53 }
 0x12f   :  { %301 = vrsqrt.f32 %v81_v51 }
 0x130   :  { %v84_v56 = vadd.f32 1e-05, %v79_v54  ;;  %v82_v57 = vadd.f32 1e-05, %v77_v55 }
 0x132   :  { %303 = vrsqrt.f32 %v84_v56 }
 0x133   :  { %305 = vrsqrt.f32 %v82_v57 }
 0x134   :  { %v298_v58 = vpop.eup %297 }
 0x135   :  { %v90_v60 = vmul.f32 %v298_v58, %v360_v14 }
 0x137   :  { %v101_v62 = vmul.f32 %v244_v59, %v90_v60 }
 0x138   :  { %v300_v63 = vpop.eup %299 }
 0x139   :  { %v302_v0 = vpop.eup %301  ;;  %v112_v1 = vadd.f32 %v245_v61, %v101_v62  ;;  %v93_v2 = vmul.f32 %v300_v63, %v362_v15 }
 0x13a   :  { %v91_v3 = vmul.f32 %v302_v0, %v368_v22 }
 0x13b   :  { %270 = vmatmul.mubr.msk.f32.vlgmr.msra.gmra.mrb[0].mxu0 %vm27_vm0, %v112_v1  ;;  %v104_v4 = vmul.f32 %v244_v59, %v93_v2 }
 0x13c   :  { %v304_v5 = vpop.eup %303  ;;  %272 = vmatprep.mubr.msk.f32.mxu0 %vm308_vm2, %v309_v42  ;;  %v102_v6 = vmul.f32 %v244_v59, %v91_v3 }
 0x13d   :  { %v306_v7 = vpop.eup %305  ;;  %v115_v8 = vadd.f32 %v245_v61, %v104_v4  ;;  %v94_v9 = vmul.f32 %v304_v5, %v378_v30 }
 0x13e   :  { %v113_v10 = vadd.f32 %v245_v61, %v102_v6  ;;  %v92_v11 = vmul.f32 %v306_v7, %v370_v23 }
 0x13f   :  { %279 = vmatmul.mubr.msk.f32.vlgmr.msra.gmra.mrb[0].mxu1 %vm27_vm0, %v115_v8  ;;  %v105_v12 = vmul.f32 %v244_v59, %v94_v9 }
 0x140   :  { %273 = vmatmul.mubr.msk.f32.gmra.mrb[2].mxu0 %vm27_vm0, %v113_v10  ;;  %281 = vmatprep.mubr.msk.f32.mxu1 %vm308_vm2, %v309_v42  ;;  %v103_v13 = vmul.f32 %v244_v59, %v92_v11 }
 0x141   :  { %275 = vmatprep.mubr.msk.f32.mxu0 %vm308_vm2, %v309_v42  ;;  %v116_v14 = vadd.f32 %v245_v61, %v105_v12 }
 0x142   :  { %v114_v15 = vadd.f32 %v245_v61, %v103_v13 }
 0x143   :  { %282 = vmatmul.mubr.msk.f32.gmra.mrb[2].mxu1 %vm27_vm0, %v116_v14 }
 0x144   :  { %276 = vmatmul.mubr.msk.f32.gmra.mrb[4].mxu0 %vm27_vm0, %v114_v15 }
 0x20e   :  { %v209_v17 = vpop.f32.mrb[0].mxu0 }
 0x20f   :  { %v210_v18 = vadd.f32 %v246_v16, %v209_v17  ;;  %v271_v19 = vpop.f32.mrb[1].mxu0 }
 0x211   :  { %234 = vst.msk [vmem:[%s445_s5] sm:$0xff] %vm233_vm3, %v210_v18 }
 0x212   :  { %v224_v20 = vpop.f32.mrb[0].mxu1 }
 0x213   :  { %v214_v21 = vpop.f32.mrb[2].mxu0  ;;  %v225_v22 = vadd.f32 %v246_v16, %v224_v20  ;;  %v280_v23 = vpop.f32.mrb[1].mxu1 }
 0x214   :  { %v215_v24 = vadd.f32 %v246_v16, %v214_v21  ;;  %v274_v25 = vpop.f32.mrb[3].mxu0 }
 0x215   :  { %237 = vst.msk [vmem:[%s445_s5 + $0x18] sm:$0xff] %vm233_vm3, %v225_v22 }
 0x216   :  { %235 = vst.msk [vmem:[%s445_s5 + $0x8] sm:$0xff] %vm233_vm3, %v215_v24  ;;  %v229_v26 = vpop.f32.mrb[2].mxu1 }
 0x217   :  { %v219_v27 = vpop.f32.mrb[4].mxu0  ;;  %v230_v28 = vadd.f32 %v246_v16, %v229_v26  ;;  %v283_v29 = vpop.f32.mrb[3].mxu1 }
 0x218   :  { %v220_v30 = vadd.f32 %v246_v16, %v219_v27  ;;  %v277_v31 = vpop.f32.mrb[5].mxu0 }
 0x219   :  { %239 = vst.msk [vmem:[%s445_s5 + $0x20] sm:$0x3f] %vm238_vm4, %v230_v28 }
 0x21a   :  { %236 = vst.msk [vmem:[%s445_s5 + $0x10] sm:$0xff] %vm233_vm3, %v220_v30 }

// kernel: fwd.13
= control target key start
LH: loop header
LB: loop body
LE: loop exit
PB: predicated region body
PF: predicated region fallthrough
CT: control target
= control target key end

     0   :  { %vm330_vm0 = vcmask 523264   ;;  %s804_s1 = inlined_call_operand.vmem [shape: f32[512,64], index: 1, kind: input, shape index: {}]   ;;  %s805_s0 = inlined_call_operand.vmem [shape: f32[40,512], index: 0, kind: input, shape index: {}]   ;;  %s806_s2 = inlined_call_operand.vmem [shape: f32[1,64], index: 2, kind: input, shape index: {}]   ;;  %s807_s3 = inlined_call_operand.vmem [shape: f32[40,64], index: 3, kind: output, shape index: {}]  }
   0x1   :  { %v50_v0 = vld [vmem:[%s804_s1 + $0x80] sm:$0xff]  ;;  %v51_v1 = vld [vmem:[%s804_s1 + $0x88] sm:$0xff]  ;;  %v52_v11 = vld [vmem:[%s804_s1 + $0x90] sm:$0xff] }
   0x2   :  { %v34_v2 = vld [vmem:[%s804_s1] sm:$0xff]  ;;  %v435_v3 = vpack.c.bf16 %v51_v1, %v50_v0  ;;  %v35_v4 = vld [vmem:[%s804_s1 + $0x8] sm:$0xff]  ;;  %v53_v13 = vld [vmem:[%s804_s1 + $0x98] sm:$0xff] }
   0x3   :  { %v82_v5 = vld [vmem:[%s804_s1 + $0x180] sm:$0xff]  ;;  %v83_v6 = vld [vmem:[%s804_s1 + $0x188] sm:$0xff]  ;;  %v437_v7 = vpack.c.bf16 %v35_v4, %v34_v2  ;;  %v36_v14 = vld [vmem:[%s804_s1 + $0x10] sm:$0xff]  ;;  %v439_v16 = vpack.c.bf16 %v53_v13, %v52_v11 }
   0x4   :  { %v467_v8 = vpack.c.bf16 %v83_v6, %v82_v5  ;;  %v66_v9 = vld [vmem:[%s804_s1 + $0x100] sm:$0xff]  ;;  %v67_v10 = vld [vmem:[%s804_s1 + $0x108] sm:$0xff]  ;;  %436 = vmatprep.subr.bf16.mxu0 %v435_v3  ;;  %v37_v15 = vld [vmem:[%s804_s1 + $0x18] sm:$0xff] }
   0x5   :  { %v469_v12 = vpack.c.bf16 %v67_v10, %v66_v9  ;;  %438 = vmatpush3.bf16.msra.mxu0 %v437_v7  ;;  %v441_v17 = vpack.c.bf16 %v37_v15, %v36_v14  ;;  %v84_v18 = vld [vmem:[%s804_s1 + $0x190] sm:$0xff]  ;;  %v85_v19 = vld [vmem:[%s804_s1 + $0x198] sm:$0xff]  ;;  %v54_v23 = vld [vmem:[%s804_s1 + $0xa0] sm:$0xff] }
   0x6   :  { %468 = vmatprep.subr.bf16.mxu1 %v467_v8  ;;  %v68_v20 = vld [vmem:[%s804_s1 + $0x110] sm:$0xff]  ;;  %v471_v21 = vpack.c.bf16 %v85_v19, %v84_v18  ;;  %v69_v22 = vld [vmem:[%s804_s1 + $0x118] sm:$0xff]  ;;  %v55_v24 = vld [vmem:[%s804_s1 + $0xa8] sm:$0xff]  ;;  %440 = vmatprep.subr.bf16.mxu0 %v439_v16 }
   0x7   :  { %470 = vmatpush3.bf16.msra.mxu1 %v469_v12  ;;  %v473_v25 = vpack.c.bf16 %v69_v22, %v68_v20  ;;  %v443_v26 = vpack.c.bf16 %v55_v24, %v54_v23  ;;  %v38_v27 = vld [vmem:[%s804_s1 + $0x20] sm:$0xff]  ;;  %v39_v28 = vld [vmem:[%s804_s1 + $0x28] sm:$0xff]  ;;  %v56_v35 = vld [vmem:[%s804_s1 + $0xb0] sm:$0xff] }
   0x8   :  { %v86_v29 = vld [vmem:[%s804_s1 + $0x1a0] sm:$0xff]  ;;  %472 = vmatprep.subr.bf16.mxu1 %v471_v21  ;;  %v87_v30 = vld [vmem:[%s804_s1 + $0x1a8] sm:$0xff]  ;;  %v445_v33 = vpack.c.bf16 %v39_v28, %v38_v27  ;;  %v57_v36 = vld [vmem:[%s804_s1 + $0xb8] sm:$0xff] }
   0x9   :  { %v70_v31 = vld [vmem:[%s804_s1 + $0x120] sm:$0xff]  ;;  %v71_v32 = vld [vmem:[%s804_s1 + $0x128] sm:$0xff]  ;;  %442 = vmatpush3.bf16.msra.mxu0 %v441_v17  ;;  %v475_v34 = vpack.c.bf16 %v87_v30, %v86_v29  ;;  %v40_v37 = vld [vmem:[%s804_s1 + $0x30] sm:$0xff]  ;;  %v447_v39 = vpack.c.bf16 %v57_v36, %v56_v35 }
   0xa   :  { %444 = vmatprep.subr.bf16.mxu0 %v443_v26  ;;  %v477_v38 = vpack.c.bf16 %v71_v32, %v70_v31  ;;  %v41_v40 = vld [vmem:[%s804_s1 + $0x38] sm:$0xff]  ;;  %v88_v41 = vld [vmem:[%s804_s1 + $0x1b0] sm:$0xff]  ;;  %v58_v46 = vld [vmem:[%s804_s1 + $0xc0] sm:$0xff] }
   0xb   :  { %474 = vmatpush3.bf16.msra.mxu1 %v473_v25  ;;  %v89_v42 = vld [vmem:[%s804_s1 + $0x1b8] sm:$0xff]  ;;  %v72_v44 = vld [vmem:[%s804_s1 + $0x130] sm:$0xff]  ;;  %v59_v47 = vld [vmem:[%s804_s1 + $0xc8] sm:$0xff]  ;;  %v449_v48 = vpack.c.bf16 %v41_v40, %v40_v37 }
   0xc   :  { %476 = vmatprep.subr.bf16.mxu1 %v475_v34  ;;  %v479_v43 = vpack.c.bf16 %v89_v42, %v88_v41  ;;  %v73_v45 = vld [vmem:[%s804_s1 + $0x138] sm:$0xff]  ;;  %v90_v49 = vld [vmem:[%s804_s1 + $0x1c0] sm:$0xff]  ;;  %v91_v50 = vld [vmem:[%s804_s1 + $0x1c8] sm:$0xff]  ;;  %v451_v52 = vpack.c.bf16 %v59_v47, %v58_v46 }
   0xd   :  { %446 = vmatpush3.bf16.msra.mxu0 %v445_v33  ;;  %v481_v51 = vpack.c.bf16 %v73_v45, %v72_v44  ;;  %v42_v53 = vld [vmem:[%s804_s1 + $0x40] sm:$0xff]  ;;  %v43_v54 = vld [vmem:[%s804_s1 + $0x48] sm:$0xff]  ;;  %v483_v56 = vpack.c.bf16 %v91_v50, %v90_v49  ;;  %v60_v58 = vld [vmem:[%s804_s1 + $0xd0] sm:$0xff] }
   0xe   :  { %448 = vmatprep.subr.bf16.mxu0 %v447_v39  ;;  %v74_v55 = vld [vmem:[%s804_s1 + $0x140] sm:$0xff]  ;;  %v75_v57 = vld [vmem:[%s804_s1 + $0x148] sm:$0xff]  ;;  %v61_v59 = vld [vmem:[%s804_s1 + $0xd8] sm:$0xff]  ;;  %v453_v62 = vpack.c.bf16 %v43_v54, %v42_v53 }
   0xf   :  { %478 = vmatpush3.bf16.msra.mxu1 %v477_v38  ;;  %v92_v60 = vld [vmem:[%s804_s1 + $0x1d0] sm:$0xff]  ;;  %v93_v61 = vld [vmem:[%s804_s1 + $0x1d8] sm:$0xff]  ;;  %v485_v63 = vpack.c.bf16 %v75_v57, %v74_v55  ;;  %v455_v0 = vpack.c.bf16 %v61_v59, %v60_v58  ;;  %v62_v6 = vld [vmem:[%s804_s1 + $0xe0] sm:$0xff] }
  0x10   :  { %480 = vmatprep.subr.bf16.mxu1 %v479_v43  ;;  %v44_v1 = vld [vmem:[%s804_s1 + $0x50] sm:$0xff]  ;;  %v45_v2 = vld [vmem:[%s804_s1 + $0x58] sm:$0xff]  ;;  %v487_v4 = vpack.c.bf16 %v93_v61, %v92_v60  ;;  %v63_v7 = vld [vmem:[%s804_s1 + $0xe8] sm:$0xff] }
  0x11   :  { %450 = vmatpush3.bf16.msra.mxu0 %v449_v48  ;;  %v76_v3 = vld [vmem:[%s804_s1 + $0x150] sm:$0xff]  ;;  %v77_v5 = vld [vmem:[%s804_s1 + $0x158] sm:$0xff]  ;;  %v94_v8 = vld [vmem:[%s804_s1 + $0x1e0] sm:$0xff]  ;;  %v457_v10 = vpack.c.bf16 %v45_v2, %v44_v1  ;;  %v459_v14 = vpack.c.bf16 %v63_v7, %v62_v6 }
  0x12   :  { %452 = vmatprep.subr.bf16.mxu0 %v451_v52  ;;  %v95_v9 = vld [vmem:[%s804_s1 + $0x1e8] sm:$0xff]  ;;  %v46_v11 = vld [vmem:[%s804_s1 + $0x60] sm:$0xff]  ;;  %v489_v13 = vpack.c.bf16 %v77_v5, %v76_v3  ;;  %v64_v19 = vld [vmem:[%s804_s1 + $0xf0] sm:$0xff] }
  0x13   :  { %482 = vmatpush3.bf16.msra.mxu1 %v481_v51  ;;  %v47_v12 = vld [vmem:[%s804_s1 + $0x68] sm:$0xff]  ;;  %v78_v15 = vld [vmem:[%s804_s1 + $0x160] sm:$0xff]  ;;  %v491_v18 = vpack.c.bf16 %v95_v9, %v94_v8  ;;  %v65_v20 = vld [vmem:[%s804_s1 + $0xf8] sm:$0xff] }
  0x14   :  { %484 = vmatprep.subr.bf16.mxu1 %v483_v56  ;;  %v79_v16 = vld [vmem:[%s804_s1 + $0x168] sm:$0xff]  ;;  %v17_v21 = vld [vmem:[%s805_s0 + $0x18] sm:$0xff]  ;;  %v96_v22 = vld [vmem:[%s804_s1 + $0x1f0] sm:$0xff]  ;;  %v461_v24 = vpack.c.bf16 %v47_v12, %v46_v11  ;;  %v463_v26 = vpack.c.bf16 %v65_v20, %v64_v19 }
  0x15   :  { %454 = vmatpush3.bf16.msra.mxu0 %v453_v62  ;;  %v15_v17 = vld [vmem:[%s805_s0 + $0x8] sm:$0xff]  ;;  %v97_v23 = vld [vmem:[%s804_s1 + $0x1f8] sm:$0xff]  ;;  %259 = vmatprep.mubr.f32.mxu1 %v17_v21  ;;  %v493_v25 = vpack.c.bf16 %v79_v16, %v78_v15  ;;  %v48_v27 = vld [vmem:[%s804_s1 + $0x70] sm:$0xff] }
  0x16   :  { %456 = vmatprep.subr.bf16.mxu0 %v455_v0  ;;  %169 = vmatprep.mubr.f32.mxu0 %v15_v17  ;;  %v49_v28 = vld [vmem:[%s804_s1 + $0x78] sm:$0xff]  ;;  %v495_v29 = vpack.c.bf16 %v97_v23, %v96_v22  ;;  %v80_v30 = vld [vmem:[%s804_s1 + $0x170] sm:$0xff]  ;;  %v14_v34 = vld [vmem:[%s805_s0] sm:$0xff] }
  0x17   :  { %486 = vmatpush3.bf16.msra.mxu1 %v485_v63  ;;  %v81_v31 = vld [vmem:[%s804_s1 + $0x178] sm:$0xff]  ;;  %v465_v32 = vpack.c.bf16 %v49_v28, %v48_v27  ;;  %v16_v35 = vld [vmem:[%s805_s0 + $0x10] sm:$0xff]  ;;  %v19_v36 = vld [vmem:[%s805_s0 + $0x28] sm:$0xff] }
  0x18   :  { %488 = vmatprep.subr.bf16.mxu1 %v487_v4  ;;  %v497_v33 = vpack.c.bf16 %v81_v31, %v80_v30  ;;  %v21_v37 = vld [vmem:[%s805_s0 + $0x38] sm:$0xff]  ;;  %v18_v38 = vld [vmem:[%s805_s0 + $0x20] sm:$0xff]  ;;  %v20_v39 = vld [vmem:[%s805_s0 + $0x30] sm:$0xff] }
  0x19   :  { %458 = vmatpush3.bf16.msra.mxu0 %v457_v10  ;;  %v23_v40 = vld [vmem:[%s805_s0 + $0x48] sm:$0xff]  ;;  %v25_v41 = vld [vmem:[%s805_s0 + $0x58] sm:$0xff]  ;;  %v22_v42 = vld [vmem:[%s805_s0 + $0x40] sm:$0xff] }
  0x1a   :  { %460 = vmatprep.subr.bf16.mxu0 %v459_v14  ;;  %v24_v43 = vld [vmem:[%s805_s0 + $0x50] sm:$0xff]  ;;  %v27_v44 = vld [vmem:[%s805_s0 + $0x68] sm:$0xff]  ;;  %v29_v45 = vld [vmem:[%s805_s0 + $0x78] sm:$0xff] }
  0x1b   :  { %490 = vmatpush3.bf16.msra.mxu1 %v489_v13  ;;  %v26_v46 = vld [vmem:[%s805_s0 + $0x60] sm:$0xff]  ;;  %v28_v47 = vld [vmem:[%s805_s0 + $0x70] sm:$0xff]  ;;  %v31_v48 = vld [vmem:[%s805_s0 + $0x88] sm:$0xff] }
  0x1c   :  { %492 = vmatprep.subr.bf16.mxu1 %v491_v18  ;;  %v33_v49 = vld [vmem:[%s805_s0 + $0x98] sm:$0xff]  ;;  %v30_v50 = vld [vmem:[%s805_s0 + $0x80] sm:$0xff]  ;;  %v32_v51 = vld [vmem:[%s805_s0 + $0x90] sm:$0xff] }
  0x1d   :  { %462 = vmatpush3.bf16.msra.mxu0 %v461_v24  ;;  %v340_v53 = vld [vmem:[%s806_s2] ss:$0 sm:$0xff] }
  0x1e   :  { %464 = vmatprep.subr.bf16.mxu0 %v463_v26 }
  0x1f   :  { %494 = vmatpush3.bf16.msra.mxu1 %v493_v25 }
  0x20   :  { %496 = vmatprep.subr.bf16.mxu1 %v495_v29 }
  0x21   :  { %466 = vmatpush3.bf16.msra.mxu0 %v465_v32 }
  0x23   :  { %498 = vmatpush3.bf16.msra.mxu1 %v497_v33 }
  0x24   :  { %170 = vmatmul.mubr.f32.vlgmr.msra.gmra.mrb[0].mxu0 %v14_v34 }
  0x25   :  { %174 = vmatprep.mubr.f32.mxu0 %v19_v36 }
  0x26   :  { %260 = vmatmul.mubr.f32.vlgmr.msra.gmra.mrb[0].mxu1 %v16_v35 }
  0x27   :  { %264 = vmatprep.mubr.f32.mxu1 %v21_v37 }
  0x28   :  { %175 = vmatmul.mubr.f32.gmra.mrb[2].mxu0 %v18_v38 }
  0x29   :  { %179 = vmatprep.mubr.f32.mxu0 %v23_v40 }
  0x2a   :  { %265 = vmatmul.mubr.f32.gmra.mrb[2].mxu1 %v20_v39 }
  0x2b   :  { %269 = vmatprep.mubr.f32.mxu1 %v25_v41 }
  0x2c   :  { %180 = vmatmul.mubr.f32.gmra.mrb[4].mxu0 %v22_v42 }
  0x2d   :  { %184 = vmatprep.mubr.f32.mxu0 %v27_v44 }
  0x2e   :  { %270 = vmatmul.mubr.f32.gmra.mrb[4].mxu1 %v24_v43 }
  0x2f   :  { %274 = vmatprep.mubr.f32.mxu1 %v29_v45 }
  0x30   :  { %185 = vmatmul.mubr.f32.gmra.mrb[6].mxu0 %v26_v46 }
  0x31   :  { %189 = vmatprep.mubr.f32.mxu0 %v31_v48 }
  0x32   :  { %275 = vmatmul.mubr.f32.gmra.mrb[6].mxu1 %v28_v47 }
  0x33   :  { %279 = vmatprep.mubr.f32.mxu1 %v33_v49 }
  0x34   :  { %190 = vmatmul.mubr.f32.gmra.mrb[8].mxu0 %v30_v50 }
  0x36   :  { %280 = vmatmul.mubr.f32.gmra.mrb[8].mxu1 %v32_v51 }
  0xf7   :  { %v373_v52 = vpop.f32.mrb[0].mxu0 }
  0xf8   :  { %v374_v54 = vpop.f32.mrb[1].mxu0 }
  0xf9   :  { %v420_v55 = vpop.f32.mrb[0].mxu1  ;;  %v375_v56 = vadd.f32 %v374_v54, %v373_v52 }
  0xfa   :  { %v421_v57 = vpop.f32.mrb[1].mxu1 }
  0xfb   :  { %v422_v58 = vadd.f32 %v421_v57, %v420_v55  ;;  %v172_v59 = vadd.f32 %v375_v56, %v340_v53  ;;  %v376_v60 = vpop.f32.mrb[2].mxu0 }
  0xfc   :  { %v377_v61 = vpop.f32.mrb[3].mxu0 }
  0xfd   :  { %v423_v62 = vpop.f32.mrb[2].mxu1  ;;  %v262_v63 = vadd.f32 %v422_v58, %v172_v59  ;;  %v378_v0 = vadd.f32 %v377_v61, %v376_v60 }
  0xfe   :  { %v424_v1 = vpop.f32.mrb[3].mxu1 }
  0xff   :  { %v425_v2 = vadd.f32 %v424_v1, %v423_v62  ;;  %v290_v3 = vmul.f32 0.044715, %v262_v63  ;;  %v177_v4 = vadd.f32 %v378_v0, %v340_v53  ;;  %v379_v5 = vpop.f32.mrb[4].mxu0  ;;  %v285_v52 = vmul.f32 0.5, %v262_v63 }
 0x100   :  { %v380_v6 = vpop.f32.mrb[5].mxu0 }
 0x101   :  { %v426_v7 = vpop.f32.mrb[4].mxu1  ;;  %v295_v8 = vmul.f32 %v290_v3, %v262_v63  ;;  %v267_v9 = vadd.f32 %v425_v2, %v177_v4  ;;  %v381_v10 = vadd.f32 %v380_v6, %v379_v5 }
 0x102   :  { %v427_v11 = vpop.f32.mrb[5].mxu1 }
 0x103   :  { %v428_v12 = vadd.f32 %v427_v11, %v426_v7  ;;  %v300_v13 = vmul.f32 %v295_v8, %v262_v63  ;;  %v291_v14 = vmul.f32 0.044715, %v267_v9  ;;  %v182_v15 = vadd.f32 %v381_v10, %v340_v53  ;;  %v382_v16 = vpop.f32.mrb[6].mxu0 }
 0x104   :  { %v383_v17 = vpop.f32.mrb[7].mxu0  ;;  %v286_v59 = vmul.f32 0.5, %v267_v9 }
 0x105   :  { %v429_v18 = vpop.f32.mrb[6].mxu1  ;;  %v305_v19 = vadd.f32 %v300_v13, %v262_v63  ;;  %v296_v20 = vmul.f32 %v291_v14, %v267_v9  ;;  %v272_v21 = vadd.f32 %v428_v12, %v182_v15  ;;  %v384_v22 = vadd.f32 %v383_v17, %v382_v16 }
 0x106   :  { %v430_v23 = vpop.f32.mrb[7].mxu1 }
 0x107   :  { %v431_v24 = vadd.f32 %v430_v23, %v429_v18  ;;  %v310_v25 = vmul.f32 0.7978846, %v305_v19  ;;  %v301_v26 = vmul.f32 %v296_v20, %v267_v9  ;;  %v292_v27 = vmul.f32 0.044715, %v272_v21  ;;  %v385_v28 = vpop.f32.mrb[8].mxu0 }
 0x108   :  { %v187_v29 = vadd.f32 %v384_v22, %v340_v53  ;;  %v386_v30 = vpop.f32.mrb[9].mxu0  ;;  %v287_v63 = vmul.f32 0.5, %v272_v21 }
 0x109   :  { %v432_v31 = vpop.f32.mrb[8].mxu1  ;;  %499 = vtanh.f32 %v310_v25  ;;  %v306_v32 = vadd.f32 %v301_v26, %v267_v9  ;;  %v297_v33 = vmul.f32 %v292_v27, %v272_v21  ;;  %v387_v34 = vadd.f32 %v386_v30, %v385_v28 }
 0x10a   :  { %v433_v35 = vpop.f32.mrb[9].mxu1  ;;  %v277_v36 = vadd.f32 %v431_v24, %v187_v29 }
 0x10b   :  { %v434_v37 = vadd.f32 %v433_v35, %v432_v31  ;;  %v311_v38 = vmul.f32 0.7978846, %v306_v32  ;;  %v302_v39 = vmul.f32 %v297_v33, %v272_v21  ;;  %v192_v40 = vadd.f32 %v387_v34, %v340_v53 }
 0x10c   :  { %v293_v41 = vmul.f32 0.044715, %v277_v36  ;;  %v288_v3 = vmul.f32 0.5, %v277_v36 }
 0x10d   :  { %501 = vtanh.f32 %v311_v38  ;;  %v307_v42 = vadd.f32 %v302_v39, %v272_v21  ;;  %v282_v43 = vadd.f32 %v434_v37, %v192_v40 }
 0x10e   :  { %v298_v44 = vmul.f32 %v293_v41, %v277_v36 }
 0x10f   :  { %v312_v45 = vmul.f32 0.7978846, %v307_v42  ;;  %v294_v46 = vmul.f32 0.044715, %v282_v43  ;;  %v289_v7 = vmul.f32 0.5, %v282_v43 }
 0x110   :  { %v303_v47 = vmul.f32 %v298_v44, %v277_v36 }
 0x111   :  { %503 = vtanh.f32 %v312_v45  ;;  %v299_v48 = vmul.f32 %v294_v46, %v282_v43 }
 0x112   :  { %v308_v49 = vadd.f32 %v303_v47, %v277_v36 }
 0x113   :  { %v500_v50 = vpop.eup %499  ;;  %v304_v51 = vmul.f32 %v299_v48, %v282_v43 }
 0x114   :  { %v320_v54 = vadd.f32 1.0, %v500_v50  ;;  %v313_v55 = vmul.f32 0.7978846, %v308_v49 }
 0x115   :  { %v309_v56 = vadd.f32 %v304_v51, %v282_v43 }
 0x116   :  { %v325_v57 = vmul.f32 %v320_v54, %v285_v52  ;;  %505 = vtanh.f32 %v313_v55 }
 0x117   :  { %v502_v53 = vpop.eup %501  ;;  %v314_v58 = vmul.f32 0.7978846, %v309_v56 }
 0x118   :  { %331 = vst.msk [vmem:[%s807_s3] sm:$0xff] %vm330_vm0, %v325_v57  ;;  %v321_v60 = vadd.f32 1.0, %v502_v53 }
 0x119   :  { %507 = vtanh.f32 %v314_v58 }
 0x11a   :  { %v326_v61 = vmul.f32 %v321_v60, %v286_v59 }
 0x11b   :  { %v504_v62 = vpop.eup %503 }
 0x11c   :  { %332 = vst.msk [vmem:[%s807_s3 + $0x8] sm:$0xff] %vm330_vm0, %v326_v61  ;;  %v322_v0 = vadd.f32 1.0, %v504_v62 }
 0x11e   :  { %v327_v1 = vmul.f32 %v322_v0, %v287_v63 }
 0x120   :  { %v506_v2 = vpop.eup %505  ;;  %333 = vst.msk [vmem:[%s807_s3 + $0x10] sm:$0xff] %vm330_vm0, %v327_v1 }
 0x121   :  { %v323_v4 = vadd.f32 1.0, %v506_v2 }
 0x123   :  { %v508_v5 = vpop.eup %507  ;;  %v328_v6 = vmul.f32 %v323_v4, %v288_v3 }
 0x124   :  { %v324_v8 = vadd.f32 1.0, %v508_v5 }
 0x125   :  { %334 = vst.msk [vmem:[%s807_s3 + $0x18] sm:$0xff] %vm330_vm0, %v328_v6 }
 0x126   :  { %v329_v9 = vmul.f32 %v324_v8, %v289_v7 }
 0x128   :  { %335 = vst.msk [vmem:[%s807_s3 + $0x20] sm:$0xff] %vm330_vm0, %v329_v9 }

// kernel: fwd.14
= control target key start
LH: loop header
LB: loop body
LE: loop exit
PB: predicated region body
PF: predicated region fallthrough
CT: control target
= control target key end

     0   :  { %vm34_vm0 = vcmask 523264   ;;  %vm47_vm1 = vcmask 521216   ;;  %s236_s0 = inlined_call_operand.vmem [shape: f32[38,64], index: 0, kind: input, shape index: {}]   ;;  %s237_s1 = inlined_call_operand.vmem [shape: f32[38,64], index: 1, kind: input, shape index: {}]   ;;  %s238_s2 = inlined_call_operand.vmem [shape: f32[1,64], index: 2, kind: input, shape index: {}]   ;;  %s239_s3 = inlined_call_operand.vmem [shape: f32[1,64], index: 3, kind: input, shape index: {}]   ;;  %s240_s4 = inlined_call_operand.vmem [shape: f32[38,64], index: 4, kind: output, shape index: {}]  }
   0x1   :  { %v17_v0 = vld [vmem:[%s236_s0] sm:$0xff]  ;;  %v19_v2 = vld [vmem:[%s236_s0 + $0x10] sm:$0xff]  ;;  %v18_v5 = vld [vmem:[%s236_s0 + $0x8] sm:$0xff] }
   0x2   :  { %v22_v1 = vld [vmem:[%s237_s1] sm:$0xff]  ;;  %v24_v4 = vld [vmem:[%s237_s1 + $0x10] sm:$0xff]  ;;  %v23_v6 = vld [vmem:[%s237_s1 + $0x8] sm:$0xff] }
   0x3   :  { %v27_v3 = vadd.f32 %v22_v1, %v17_v0  ;;  %v29_v7 = vadd.f32 %v24_v4, %v19_v2  ;;  %v28_v8 = vadd.f32 %v23_v6, %v18_v5  ;;  %v20_v9 = vld [vmem:[%s236_s0 + $0x18] sm:$0xff]  ;;  %v21_v11 = vld [vmem:[%s236_s0 + $0x20] sm:$0x3f] }
   0x4   :  { %v25_v10 = vld [vmem:[%s237_s1 + $0x18] sm:$0xff]  ;;  %v26_v14 = vld [vmem:[%s237_s1 + $0x20] sm:$0x3f] }
   0x5   :  { %v35_v12 = vsel %vm34_vm0, %v27_v3, 0.0  ;;  %v30_v13 = vadd.f32 %v25_v10, %v20_v9  ;;  %v41_v15 = vsel %vm34_vm0, %v29_v7, 0.0  ;;  %v38_v16 = vsel %vm34_vm0, %v28_v8, 0.0  ;;  %v133_v61 = vld [vmem:[%s238_s2] ss:$0 sm:$0xff] }
   0x6   :  { %36 = vadd.xlane.f32.xlu0 %v35_v12  ;;  %42 = vadd.xlane.f32.xlu1 %v41_v15  ;;  %v31_v17 = vadd.f32 %v26_v14, %v21_v11  ;;  %v134_v63 = vld [vmem:[%s239_s3] ss:$0 sm:$0xff] }
   0x7   :  { %v44_v18 = vsel %vm34_vm0, %v30_v13, 0.0 }
   0x8   :  { %v48_v19 = vsel %vm47_vm1, %v31_v17, 0.0 }
   0xa   :  { %39 = vadd.xlane.f32.xlu0 %v38_v16  ;;  %45 = vadd.xlane.f32.xlu1 %v44_v18 }
   0xe   :  { %49 = vadd.xlane.f32.xlu0 %v48_v19 }
  0x93   :  { %v37_v20 = vpop.xlane.xlu0 %36  ;;  %v43_v22 = vpop.xlane.xlu1 %42 }
  0x94   :  { %v52_v21 = vmul.f32 0.015625, %v37_v20  ;;  %v54_v23 = vmul.f32 0.015625, %v43_v22 }
  0x96   :  { %v57_v24 = vsub.f32 %v27_v3, %v52_v21  ;;  %v59_v25 = vsub.f32 %v29_v7, %v54_v23 }
  0x97   :  { %v40_v26 = vpop.xlane.xlu0 %39  ;;  %v46_v28 = vpop.xlane.xlu1 %45 }
  0x98   :  { %v53_v27 = vmul.f32 0.015625, %v40_v26  ;;  %v62_v29 = vmul.f32 %v57_v24, %v57_v24  ;;  %v55_v30 = vmul.f32 0.015625, %v46_v28  ;;  %v64_v31 = vmul.f32 %v59_v25, %v59_v25 }
  0x9a   :  { %v58_v32 = vsub.f32 %v28_v8, %v53_v27  ;;  %v67_v33 = vsel %vm34_vm0, %v62_v29, 0.0  ;;  %v60_v34 = vsub.f32 %v30_v13, %v55_v30  ;;  %v73_v37 = vsel %vm34_vm0, %v64_v31, 0.0 }
  0x9b   :  { %68 = vadd.xlane.f32.xlu1 %v67_v33  ;;  %v50_v35 = vpop.xlane.xlu0 %49 }
  0x9c   :  { %v56_v36 = vmul.f32 0.015625, %v50_v35  ;;  %v63_v38 = vmul.f32 %v58_v32, %v58_v32  ;;  %v65_v39 = vmul.f32 %v60_v34, %v60_v34 }
  0x9e   :  { %v61_v40 = vsub.f32 %v31_v17, %v56_v36  ;;  %v70_v41 = vsel %vm34_vm0, %v63_v38, 0.0  ;;  %v76_v42 = vsel %vm34_vm0, %v65_v39, 0.0 }
  0x9f   :  { %74 = vadd.xlane.f32.xlu1 %v73_v37  ;;  %71 = vadd.xlane.f32.xlu0 %v70_v41 }
  0xa0   :  { %v66_v43 = vmul.f32 %v61_v40, %v61_v40 }
  0xa2   :  { %v79_v44 = vsel %vm47_vm1, %v66_v43, 0.0 }
  0xa3   :  { %77 = vadd.xlane.f32.xlu0 %v76_v42  ;;  %80 = vadd.xlane.f32.xlu1 %v79_v44 }
 0x128   :  { %v69_v45 = vpop.xlane.xlu1 %68 }
 0x129   :  { %v82_v46 = vmul.f32 0.015625, %v69_v45 }
 0x12b   :  { %v87_v47 = vadd.f32 1e-05, %v82_v46 }
 0x12c   :  { %v75_v48 = vpop.xlane.xlu1 %74  ;;  %v72_v49 = vpop.xlane.xlu0 %71 }
 0x12d   :  { %135 = vrsqrt.f32 %v87_v47  ;;  %v84_v50 = vmul.f32 0.015625, %v75_v48  ;;  %v83_v51 = vmul.f32 0.015625, %v72_v49 }
 0x12f   :  { %v89_v52 = vadd.f32 1e-05, %v84_v50  ;;  %v88_v53 = vadd.f32 1e-05, %v83_v51 }
 0x130   :  { %v81_v54 = vpop.xlane.xlu1 %80  ;;  %v78_v55 = vpop.xlane.xlu0 %77 }
 0x131   :  { %137 = vrsqrt.f32 %v89_v52  ;;  %v86_v56 = vmul.f32 0.015625, %v81_v54  ;;  %v85_v57 = vmul.f32 0.015625, %v78_v55 }
 0x132   :  { %139 = vrsqrt.f32 %v88_v53 }
 0x133   :  { %v91_v58 = vadd.f32 1e-05, %v86_v56  ;;  %v90_v59 = vadd.f32 1e-05, %v85_v57 }
 0x135   :  { %141 = vrsqrt.f32 %v91_v58 }
 0x136   :  { %143 = vrsqrt.f32 %v90_v59 }
 0x137   :  { %v136_v60 = vpop.eup %135 }
 0x138   :  { %v97_v62 = vmul.f32 %v136_v60, %v57_v24 }
 0x13a   :  { %v108_v0 = vmul.f32 %v133_v61, %v97_v62 }
 0x13b   :  { %v138_v1 = vpop.eup %137 }
 0x13c   :  { %v140_v2 = vpop.eup %139  ;;  %v119_v3 = vadd.f32 %v134_v63, %v108_v0  ;;  %v99_v4 = vmul.f32 %v138_v1, %v59_v25 }
 0x13d   :  { %v98_v5 = vmul.f32 %v140_v2, %v58_v32 }
 0x13e   :  { %124 = vst.msk [vmem:[%s240_s4] sm:$0xff] %vm34_vm0, %v119_v3  ;;  %v110_v6 = vmul.f32 %v133_v61, %v99_v4 }
 0x13f   :  { %v142_v7 = vpop.eup %141  ;;  %v109_v8 = vmul.f32 %v133_v61, %v98_v5 }
 0x140   :  { %v144_v9 = vpop.eup %143  ;;  %v121_v10 = vadd.f32 %v134_v63, %v110_v6  ;;  %v101_v11 = vmul.f32 %v142_v7, %v61_v40 }
 0x141   :  { %v120_v12 = vadd.f32 %v134_v63, %v109_v8  ;;  %v100_v13 = vmul.f32 %v144_v9, %v60_v34 }
 0x142   :  { %126 = vst.msk [vmem:[%s240_s4 + $0x10] sm:$0xff] %vm34_vm0, %v121_v10  ;;  %v112_v14 = vmul.f32 %v133_v61, %v101_v11 }
 0x143   :  { %125 = vst.msk [vmem:[%s240_s4 + $0x8] sm:$0xff] %vm34_vm0, %v120_v12  ;;  %v111_v15 = vmul.f32 %v133_v61, %v100_v13 }
 0x144   :  { %v123_v16 = vadd.f32 %v134_v63, %v112_v14 }
 0x145   :  { %v122_v17 = vadd.f32 %v134_v63, %v111_v15 }
 0x146   :  { %128 = vst.msk [vmem:[%s240_s4 + $0x20] sm:$0x3f] %vm47_vm1, %v123_v16 }
 0x147   :  { %127 = vst.msk [vmem:[%s240_s4 + $0x18] sm:$0xff] %vm34_vm0, %v122_v17 }

// kernel: fwd.17
= control target key start
LH: loop header
LB: loop body
LE: loop exit
PB: predicated region body
PF: predicated region fallthrough
CT: control target
= control target key end

     0   :  { %v222_v0 = vmov 0.0|0.0   ;;  %vm223_vm0 = vmmov 0   ;;  %v224_v6 = vmov 0.0   ;;  %vm34_vm1 = vcmask 523264   ;;  %s307_s1 = inlined_call_operand.vmem [shape: f32[64,128], index: 1, kind: input, shape index: {}]   ;;  %s308_s0 = inlined_call_operand.vmem [shape: f32[38,64], index: 0, kind: input, shape index: {}]   ;;  %s309_s2 = inlined_call_operand.vmem [shape: f32[1,128], index: 2, kind: input, shape index: {}]   ;;  %s310_s3 = inlined_call_operand.vmem [shape: f32[38,128], index: 3, kind: output, shape index: {}]  }
   0x1   :  { %199 = vmatprep.subr.bf16.mxu0 %v222_v0  ;;  %v19_v1 = vld [vmem:[%s307_s1] sm:$0xff]  ;;  %v20_v2 = vld [vmem:[%s307_s1 + $0x8] sm:$0xff]  ;;  %211 = vmatprep.subr.bf16.mxu1 %v222_v0  ;;  %v21_v3 = vld [vmem:[%s307_s1 + $0x10] sm:$0xff] }
   0x2   :  { %v200_v4 = vpack.c.bf16 %v20_v2, %v19_v1  ;;  %v22_v5 = vld [vmem:[%s307_s1 + $0x18] sm:$0xff]  ;;  %184 = vmatprep.mubr.msk.f32.mxu0 %vm223_vm0, %v224_v6  ;;  %193 = vmatprep.mubr.msk.f32.mxu1 %vm223_vm0, %v224_v6  ;;  %v23_v8 = vld [vmem:[%s307_s1 + $0x20] sm:$0xff]  ;;  %v24_v9 = vld [vmem:[%s307_s1 + $0x28] sm:$0xff] }
   0x3   :  { %v203_v7 = vpack.c.bf16 %v22_v5, %v21_v3  ;;  %v206_v10 = vpack.c.bf16 %v24_v9, %v23_v8  ;;  %v25_v11 = vld [vmem:[%s307_s1 + $0x30] sm:$0xff]  ;;  %v26_v12 = vld [vmem:[%s307_s1 + $0x38] sm:$0xff]  ;;  %v14_v14 = vld [vmem:[%s308_s0] sm:$0xff] }
   0x4   :  { %201 = vmatpush3.bf16.msra.mxu0 %v200_v4  ;;  %215 = vmatpush3.bf16.msra.mxu1 %v200_v4  ;;  %v209_v13 = vpack.c.bf16 %v26_v12, %v25_v11  ;;  %v17_v15 = vld [vmem:[%s308_s0 + $0x18] sm:$0xff]  ;;  %v15_v16 = vld [vmem:[%s308_s0 + $0x8] sm:$0xff]  ;;  %v18_v17 = vld [vmem:[%s308_s0 + $0x20] sm:$0x3f] }
   0x5   :  { %202 = vmatprep.subr.bf16.mxu0 %v222_v0  ;;  %212 = vmatprep.subr.bf16.mxu1 %v222_v0  ;;  %v16_v18 = vld [vmem:[%s308_s0 + $0x10] sm:$0xff]  ;;  %v149_v19 = vld [vmem:[%s309_s2] ss:$0 sm:$0xff] }
   0x8   :  { %204 = vmatpush3.bf16.msra.mxu0 %v203_v7  ;;  %216 = vmatpush3.bf16.msra.mxu1 %v203_v7 }
   0x9   :  { %205 = vmatprep.subr.bf16.mxu0 %v222_v0  ;;  %213 = vmatprep.subr.bf16.mxu1 %v222_v0 }
   0xc   :  { %207 = vmatpush3.bf16.msra.mxu0 %v206_v10  ;;  %217 = vmatpush3.bf16.msra.mxu1 %v206_v10 }
   0xd   :  { %208 = vmatprep.subr.bf16.mxu0 %v222_v0  ;;  %214 = vmatprep.subr.bf16.mxu1 %v222_v0 }
  0x10   :  { %210 = vmatpush3.bf16.msra.mxu0 %v209_v13  ;;  %218 = vmatpush3.bf16.msra.mxu1 %v209_v13 }
  0x13   :  { %185 = vmatmul.mubr.msk.f32.vlgmr.msra.gmra.mrb[0].mxu0 %vm34_vm1, %v14_v14  ;;  %194 = vmatmul.mubr.msk.f32.vlgmr.msra.gmra.mrb[0].mxu1 %vm34_vm1, %v17_v15 }
  0x14   :  { %187 = vmatprep.mubr.msk.f32.mxu0 %vm223_vm0, %v224_v6  ;;  %196 = vmatprep.mubr.msk.f32.mxu1 %vm223_vm0, %v224_v6 }
  0x17   :  { %188 = vmatmul.mubr.msk.f32.gmra.mrb[2].mxu0 %vm34_vm1, %v15_v16  ;;  %197 = vmatmul.mubr.msk.f32.gmra.mrb[2].mxu1 %vm34_vm1, %v18_v17 }
  0x18   :  { %190 = vmatprep.mubr.msk.f32.mxu0 %vm223_vm0, %v224_v6 }
  0x1b   :  { %191 = vmatmul.mubr.msk.f32.gmra.mrb[4].mxu0 %vm34_vm1, %v16_v18 }
  0xe6   :  { %v116_v20 = vpop.f32.mrb[0].mxu0  ;;  %v131_v21 = vpop.f32.mrb[0].mxu1 }
  0xe7   :  { %v117_v22 = vadd.f32 %v149_v19, %v116_v20  ;;  %v186_v23 = vpop.f32.mrb[1].mxu0  ;;  %v132_v24 = vadd.f32 %v149_v19, %v131_v21  ;;  %v195_v25 = vpop.f32.mrb[1].mxu1 }
  0xe9   :  { %140 = vst [vmem:[%s310_s3] sm:$0xff] %v117_v22  ;;  %143 = vst [vmem:[%s310_s3 + $0x18] sm:$0xff] %v132_v24 }
  0xea   :  { %v121_v26 = vpop.f32.mrb[2].mxu0  ;;  %v136_v27 = vpop.f32.mrb[2].mxu1 }
  0xeb   :  { %v122_v28 = vadd.f32 %v149_v19, %v121_v26  ;;  %v189_v29 = vpop.f32.mrb[3].mxu0  ;;  %v137_v30 = vadd.f32 %v149_v19, %v136_v27  ;;  %v198_v31 = vpop.f32.mrb[3].mxu1 }
  0xed   :  { %141 = vst [vmem:[%s310_s3 + $0x8] sm:$0xff] %v122_v28  ;;  %144 = vst [vmem:[%s310_s3 + $0x20] sm:$0x3f] %v137_v30 }
  0xee   :  { %v126_v32 = vpop.f32.mrb[4].mxu0 }
  0xef   :  { %v127_v33 = vadd.f32 %v149_v19, %v126_v32  ;;  %v192_v34 = vpop.f32.mrb[5].mxu0 }
  0xf1   :  { %142 = vst [vmem:[%s310_s3 + $0x10] sm:$0xff] %v127_v33 }

// kernel: fwd.15
= control target key start
LH: loop header
LB: loop body
LE: loop exit
PB: predicated region body
PF: predicated region fallthrough
CT: control target
= control target key end

     0   :  { %s3016_s25 = smov 0   ;;  %s3523_s0 = inlined_call_operand.vmem [shape: f32[2,19,64], index: 0, kind: input, shape index: {}]   ;;  %s3524_s1 = inlined_call_operand.vmem [shape: f32[1,64], index: 1, kind: input, shape index: {}, may-alias: {1,7}]   ;;  %s3525_s2 = inlined_call_operand.vmem [shape: f32[1,64], index: 2, kind: input, shape index: {}, may-alias: {2,6,8,12}]   ;;  %s3526_s3 = inlined_call_operand.vmem [shape: f32[64,192], index: 3, kind: input, shape index: {}]   ;;  %s3527_s4 = inlined_call_operand.vmem [shape: f32[1,192], index: 4, kind: input, shape index: {}]   ;;  %s3528_s5 = inlined_call_operand.vmem [shape: f32[64,64], index: 5, kind: input, shape index: {}]   ;;  %s3529_s6 = inlined_call_operand.vmem [shape: f32[1,64], index: 6, kind: input, shape index: {}, may-alias: {2,6,8,12}]   ;;  %s3530_s7 = inlined_call_operand.vmem [shape: f32[1,64], index: 7, kind: input, shape index: {}, may-alias: {1,7}]   ;;  %s3531_s8 = inlined_call_operand.vmem [shape: f32[1,64], index: 8, kind: input, shape index: {}, may-alias: {2,6,8,12}]   ;;  %s3532_s9 = inlined_call_operand.vmem [shape: f32[64,128], index: 9, kind: input, shape index: {}]   ;;  %s3533_s10 = inlined_call_operand.vmem [shape: f32[1,128], index: 10, kind: input, shape index: {}]   ;;  %s3534_s11 = inlined_call_operand.vmem [shape: f32[128,64], index: 11, kind: input, shape index: {}]   ;;  %s3535_s12 = inlined_call_operand.vmem [shape: f32[1,64], index: 12, kind: input, shape index: {}, may-alias: {2,6,8,12}]   ;;  %s3536_s13 = inlined_call_operand.vmem [shape: f32[2,19,64], index: 13, kind: output, shape index: {}]  }
   0x1 LB: > { %s2303_s26 = sadd.s32 4294967295, %s2934_s25   ;;  %p2307_p0 = scmp.ge.s32.totalorder %s2934_s25, 1  ;;  %s2934_s25 = sphi %s3016_s25, %s23_s25  }
   0x2   : > { %p387_p1 = scmp.lt.s32.totalorder %s2934_s25, 3 }
   0x4   : > { %p388_p2 = pnand %p2307_p0, %p387_p1 }
   0x5   : > { %p431_p3 = scmp.lt.s32.totalorder (!%p388_p2), %s2303_s26, 1  ;;  %vm446_vm0 = vcmask (!%p388_p2), 523264   ;;  %vm453_vm1 = vcmask (!%p388_p2), 518144   ;;  %v507_v21 = vld [vmem:[%s3526_s3 + $0x8] sm:$0xff] (!%p388_p2)  ;;  %v509_v22 = vld [vmem:[%s3526_s3 + $0x18] sm:$0xff] (!%p388_p2)  ;;  %v506_v24 = vld [vmem:[%s3526_s3] sm:$0xff] (!%p388_p2) }
   0x6   : > { %391 = sbr.rel (%p388_p2) target bundleno = 3732 (0xe94), region = 72  ;;  %v2713_v23 = vpack.c.bf16 (!%p388_p2), %v509_v22, %v507_v21  ;;  %v508_v25 = vld [vmem:[%s3526_s3 + $0x10] sm:$0xff] (!%p388_p2)  ;;  %v511_v27 = vld [vmem:[%s3526_s3 + $0x28] sm:$0xff] (!%p388_p2)  ;;  %v513_v28 = vld [vmem:[%s3526_s3 + $0x38] sm:$0xff] (!%p388_p2)  ;;  %v2936_v40 = vmov (!%p388_p2), 0.0   ;;  %s2938_s29 = smov (!%p388_p2), 64  }
   0x7   : > { %v2715_v26 = vpack.c.bf16 (!%p388_p2), %v508_v25, %v506_v24  ;;  %v2717_v29 = vpack.c.bf16 (!%p388_p2), %v513_v28, %v511_v27  ;;  %v510_v30 = vld [vmem:[%s3526_s3 + $0x20] sm:$0xff] (!%p388_p2)  ;;  %v512_v31 = vld [vmem:[%s3526_s3 + $0x30] sm:$0xff] (!%p388_p2)  ;;  %v515_v33 = vld [vmem:[%s3526_s3 + $0x48] sm:$0xff] (!%p388_p2)  ;;  %607 = vmatprep.mubr.f32.mxu0 (!%p388_p2), %v2936_v40  ;;  %vm2939_vm2 = vmmov (!%p388_p2), 0   ;;  %vm772_vm3 = vcmask (!%p388_p2), 1042432   ;;  %s2940_s14 = smov (!%p388_p2), 112  }
   0x8   : > { %2714 = vmatprep.subr.bf16.mxu0 (!%p388_p2), %v2713_v23  ;;  %v2719_v32 = vpack.c.bf16 (!%p388_p2), %v512_v31, %v510_v30  ;;  %v517_v34 = vld [vmem:[%s3526_s3 + $0x58] sm:$0xff] (!%p388_p2)  ;;  %v514_v35 = vld [vmem:[%s3526_s3 + $0x40] sm:$0xff] (!%p388_p2)  ;;  %v516_v37 = vld [vmem:[%s3526_s3 + $0x50] sm:$0xff] (!%p388_p2)  ;;  %2496 = vmatprep.mubr.msk.f32.mxu1 (!%p388_p2), %vm2939_vm2, %v2936_v40  ;;  %s2941_s15 = smov (!%p388_p2), 48   ;;  %vm635_vm4 = vcmask (!%p388_p2), 130048   ;;  %vm728_vm6 = vcmask (!%p388_p2), 154624  }
   0x9   : > { %2716 = vmatpush1.bf16.msra.mxu0 (!%p388_p2), %v2715_v26  ;;  %v2721_v36 = vpack.c.bf16 (!%p388_p2), %v517_v34, %v515_v33  ;;  %v519_v38 = vld [vmem:[%s3526_s3 + $0x68] sm:$0xff] (!%p388_p2)  ;;  %v521_v39 = vld [vmem:[%s3526_s3 + $0x78] sm:$0xff] (!%p388_p2)  ;;  %v2723_v41 = vpack.c.bf16 (!%p388_p2), %v516_v37, %v514_v35  ;;  %v518_v43 = vld [vmem:[%s3526_s3 + $0x60] sm:$0xff] (!%p388_p2)  ;;  %vm735_vm7 = vcmask (!%p388_p2), 149504   ;;  %s2942_s16 = smov (!%p388_p2), 32   ;;  %s2943_s17 = smov (!%p388_p2), 96  }
   0xa   : > { %2718 = vmatprep.subr.bf16.mxu0 (!%p388_p2), %v2717_v29  ;;  %v2725_v42 = vpack.c.bf16 (!%p388_p2), %v521_v39, %v519_v38  ;;  %v520_v44 = vld [vmem:[%s3526_s3 + $0x70] sm:$0xff] (!%p388_p2)  ;;  %v2310_v56 = vld [vmem:[%s3524_s1] ss:$0 sm:$0xff] (!%p388_p2)  ;;  %vm3147_vm5 = vmpackc.low (!%p388_p2), %vm635_vm4, %vm635_vm4 }
   0xb   : > { %v2727_v45 = vpack.c.bf16 (!%p388_p2), %v520_v44, %v518_v43  ;;  %v2311_v58 = vld [vmem:[%s3525_s2] ss:$0 sm:$0xff] (!%p388_p2) }
   0xd   : > { %s3540_s26 = smov (!%p431_p3, %s2303_s26), 1  ;;  %2720 = vmatpush1.bf16.msra.mxu0 %v2719_v32 }
   0xe   : > { %s2805_s27 = smul.u32 24, %s3540_s26  ;;  %2722 = vmatprep.subr.bf16.mxu0 %v2721_v36 }
  0x10   : > { %s3032_s30 = scalar_lea.vmem %s3523_s0, %s2805_s27 }
  0x11   : > { %v441_v0 = vld [vmem:[%s3032_s30] sm:$0xff]  ;;  %v443_v1 = vld [vmem:[%s3032_s30 + $0x10] sm:$0x7]  ;;  %v442_v2 = vld [vmem:[%s3032_s30 + $0x8] sm:$0xff]  ;;  %2724 = vmatpush1.bf16.msra.mxu0 %v2723_v41 }
  0x12   : > { %v447_v3 = vsel %vm446_vm0, %v441_v0, 0.0  ;;  %v454_v4 = vsel %vm453_vm1, %v443_v1, 0.0  ;;  %v450_v5 = vsel %vm446_vm0, %v442_v2, 0.0  ;;  %2726 = vmatprep.subr.bf16.mxu0 %v2725_v42 }
  0x13   : > { %448 = vadd.xlane.f32.xlu0 %v447_v3  ;;  %455 = vadd.xlane.f32.xlu1 %v454_v4 }
  0x15   : > { %2728 = vmatpush1.bf16.msra.mxu0 %v2727_v45 }
  0x17   : > { %451 = vadd.xlane.f32.xlu0 %v450_v5  ;;  %v2937_v5 = vmov 0.0|0.0  }
  0x18   : > { %2733 = vmatprep.subr.bf16.mxu1 %v2937_v5  ;;  %2729 = vmatprep.subr.bf16.mxu0 %v2937_v5 }
  0xa0   : > { %v449_v6 = vpop.xlane.xlu0 %448  ;;  %v456_v7 = vpop.xlane.xlu1 %455 }
  0xa1   : > { %v458_v8 = vmul.f32 0.015625, %v449_v6  ;;  %v460_v9 = vmul.f32 0.015625, %v456_v7  ;;  %v524_v6 = vlaneseq }
  0xa3   : > { %v461_v10 = vsub.f32 %v441_v0, %v458_v8  ;;  %v3040_v11 = vsub.f32 %v443_v1, %v460_v9  ;;  %v525_v7 = vshrl.u32 %v524_v6, 7  ;;  %v522_v9 = vld [vmem:[%s3527_s4] sm:$0x3] }
  0xa4   : > { %v452_v12 = vpop.xlane.xlu0 %451 }
  0xa5   : > { %v459_v13 = vmul.f32 0.015625, %v452_v12  ;;  %v464_v14 = vmul.f32 %v461_v10, %v461_v10  ;;  %v466_v15 = vmul.f32 %v3040_v11, %v3040_v11  ;;  %v526_v8 = vsub.s32 0, %v525_v7 }
  0xa7   : > { %v462_v16 = vsub.f32 %v442_v2, %v459_v13  ;;  %v467_v17 = vsel %vm446_vm0, %v464_v14, 0.0  ;;  %v473_v18 = vsel %vm453_vm1, %v466_v15, 0.0  ;;  %v527_v13 = vrot.slane %v522_v9, %v526_v8 }
  0xa8   : > { %468 = vadd.xlane.f32.xlu1 %v467_v17 }
  0xa9   : > { %v465_v19 = vmul.f32 %v462_v16, %v462_v16 }
  0xab   : > { %v470_v20 = vsel %vm446_vm0, %v465_v19, 0.0 }
  0xac   : > { %474 = vadd.xlane.f32.xlu1 %v473_v18  ;;  %471 = vadd.xlane.f32.xlu0 %v470_v20 }
 0x135   : > { %v469_v46 = vpop.xlane.xlu1 %468 }
 0x136   : > { %v476_v47 = vmul.f32 0.015625, %v469_v46 }
 0x138   : > { %v479_v48 = vadd.f32 1e-05, %v476_v47 }
 0x139   : > { %v475_v49 = vpop.xlane.xlu1 %474  ;;  %v472_v50 = vpop.xlane.xlu0 %471 }
 0x13a   : > { %2859 = vrsqrt.f32 %v479_v48  ;;  %v478_v51 = vmul.f32 0.015625, %v475_v49  ;;  %v477_v52 = vmul.f32 0.015625, %v472_v50 }
 0x13c   : > { %v481_v53 = vadd.f32 1e-05, %v478_v51  ;;  %v480_v54 = vadd.f32 1e-05, %v477_v52 }
 0x13e   : > { %2861 = vrsqrt.f32 %v481_v53 }
 0x13f   : > { %2863 = vrsqrt.f32 %v480_v54 }
 0x144   : > { %v2860_v55 = vpop.eup %2859 }
 0x145   : > { %v485_v57 = vmul.f32 %v2860_v55, %v461_v10  ;;  %v530_v10 = vsub.s32 1, %v525_v7 }
 0x147   : > { %v494_v59 = vmul.f32 %v2310_v56, %v485_v57  ;;  %v531_v14 = vrot.slane %v522_v9, %v530_v10 }
 0x148   : > { %v2862_v60 = vpop.eup %2861 }
 0x149   : > { %v2864_v61 = vpop.eup %2863  ;;  %v503_v62 = vadd.f32 %v2311_v58, %v494_v59  ;;  %v487_v0 = vmul.f32 %v2862_v60, %v3040_v11 }
 0x14a   : > { %v486_v63 = vmul.f32 %v2864_v61, %v462_v16 }
 0x14b   : > { %2312 = vmatmul.mubr.msk.f32.vlgmr.msra.gmra.mrb[0].mxu0 %vm446_vm0, %v503_v62  ;;  %v496_v3 = vmul.f32 %v2310_v56, %v487_v0 }
 0x14c   : > { %613 = vmatprep.mubr.f32.mxu0 %v2936_v40  ;;  %v495_v1 = vmul.f32 %v2310_v56, %v486_v63 }
 0x14d   : > { %v505_v4 = vadd.f32 %v2311_v58, %v496_v3 }
 0x14e   : > { %v504_v2 = vadd.f32 %v2311_v58, %v495_v1 }
 0x150   : > { %2313 = vmatmul.mubr.msk.f32.gmra.mrb[2].mxu0 %vm446_vm0, %v504_v2 }
 0x151   : > { %619 = vmatprep.mubr.f32.mxu0 %v2936_v40 }
 0x154   : > { %2314 = vmatmul.mubr.msk.f32.gmra.mrb[4].mxu0 %vm446_vm0, %v505_v4 }
 0x155   : > { %2481 = vmatprep.mubr.msk.f32.mxu0 %vm2939_vm2, %v2936_v40 }
 0x21e   : > { %v609_v11 = vpop.f32.mrb[0].mxu0 }
 0x21f   : > { %v611_v12 = vpop.f32.mrb[1].mxu0  ;;  %v3113_v16 = vadd.f32 %v609_v11, %v527_v13 }
 0x220   : > { %v612_v19 = vadd.f32 %v611_v12, %v531_v14 }
 0x223   : > { %v615_v15 = vpop.f32.mrb[2].mxu0 }
 0x224   : > { %v3115_v17 = vadd.f32 %v615_v15, %v527_v13  ;;  %v617_v18 = vpop.f32.mrb[3].mxu0 }
 0x225   : > { %v618_v20 = vadd.f32 %v617_v18, %v531_v14 }
 0x226   : > { %v3119_v21 = vpack.i.bf16 %v3115_v17, %v3113_v16 }
 0x227   : > { %v621_v22 = vpop.f32.mrb[4].mxu0  ;;  %v2734_v23 = vpack.c.bf16 %v618_v20, %v612_v19  ;;  %v3121_v24 = vpack.i.bf16 %v618_v20, %v612_v19 }
 0x228   : > { %v3123_v25 = vadd.f32 %v621_v22, %v527_v13  ;;  %v623_v26 = vpop.f32.mrb[5].mxu0  ;;  %2825 = vrot.lane.b32.xlu0 %v3119_v21, %s2938_s29 }
 0x229   : > { %2735 = vmatpush3.bf16.msra.mxu1 %v2734_v23  ;;  %v3130_v27 = vadd.f32 %v623_v26, %v531_v14 }
 0x22a   : > { %633 = vrot.lane.b32.xlu1 %v3123_v25, %s2938_s29  ;;  %2494 = vmatprep.subr.mxu1 %v2936_v40  ;;  %s2944_s29 = smov 16  }
 0x22c   : > { %858 = vrot.lane.b32.xlu0 %v3113_v16, %s2940_s14 }
 0x22d   : > { %2495 = vmatpush3.msk.msra.mxu1 %vm772_vm3, %v3130_v27 }
 0x22e   : > { %2830 = vrot.lane.b32.xlu1 %v3119_v21, %s2941_s15  ;;  %2740 = vmatprep.subr.bf16.mxu1 %v2937_v5 }
 0x230   : > { %862 = vrot.lane.b32.xlu0 %v3123_v25, %s2940_s14 }
 0x232   : > { %868 = vrot.lane.b32.xlu1 %v3123_v25, %s2941_s15 }
 0x236   : > { %860 = vrot.lane.b32.xlu1 %v3115_v17, %s2940_s14 }
 0x29a   : > { %v2826_v28 = vpop.permute.xlu0 %2825 }
 0x29b   : > { %v2828_v29 = vunpack.i.h.bf16 %v2826_v28  ;;  %v2827_v30 = vunpack.i.l.bf16 %v2826_v28 }
 0x29c   : > { %v634_v31 = vpop.permute.xlu1 %633 }
 0x29d   : > { %v2730_v33 = vpack.c.bf16 %v2828_v29, %v2827_v30 }
 0x29e   : > { %v859_v39 = vpop.permute.xlu0 %858 }
 0x29f   : > { %2732 = vmatpush3.bf16.xpose.msk.msra.mxu0 %vm3147_vm5, %v2730_v33 }
 0x2a0   : > { %2479 = vmatprep.subr.mxu0 %v2936_v40  ;;  %v2831_v34 = vpop.permute.xlu1 %2830 }
 0x2a1   : > { %v2833_v35 = vunpack.i.h.bf16 %v2831_v34  ;;  %v2832_v36 = vunpack.i.l.bf16 %v2831_v34 }
 0x2a2   : > { %v863_v42 = vpop.permute.xlu0 %862 }
 0x2a3   : > { %v2737_v37 = vpack.c.bf16 %v2833_v35, %v2832_v36 }
 0x2a4   : > { %v869_v38 = vpop.permute.xlu1 %868 }
 0x2a7   : > { %2480 = vmatpush3.xpose.msk.msra.mxu0 %vm635_vm4, %v634_v31 }
 0x2a8   : > { %2736 = vmatprep.subr.bf16.mxu0 %v2937_v5  ;;  %v861_v41 = vpop.permute.xlu1 %860 }
 0x2aa   : > { %2482 = vmatmul.mubr.msk.f32.vlgmr.msra.gmra.mrb[6].mxu0 %vm635_vm4, %v3113_v16 }
 0x2ab   : > { %2739 = vmatpush3.bf16.xpose.msk.msra.mxu0 %vm3147_vm5, %v2737_v37  ;;  %2484 = vmatprep.mubr.msk.f32.mxu0 %vm2939_vm2, %v2936_v40 }
 0x2ac   : > { %2509 = vmatprep.subr.mxu0 %v2936_v40 }
 0x2ae   : > { %2485 = vmatmul.mubr.msk.f32.gmra.mrb[8].mxu0 %vm635_vm4, %v3115_v17 }
 0x2af   : > { %2487 = vmatprep.mubr.msk.f32.mxu0 %vm2939_vm2, %v2936_v40 }
 0x2b2   : > { %2488 = vmatmul.mubr.msk.f32.gmra.mrb[10].mxu0 %vm635_vm4, %v3123_v25 }
 0x2b3   : > { %2510 = vmatpush3.xpose.msk.msra.mxu0 %vm635_vm4, %v869_v38  ;;  %2511 = vmatprep.mubr.msk.f32.mxu0 %vm2939_vm2, %v2936_v40 }
 0x2b4   : > { %2743 = vmatprep.subr.bf16.mxu0 %v2937_v5 }
 0x2b6   : > { %2512 = vmatmul.mubr.msk.f32.vlgmr.msra.gmra.mrb[12].mxu0 %vm635_vm4, %v859_v39 }
 0x2b7   : > { %2514 = vmatprep.mubr.msk.f32.mxu0 %vm2939_vm2, %v2936_v40 }
 0x2ba   : > { %2515 = vmatmul.mubr.msk.f32.gmra.mrb[14].mxu0 %vm635_vm4, %v861_v41 }
 0x2bb   : > { %2517 = vmatprep.mubr.msk.f32.mxu0 %vm2939_vm2, %v2936_v40 }
 0x2be   : > { %2518 = vmatmul.mubr.msk.f32.gmra.mrb[16].mxu0 %vm635_vm4, %v863_v42 }
 0x2bf   : > { %2539 = vmatprep.mubr.msk.f32.mxu0 %vm2939_vm2, %v2936_v40 }
 0x37d   : > { %v714_v43 = vpop.f32.mrb[6].mxu0 }
 0x37e   : > { %v2483_v44 = vpop.f32.mrb[7].mxu0  ;;  %v729_v45 = vsel %vm728_vm6, %v714_v43, -inf }
 0x37f   : > { %730 = vmax.xlane.f32.xlu1 %v729_v45 }
 0x381   : > { %v719_v46 = vpop.f32.mrb[8].mxu0 }
 0x382   : > { %v2486_v47 = vpop.f32.mrb[9].mxu0  ;;  %v732_v48 = vsel %vm728_vm6, %v719_v46, -inf }
 0x383   : > { %733 = vmax.xlane.f32.xlu0 %v732_v48 }
 0x385   : > { %v724_v49 = vpop.f32.mrb[10].mxu0 }
 0x386   : > { %v2489_v50 = vpop.f32.mrb[11].mxu0  ;;  %v736_v51 = vsel %vm735_vm7, %v724_v49, -inf }
 0x387   : > { %737 = vmax.xlane.f32.xlu0 %v736_v51 }
 0x389   : > { %v948_v52 = vpop.f32.mrb[12].mxu0 }
 0x38a   : > { %v2513_v53 = vpop.f32.mrb[13].mxu0  ;;  %v962_v54 = vsel %vm728_vm6, %v948_v52, -inf }
 0x38b   : > { %963 = vmax.xlane.f32.xlu0 %v962_v54  ;;  %v857_v53 = vld [vmem:[%s3528_s5 + $0x8] sm:$0xff] }
 0x38d   : > { %v953_v55 = vpop.f32.mrb[14].mxu0 }
 0x38e   : > { %v2516_v56 = vpop.f32.mrb[15].mxu0  ;;  %v965_v57 = vsel %vm728_vm6, %v953_v55, -inf }
 0x38f   : > { %966 = vmax.xlane.f32.xlu1 %v965_v57 }
 0x391   : > { %v958_v58 = vpop.f32.mrb[16].mxu0 }
 0x392   : > { %v2519_v59 = vpop.f32.mrb[17].mxu0  ;;  %v968_v60 = vsel %vm735_vm7, %v958_v58, -inf }
 0x393   : > { %969 = vmax.xlane.f32.xlu0 %v968_v60 }
 0x40c   : > { %v731_v61 = vpop.xlane.xlu1 %730 }
 0x40d   : > { %v739_v62 = vsub.f32 %v714_v43, %v731_v61 }
 0x40f   : > { %v742_v63 = vmul.f32 1.442695, %v739_v62  ;;  %v1096_v62 = vld [vmem:[%s3528_s5 + $0x10] sm:$0xff] }
 0x410   : > { %v734_v0 = vpop.xlane.xlu0 %733 }
 0x411   : > { %2865 = vpow2.f32 %v742_v63  ;;  %v740_v1 = vsub.f32 %v719_v46, %v734_v0  ;;  %v1097_v63 = vld [vmem:[%s3528_s5 + $0x18] sm:$0xff] }
 0x412   : > { %v2744_v0 = vpack.c.bf16 %v1097_v63, %v1096_v62 }
 0x413   : > { %v744_v2 = vmul.f32 1.442695, %v740_v1 }
 0x414   : > { %v738_v3 = vpop.xlane.xlu0 %737  ;;  %2745 = vmatpush3.bf16.msra.mxu0 %v2744_v0 }
 0x415   : > { %2867 = vpow2.f32 %v744_v2  ;;  %v741_v4 = vsub.f32 %v724_v49, %v738_v3  ;;  %2749 = vmatprep.subr.bf16.mxu0 %v2937_v5 }
 0x417   : > { %v746_v6 = vmul.f32 1.442695, %v741_v4 }
 0x418   : > { %v964_v7 = vpop.xlane.xlu0 %963 }
 0x419   : > { %2869 = vpow2.f32 %v746_v6  ;;  %v971_v8 = vsub.f32 %v948_v52, %v964_v7  ;;  %v856_v52 = vld [vmem:[%s3528_s5] sm:$0xff] }
 0x41b   : > { %v2866_v9 = vpop.eup %2865  ;;  %v974_v10 = vmul.f32 1.442695, %v971_v8 }
 0x41c   : > { %v967_v11 = vpop.xlane.xlu1 %966  ;;  %v748_v12 = vsel %vm728_vm6, %v2866_v9, 0.0 }
 0x41d   : > { %2871 = vpow2.f32 %v974_v10  ;;  %v972_v13 = vsub.f32 %v953_v55, %v967_v11  ;;  %749 = vadd.xlane.f32.xlu1 %v748_v12  ;;  %v2747_v55 = vpack.c.bf16 %v857_v53, %v856_v52 }
 0x41f   : > { %v2868_v14 = vpop.eup %2867  ;;  %v976_v15 = vmul.f32 1.442695, %v972_v13 }
 0x420   : > { %v970_v18 = vpop.xlane.xlu0 %969  ;;  %v751_v19 = vsel %vm728_vm6, %v2868_v14, 0.0 }
 0x421   : > { %2873 = vpow2.f32 %v976_v15  ;;  %v973_v20 = vsub.f32 %v958_v58, %v970_v18  ;;  %752 = vadd.xlane.f32.xlu0 %v751_v19 }
 0x423   : > { %v2870_v22 = vpop.eup %2869  ;;  %v978_v23 = vmul.f32 1.442695, %v973_v20 }
 0x424   : > { %v754_v26 = vsel %vm735_vm7, %v2870_v22, 0.0 }
 0x425   : > { %2875 = vpow2.f32 %v978_v23  ;;  %755 = vadd.xlane.f32.xlu1 %v754_v26 }
 0x427   : > { %v2872_v28 = vpop.eup %2871 }
 0x428   : > { %v980_v29 = vsel %vm728_vm6, %v2872_v28, 0.0 }
 0x429   : > { %981 = vadd.xlane.f32.xlu0 %v980_v29 }
 0x42b   : > { %v2874_v30 = vpop.eup %2873 }
 0x42c   : > { %v983_v31 = vsel %vm728_vm6, %v2874_v30, 0.0 }
 0x42d   : > { %984 = vadd.xlane.f32.xlu1 %v983_v31 }
 0x42f   : > { %v2876_v33 = vpop.eup %2875 }
 0x430   : > { %v986_v34 = vsel %vm735_vm7, %v2876_v33, 0.0 }
 0x431   : > { %987 = vadd.xlane.f32.xlu0 %v986_v34 }
 0x43e   : > { %2835 = vrot.lane.b32.xlu1 %v3121_v24, %s2940_s14 }
 0x442   : > { %2840 = vrot.lane.b32.xlu1 %v3119_v21, %s2942_s16 }
 0x446   : > { %1286 = vrot.lane.b32.xlu1 %v3123_v25, %s2942_s16 }
 0x447   : > { %1001 = vrot.lane.b32.xlu0 %v3130_v27, %s2940_s14  ;;  %s2945_s14 = smov 80  }
 0x44a   : > { %1276 = vrot.lane.b32.xlu1 %v3113_v16, %s2943_s17 }
 0x44b   : > { %1278 = vrot.lane.b32.xlu0 %v3115_v17, %s2943_s17 }
 0x44e   : > { %1280 = vrot.lane.b32.xlu1 %v3123_v25, %s2943_s17 }
 0x4aa   : > { %v750_v35 = vpop.xlane.xlu1 %749 }
 0x4ab   : > { %2877 = vrcp.f32 %v750_v35 }
 0x4ae   : > { %v753_v36 = vpop.xlane.xlu0 %752 }
 0x4af   : > { %2879 = vrcp.f32 %v753_v36 }
 0x4b2   : > { %v756_v37 = vpop.xlane.xlu1 %755 }
 0x4b3   : > { %2881 = vrcp.f32 %v756_v37 }
 0x4b5   : > { %v2878_v38 = vpop.eup %2877 }
 0x4b6   : > { %v982_v39 = vpop.xlane.xlu0 %981  ;;  %v760_v41 = vmul.f32 %v2878_v38, %v2866_v9 }
 0x4b7   : > { %2883 = vrcp.f32 %v982_v39 }
 0x4b8   : > { %2497 = vmatmul.mubr.msk.f32.vlgmr.msra.gmra.mrb[0].mxu1 %vm728_vm6, %v760_v41 }
 0x4b9   : > { %v2880_v42 = vpop.eup %2879  ;;  %2499 = vmatprep.mubr.msk.f32.mxu1 %vm2939_vm2, %v2936_v40 }
 0x4ba   : > { %v985_v43 = vpop.xlane.xlu1 %984  ;;  %v761_v44 = vmul.f32 %v2880_v42, %v2868_v14 }
 0x4bb   : > { %2885 = vrcp.f32 %v985_v43 }
 0x4bc   : > { %2500 = vmatmul.mubr.msk.f32.gmra.mrb[2].mxu1 %vm728_vm6, %v761_v44 }
 0x4bd   : > { %v2882_v45 = vpop.eup %2881  ;;  %2502 = vmatprep.mubr.msk.f32.mxu1 %vm2939_vm2, %v2936_v40 }
 0x4be   : > { %v2836_v46 = vpop.permute.xlu1 %2835  ;;  %v988_v47 = vpop.xlane.xlu0 %987  ;;  %v762_v48 = vmul.f32 %v2882_v45, %v2870_v22 }
 0x4bf   : > { %v2838_v49 = vunpack.i.h.bf16 %v2836_v46  ;;  %v2837_v50 = vunpack.i.l.bf16 %v2836_v46  ;;  %2887 = vrcp.f32 %v988_v47 }
 0x4c0   : > { %2503 = vmatmul.mubr.msk.f32.gmra.mrb[4].mxu1 %vm728_vm6, %v762_v48 }
 0x4c1   : > { %v2741_v51 = vpack.c.bf16 %v2838_v49, %v2837_v50  ;;  %2526 = vmatprep.mubr.msk.f32.mxu1 %vm2939_vm2, %v2936_v40  ;;  %v2884_v54 = vpop.eup %2883 }
 0x4c2   : > { %v992_v56 = vmul.f32 %v2884_v54, %v2872_v28  ;;  %v1002_v57 = vpop.permute.xlu0 %1001  ;;  %v2841_v7 = vpop.permute.xlu1 %2840 }
 0x4c3   : > { %2742 = vmatpush3.bf16.msra.mxu1 %v2741_v51  ;;  %v2843_v9 = vunpack.i.h.bf16 %v2841_v7  ;;  %v2842_v10 = vunpack.i.l.bf16 %v2841_v7 }
 0x4c4   : > { %2524 = vmatprep.subr.mxu1 %v2936_v40 }
 0x4c5   : > { %v2886_v58 = vpop.eup %2885  ;;  %v2750_v11 = vpack.c.bf16 %v2843_v9, %v2842_v10 }
 0x4c6   : > { %v993_v59 = vmul.f32 %v2886_v58, %v2874_v30  ;;  %v1287_v18 = vpop.permute.xlu1 %1286  ;;  %v1279_v23 = vpop.permute.xlu0 %1278 }
 0x4c7   : > { %2525 = vmatpush3.msk.msra.mxu1 %vm772_vm3, %v1002_v57 }
 0x4c8   : > { %2527 = vmatmul.mubr.msk.f32.vlgmr.msra.gmra.mrb[6].mxu1 %vm728_vm6, %v992_v56  ;;  %2746 = vmatprep.subr.bf16.mxu1 %v2937_v5 }
 0x4c9   : > { %2529 = vmatprep.mubr.msk.f32.mxu1 %vm2939_vm2, %v2936_v40  ;;  %2748 = vmatpush3.bf16.msra.mxu1 %v2747_v55  ;;  %v2888_v60 = vpop.eup %2887 }
 0x4ca   : > { %2753 = vmatprep.subr.bf16.mxu1 %v2937_v5  ;;  %v994_v61 = vmul.f32 %v2888_v60, %v2876_v33  ;;  %v1277_v22 = vpop.permute.xlu1 %1276 }
 0x4cc   : > { %2530 = vmatmul.mubr.msk.f32.gmra.mrb[8].mxu1 %vm728_vm6, %v993_v59 }
 0x4cd   : > { %2532 = vmatprep.mubr.msk.f32.mxu1 %vm2939_vm2, %v2936_v40 }
 0x4ce   : > { %v1281_v26 = vpop.permute.xlu1 %1280 }
 0x4d0   : > { %2533 = vmatmul.mubr.msk.f32.gmra.mrb[10].mxu1 %vm728_vm6, %v994_v61 }
 0x4d1   : > { %2552 = vmatprep.mubr.msk.f32.mxu1 %vm2939_vm2, %v2936_v40 }
 0x58b   : > { %v842_v1 = vpop.f32.mrb[0].mxu1 }
 0x58c   : > { %v2498_v2 = vpop.f32.mrb[1].mxu1  ;;  %2553 = vmatmul.mubr.msk.f32.vlgmr.msra.gmra.mrb[12].mxu1 %vm635_vm4, %v842_v1 }
 0x58d   : > { %2555 = vmatprep.mubr.msk.f32.mxu1 %vm2939_vm2, %v2936_v40 }
 0x58f   : > { %v847_v3 = vpop.f32.mrb[2].mxu1 }
 0x590   : > { %v2501_v4 = vpop.f32.mrb[3].mxu1  ;;  %2556 = vmatmul.mubr.msk.f32.gmra.mrb[14].mxu1 %vm635_vm4, %v847_v3 }
 0x591   : > { %2558 = vmatprep.mubr.msk.f32.mxu1 %vm2939_vm2, %v2936_v40  ;;  %v1512_v4 = vld [vmem:[%s3528_s5 + $0x20] sm:$0xff] }
 0x593   : > { %v852_v6 = vpop.f32.mrb[4].mxu1 }
 0x594   : > { %v2504_v8 = vpop.f32.mrb[5].mxu1  ;;  %2559 = vmatmul.mubr.msk.f32.gmra.mrb[16].mxu1 %vm635_vm4, %v852_v6  ;;  %v1513_v6 = vld [vmem:[%s3528_s5 + $0x28] sm:$0xff] }
 0x595   : > { %2582 = vmatprep.mubr.msk.f32.mxu1 %vm2939_vm2, %v2936_v40  ;;  %v2757_v7 = vpack.c.bf16 %v1513_v6, %v1512_v4 }
 0x59b   : > { %v1082_v12 = vpop.f32.mrb[6].mxu1 }
 0x59c   : > { %v2528_v13 = vpop.f32.mrb[7].mxu1  ;;  %2540 = vmatmul.mubr.msk.f32.vlgmr.msra.gmra.mrb[18].mxu0 %vm635_vm4, %v1082_v12 }
 0x59d   : > { %2752 = vmatpush3.bf16.xpose.msk.msra.mxu0 %vm3147_vm5, %v2750_v11  ;;  %2542 = vmatprep.mubr.msk.f32.mxu0 %vm2939_vm2, %v2936_v40 }
 0x59e   : > { %2565 = vmatprep.subr.mxu0 %v2936_v40 }
 0x59f   : > { %v1087_v14 = vpop.f32.mrb[8].mxu1 }
 0x5a0   : > { %v2531_v15 = vpop.f32.mrb[9].mxu1  ;;  %2543 = vmatmul.mubr.msk.f32.gmra.mrb[20].mxu0 %vm635_vm4, %v1087_v14 }
 0x5a1   : > { %2545 = vmatprep.mubr.msk.f32.mxu0 %vm2939_vm2, %v2936_v40 }
 0x5a3   : > { %v1092_v19 = vpop.f32.mrb[10].mxu1 }
 0x5a4   : > { %v2534_v20 = vpop.f32.mrb[11].mxu1  ;;  %2546 = vmatmul.mubr.msk.f32.gmra.mrb[22].mxu0 %vm635_vm4, %v1092_v19 }
 0x5a5   : > { %2566 = vmatpush3.xpose.msk.msra.mxu0 %vm635_vm4, %v1287_v18  ;;  %2567 = vmatprep.mubr.msk.f32.mxu0 %vm2939_vm2, %v2936_v40 }
 0x5a6   : > { %2756 = vmatprep.subr.bf16.mxu0 %v2937_v5 }
 0x5a8   : > { %2568 = vmatmul.mubr.msk.f32.vlgmr.msra.gmra.mrb[24].mxu0 %vm635_vm4, %v1277_v22 }
 0x5a9   : > { %2570 = vmatprep.mubr.msk.f32.mxu0 %vm2939_vm2, %v2936_v40  ;;  %2758 = vmatpush3.bf16.msra.mxu0 %v2757_v7  ;;  %v1842_v7 = vld [vmem:[%s3528_s5 + $0x30] sm:$0xff] }
 0x5aa   : > { %2763 = vmatprep.subr.bf16.mxu0 %v2937_v5 }
 0x5ac   : > { %2571 = vmatmul.mubr.msk.f32.gmra.mrb[26].mxu0 %vm635_vm4, %v1279_v23 }
 0x5ad   : > { %2573 = vmatprep.mubr.msk.f32.mxu0 %vm2939_vm2, %v2936_v40 }
 0x5b0   : > { %2574 = vmatmul.mubr.msk.f32.gmra.mrb[28].mxu0 %vm635_vm4, %v1281_v26 }
 0x5b1   : > { %2595 = vmatprep.mubr.msk.f32.mxu0 %vm2939_vm2, %v2936_v40 }
 0x65f   : > { %v1262_v28 = vpop.f32.mrb[12].mxu1 }
 0x660   : > { %v2554_v29 = vpop.f32.mrb[13].mxu1 }
 0x663   : > { %v1267_v30 = vpop.f32.mrb[14].mxu1 }
 0x664   : > { %v2557_v31 = vpop.f32.mrb[15].mxu1 }
 0x667   : > { %v1272_v33 = vpop.f32.mrb[16].mxu1 }
 0x668   : > { %v2560_v34 = vpop.f32.mrb[17].mxu1 }
 0x66f   : > { %v1173_v35 = vpop.f32.mrb[18].mxu0 }
 0x670   : > { %v3273_v36 = vadd.f32 %v1262_v28, %v1173_v35  ;;  %v2541_v37 = vpop.f32.mrb[19].mxu0 }
 0x673   : > { %v1178_v38 = vpop.f32.mrb[20].mxu0 }
 0x674   : > { %v3275_v39 = vadd.f32 %v1267_v30, %v1178_v38  ;;  %v2544_v41 = vpop.f32.mrb[21].mxu0 }
 0x677   : > { %v1183_v42 = vpop.f32.mrb[22].mxu0 }
 0x678   : > { %v3277_v43 = vadd.f32 %v1272_v33, %v1183_v42  ;;  %v2547_v44 = vpop.f32.mrb[23].mxu0 }
 0x67b   : > { %v1366_v45 = vpop.f32.mrb[24].mxu0 }
 0x67c   : > { %v2569_v46 = vpop.f32.mrb[25].mxu0  ;;  %v1380_v47 = vsel %vm728_vm6, %v1366_v45, -inf }
 0x67d   : > { %1381 = vmax.xlane.f32.xlu0 %v1380_v47 }
 0x67f   : > { %v1371_v48 = vpop.f32.mrb[26].mxu0 }
 0x680   : > { %v2572_v49 = vpop.f32.mrb[27].mxu0  ;;  %v1383_v50 = vsel %vm728_vm6, %v1371_v48, -inf }
 0x681   : > { %1384 = vmax.xlane.f32.xlu1 %v1383_v50 }
 0x683   : > { %v1376_v51 = vpop.f32.mrb[28].mxu0 }
 0x684   : > { %v2575_v52 = vpop.f32.mrb[29].mxu0  ;;  %v1386_v53 = vsel %vm735_vm7, %v1376_v51, -inf }
 0x685   : > { %1387 = vmax.xlane.f32.xlu0 %v1386_v53 }
 0x692   : > { %1417 = vrot.lane.b32.xlu1 %v3130_v27, %s2943_s17 }
 0x696   : > { %2850 = vrot.lane.b32.xlu1 %v3119_v21, %s2944_s29 }
 0x69a   : > { %1616 = vrot.lane.b32.xlu1 %v3123_v25, %s2944_s29  ;;  %s440_s29 = scalar_lea.vmem %s3536_s13, %s2805_s27 }
 0x70a   : > { %v1382_v54 = vpop.xlane.xlu0 %1381 }
 0x70b   : > { %v1389_v55 = vsub.f32 %v1366_v45, %v1382_v54 }
 0x70d   : > { %v1392_v56 = vmul.f32 1.442695, %v1389_v55 }
 0x70e   : > { %v1385_v57 = vpop.xlane.xlu1 %1384 }
 0x70f   : > { %2889 = vpow2.f32 %v1392_v56  ;;  %v1390_v58 = vsub.f32 %v1371_v48, %v1385_v57 }
 0x711   : > { %v1394_v59 = vmul.f32 1.442695, %v1390_v58 }
 0x712   : > { %v1388_v60 = vpop.xlane.xlu0 %1387 }
 0x713   : > { %2891 = vpow2.f32 %v1394_v59  ;;  %v1391_v61 = vsub.f32 %v1376_v51, %v1388_v60 }
 0x715   : > { %v1396_v62 = vmul.f32 1.442695, %v1391_v61 }
 0x717   : > { %2893 = vpow2.f32 %v1396_v62 }
 0x719   : > { %v2890_v63 = vpop.eup %2889 }
 0x71a   : > { %v1398_v0 = vsel %vm728_vm6, %v2890_v63, 0.0 }
 0x71b   : > { %1399 = vadd.xlane.f32.xlu0 %v1398_v0 }
 0x71d   : > { %v2892_v1 = vpop.eup %2891 }
 0x71e   : > { %v1401_v21 = vsel %vm728_vm6, %v2892_v1, 0.0 }
 0x71f   : > { %1402 = vadd.xlane.f32.xlu0 %v1401_v21 }
 0x721   : > { %v2894_v2 = vpop.eup %2893 }
 0x722   : > { %v1404_v3 = vsel %vm735_vm7, %v2894_v2, 0.0 }
 0x723   : > { %1405 = vadd.xlane.f32.xlu1 %v1404_v3 }
 0x734   : > { %1608 = vrot.lane.b32.xlu1 %v3115_v17, %s2945_s14  ;;  %v1418_v17 = vpop.permute.xlu1 %1417 }
 0x735   : > { %2845 = vrot.lane.b32.xlu0 %v3121_v24, %s2943_s17 }
 0x738   : > { %v2851_v8 = vpop.permute.xlu1 %2850 }
 0x739   : > { %1606 = vrot.lane.b32.xlu0 %v3113_v16, %s2945_s14  ;;  %v2853_v20 = vunpack.i.h.bf16 %v2851_v8  ;;  %v2852_v22 = vunpack.i.l.bf16 %v2851_v8 }
 0x73b   : > { %v2760_v28 = vpack.c.bf16 %v2853_v20, %v2852_v22 }
 0x73c   : > { %v1617_v16 = vpop.permute.xlu1 %1616 }
 0x73d   : > { %1610 = vrot.lane.b32.xlu0 %v3123_v25, %s2945_s14 }
 0x7a8   : > { %v1400_v9 = vpop.xlane.xlu0 %1399 }
 0x7a9   : > { %2895 = vrcp.f32 %v1400_v9 }
 0x7ac   : > { %v1403_v10 = vpop.xlane.xlu0 %1402 }
 0x7ad   : > { %2897 = vrcp.f32 %v1403_v10 }
 0x7b0   : > { %v1406_v25 = vpop.xlane.xlu1 %1405  ;;  %v2846_v11 = vpop.permute.xlu0 %2845 }
 0x7b1   : > { %v2848_v12 = vunpack.i.h.bf16 %v2846_v11  ;;  %v2847_v13 = vunpack.i.l.bf16 %v2846_v11  ;;  %2899 = vrcp.f32 %v1406_v25 }
 0x7b3   : > { %v2754_v14 = vpack.c.bf16 %v2848_v12, %v2847_v13  ;;  %v2896_v15 = vpop.eup %2895 }
 0x7b4   : > { %v1410_v18 = vmul.f32 %v2896_v15, %v2890_v63  ;;  %v1607_v30 = vpop.permute.xlu0 %1606  ;;  %v1609_v32 = vpop.permute.xlu1 %1608 }
 0x7b5   : > { %2755 = vmatpush3.bf16.msra.mxu1 %v2754_v14 }
 0x7b6   : > { %2580 = vmatprep.subr.mxu1 %v2936_v40 }
 0x7b7   : > { %v2898_v19 = vpop.eup %2897 }
 0x7b8   : > { %v1411_v23 = vmul.f32 %v2898_v19, %v2892_v1  ;;  %v1611_v31 = vpop.permute.xlu0 %1610 }
 0x7b9   : > { %2581 = vmatpush3.msk.msra.mxu1 %vm772_vm3, %v1418_v17  ;;  %v1843_v17 = vld [vmem:[%s3528_s5 + $0x38] sm:$0xff] }
 0x7ba   : > { %2583 = vmatmul.mubr.msk.f32.vlgmr.msra.gmra.mrb[18].mxu1 %vm728_vm6, %v1410_v18  ;;  %2759 = vmatprep.subr.bf16.mxu1 %v2937_v5 }
 0x7bb   : > { %2585 = vmatprep.mubr.msk.f32.mxu1 %vm2939_vm2, %v2936_v40  ;;  %v2900_v26 = vpop.eup %2899 }
 0x7bc   : > { %v1412_v29 = vmul.f32 %v2900_v26, %v2894_v2 }
 0x7be   : > { %2586 = vmatmul.mubr.msk.f32.gmra.mrb[20].mxu1 %vm728_vm6, %v1411_v23 }
 0x7bf   : > { %2588 = vmatprep.mubr.msk.f32.mxu1 %vm2939_vm2, %v2936_v40 }
 0x7c0   : > { %2762 = vmatpush3.bf16.xpose.msk.msra.mxu1 %vm3147_vm5, %v2760_v28 }
 0x7c1   : > { %2608 = vmatprep.subr.mxu1 %v2936_v40 }
 0x7c2   : > { %2589 = vmatmul.mubr.msk.f32.gmra.mrb[22].mxu1 %vm728_vm6, %v1412_v29 }
 0x7c3   : > { %2610 = vmatprep.mubr.msk.f32.mxu1 %vm2939_vm2, %v2936_v40 }
 0x7c8   : > { %2609 = vmatpush3.xpose.msk.msra.mxu1 %vm635_vm4, %v1617_v16 }
 0x7c9   : > { %2766 = vmatprep.subr.bf16.mxu1 %v2937_v5 }
 0x7cb   : > { %2611 = vmatmul.mubr.msk.f32.vlgmr.msra.gmra.mrb[24].mxu1 %vm635_vm4, %v1607_v30 }
 0x7cc   : > { %2613 = vmatprep.mubr.msk.f32.mxu1 %vm2939_vm2, %v2936_v40 }
 0x7cf   : > { %2614 = vmatmul.mubr.msk.f32.gmra.mrb[26].mxu1 %vm635_vm4, %v1609_v32 }
 0x7d0   : > { %2616 = vmatprep.mubr.msk.f32.mxu1 %vm2939_vm2, %v2936_v40 }
 0x7d3   : > { %2617 = vmatmul.mubr.msk.f32.gmra.mrb[28].mxu1 %vm635_vm4, %v1611_v31 }
 0x7d4   : > { %2638 = vmatprep.mubr.msk.f32.mxu1 %vm2939_vm2, %v2936_v40 }
 0x88d   : > { %v1498_v33 = vpop.f32.mrb[18].mxu1 }
 0x88e   : > { %v2584_v34 = vpop.f32.mrb[19].mxu1  ;;  %2596 = vmatmul.mubr.msk.f32.vlgmr.msra.gmra.mrb[30].mxu0 %vm635_vm4, %v1498_v33 }
 0x88f   : > { %2598 = vmatprep.mubr.msk.f32.mxu0 %vm2939_vm2, %v2936_v40 }
 0x891   : > { %v1503_v35 = vpop.f32.mrb[20].mxu1 }
 0x892   : > { %v2587_v37 = vpop.f32.mrb[21].mxu1  ;;  %2599 = vmatmul.mubr.msk.f32.gmra.mrb[32].mxu0 %vm635_vm4, %v1503_v35 }
 0x893   : > { %2601 = vmatprep.mubr.msk.f32.mxu0 %vm2939_vm2, %v2936_v40  ;;  %v2367_v37 = vld [vmem:[%s3529_s6] ss:$0 sm:$0xff] }
 0x895   : > { %v1508_v38 = vpop.f32.mrb[22].mxu1 }
 0x896   : > { %v2590_v41 = vpop.f32.mrb[23].mxu1  ;;  %2602 = vmatmul.mubr.msk.f32.gmra.mrb[34].mxu0 %vm635_vm4, %v1508_v38  ;;  %v2925_v38 = vld [vmem:[%s3032_s30] sm:$0xff] }
 0x897   : > { %2625 = vmatprep.mubr.msk.f32.mxu0 %vm2939_vm2, %v2936_v40 }
 0x89e   : > { %v1696_v42 = vpop.f32.mrb[24].mxu1 }
 0x89f   : > { %v2612_v44 = vpop.f32.mrb[25].mxu1  ;;  %v1710_v45 = vsel %vm728_vm6, %v1696_v42, -inf }
 0x8a0   : > { %1711 = vmax.xlane.f32.xlu1 %v1710_v45 }
 0x8a2   : > { %v1701_v46 = vpop.f32.mrb[26].mxu1 }
 0x8a3   : > { %v2615_v47 = vpop.f32.mrb[27].mxu1  ;;  %v1713_v48 = vsel %vm728_vm6, %v1701_v46, -inf }
 0x8a4   : > { %1714 = vmax.xlane.f32.xlu0 %v1713_v48  ;;  %v2926_v47 = vld [vmem:[%s3032_s30 + $0x8] sm:$0xff] }
 0x8a6   : > { %v1706_v49 = vpop.f32.mrb[28].mxu1 }
 0x8a7   : > { %v2618_v50 = vpop.f32.mrb[29].mxu1  ;;  %v1716_v51 = vsel %vm735_vm7, %v1706_v49, -inf }
 0x8a8   : > { %1717 = vmax.xlane.f32.xlu0 %v1716_v51 }
 0x92d   : > { %v1712_v52 = vpop.xlane.xlu1 %1711 }
 0x92e   : > { %v1719_v53 = vsub.f32 %v1696_v42, %v1712_v52 }
 0x930   : > { %v1722_v54 = vmul.f32 1.442695, %v1719_v53 }
 0x931   : > { %v1715_v55 = vpop.xlane.xlu0 %1714 }
 0x932   : > { %2901 = vpow2.f32 %v1722_v54  ;;  %v1720_v56 = vsub.f32 %v1701_v46, %v1715_v55  ;;  %v2927_v54 = vld [vmem:[%s3032_s30 + $0x10] sm:$0x7] }
 0x934   : > { %v1724_v57 = vmul.f32 1.442695, %v1720_v56 }
 0x935   : > { %v1718_v58 = vpop.xlane.xlu0 %1717 }
 0x936   : > { %2903 = vpow2.f32 %v1724_v57  ;;  %v1721_v59 = vsub.f32 %v1706_v49, %v1718_v58 }
 0x938   : > { %v1726_v60 = vmul.f32 1.442695, %v1721_v59 }
 0x93a   : > { %2905 = vpow2.f32 %v1726_v60 }
 0x93c   : > { %v2902_v61 = vpop.eup %2901 }
 0x93d   : > { %v1728_v62 = vsel %vm728_vm6, %v2902_v61, 0.0 }
 0x93e   : > { %1729 = vadd.xlane.f32.xlu0 %v1728_v62 }
 0x940   : > { %v2904_v63 = vpop.eup %2903 }
 0x941   : > { %v1731_v0 = vsel %vm728_vm6, %v2904_v63, 0.0 }
 0x942   : > { %1732 = vadd.xlane.f32.xlu1 %v1731_v0 }
 0x944   : > { %v2906_v1 = vpop.eup %2905 }
 0x945   : > { %v1734_v21 = vsel %vm735_vm7, %v2906_v1, 0.0 }
 0x946   : > { %1735 = vadd.xlane.f32.xlu0 %v1734_v21 }
 0x953   : > { %2855 = vrot.lane.b32.xlu1 %v3121_v24, %s2945_s14  ;;  %v2767_v24 = vpack.c.bf16 %v1843_v17, %v1842_v7 }
 0x955   : > { %2768 = vmatpush3.bf16.msra.mxu1 %v2767_v24  ;;  %v2009_v24 = vld [vmem:[%s3532_s9 + $0x8] sm:$0xff] }
 0x956   : > { %2781 = vmatprep.subr.bf16.mxu1 %v2937_v5 }
 0x95c   : > { %1747 = vrot.lane.b32.xlu0 %v3130_v27, %s2945_s14 }
 0x961   : > { %v1589_v2 = vpop.f32.mrb[30].mxu0 }
 0x962   : > { %v1603_v3 = vadd.f32 %v1589_v2, %v3273_v36  ;;  %v2597_v4 = vpop.f32.mrb[31].mxu0 }
 0x965   : > { %v1594_v6 = vpop.f32.mrb[32].mxu0 }
 0x966   : > { %v1604_v8 = vadd.f32 %v1594_v6, %v3275_v39  ;;  %v2600_v9 = vpop.f32.mrb[33].mxu0 }
 0x967   : > { %v2008_v9 = vld [vmem:[%s3532_s9] sm:$0xff] }
 0x969   : > { %v1599_v16 = vpop.f32.mrb[34].mxu0 }
 0x96a   : > { %v1605_v27 = vadd.f32 %v1599_v16, %v3277_v43  ;;  %v2603_v36 = vpop.f32.mrb[35].mxu0  ;;  %v2770_v16 = vpack.c.bf16 %v2009_v24, %v2008_v9  ;;  %v2370_v9 = vld [vmem:[%s3533_s10] ss:$0 sm:$0xff] }
 0x96b   : > { %v2011_v36 = vld [vmem:[%s3532_s9 + $0x18] sm:$0xff] }
 0x9cb   : > { %v1730_v10 = vpop.xlane.xlu0 %1729 }
 0x9cc   : > { %2907 = vrcp.f32 %v1730_v10 }
 0x9cf   : > { %v1733_v25 = vpop.xlane.xlu1 %1732 }
 0x9d0   : > { %2909 = vrcp.f32 %v1733_v25  ;;  %v2012_v25 = vld [vmem:[%s3532_s9 + $0x20] sm:$0xff] }
 0x9d3   : > { %v2856_v11 = vpop.permute.xlu1 %2855  ;;  %v1736_v12 = vpop.xlane.xlu0 %1735 }
 0x9d4   : > { %v2858_v13 = vunpack.i.h.bf16 %v2856_v11  ;;  %v2857_v14 = vunpack.i.l.bf16 %v2856_v11  ;;  %2911 = vrcp.f32 %v1736_v12  ;;  %v2013_v11 = vld [vmem:[%s3532_s9 + $0x28] sm:$0xff] }
 0x9d5   : > { %v2776_v12 = vpack.c.bf16 %v2013_v11, %v2012_v25 }
 0x9d6   : > { %v2764_v15 = vpack.c.bf16 %v2858_v13, %v2857_v14  ;;  %v2908_v39 = vpop.eup %2907  ;;  %v2014_v13 = vld [vmem:[%s3532_s9 + $0x30] sm:$0xff]  ;;  %v2015_v14 = vld [vmem:[%s3532_s9 + $0x38] sm:$0xff] }
 0x9d7   : > { %v1740_v18 = vmul.f32 %v2908_v39, %v2902_v61  ;;  %v1748_v19 = vpop.permute.xlu0 %1747  ;;  %v2139_v39 = vld [vmem:[%s3534_s11] sm:$0xff] }
 0x9d8   : > { %2765 = vmatpush3.bf16.msra.mxu0 %v2764_v15  ;;  %v2779_v15 = vpack.c.bf16 %v2015_v14, %v2014_v13 }
 0x9d9   : > { %2623 = vmatprep.subr.mxu0 %v2936_v40 }
 0x9da   : > { %v2910_v20 = vpop.eup %2909 }
 0x9db   : > { %v1741_v43 = vmul.f32 %v2910_v20, %v2904_v63 }
 0x9dc   : > { %2624 = vmatpush3.msk.msra.mxu0 %vm772_vm3, %v1748_v19 }
 0x9dd   : > { %2626 = vmatmul.mubr.msk.f32.vlgmr.msra.gmra.mrb[36].mxu0 %vm728_vm6, %v1740_v18  ;;  %2769 = vmatprep.subr.bf16.mxu0 %v2937_v5  ;;  %v2140_v18 = vld [vmem:[%s3534_s11 + $0x8] sm:$0xff] }
 0x9de   : > { %2628 = vmatprep.mubr.msk.f32.mxu0 %vm2939_vm2, %v2936_v40  ;;  %v2912_v22 = vpop.eup %2911  ;;  %2771 = vmatpush3.bf16.msra.mxu0 %v2770_v16  ;;  %v2782_v19 = vpack.c.bf16 %v2140_v18, %v2139_v39 }
 0x9df   : > { %v1742_v23 = vmul.f32 %v2912_v22, %v2906_v1  ;;  %2772 = vmatprep.subr.bf16.mxu0 %v2937_v5 }
 0x9e1   : > { %2629 = vmatmul.mubr.msk.f32.gmra.mrb[38].mxu0 %vm728_vm6, %v1741_v43 }
 0x9e2   : > { %2631 = vmatprep.mubr.msk.f32.mxu0 %vm2939_vm2, %v2936_v40 }
 0x9e5   : > { %2632 = vmatmul.mubr.msk.f32.gmra.mrb[40].mxu0 %vm728_vm6, %v1742_v23 }
 0x9e6   : > { %2663 = vmatprep.mubr.msk.f32.mxu0 %vm2939_vm2, %v2936_v40 }
 0xab0   : > { %v1828_v26 = vpop.f32.mrb[36].mxu0 }
 0xab1   : > { %v2627_v28 = vpop.f32.mrb[37].mxu0  ;;  %2639 = vmatmul.mubr.msk.f32.vlgmr.msra.gmra.mrb[30].mxu1 %vm635_vm4, %v1828_v26 }
 0xab2   : > { %2641 = vmatprep.mubr.msk.f32.mxu1 %vm2939_vm2, %v2936_v40  ;;  %2783 = vmatpush3.bf16.msra.mxu1 %v2782_v19 }
 0xab3   : > { %2784 = vmatprep.subr.bf16.mxu1 %v2937_v5 }
 0xab4   : > { %v1833_v29 = vpop.f32.mrb[38].mxu0 }
 0xab5   : > { %v2630_v30 = vpop.f32.mrb[39].mxu0  ;;  %2642 = vmatmul.mubr.msk.f32.gmra.mrb[32].mxu1 %vm635_vm4, %v1833_v29 }
 0xab6   : > { %2644 = vmatprep.mubr.msk.f32.mxu1 %vm2939_vm2, %v2936_v40 }
 0xab8   : > { %v1838_v32 = vpop.f32.mrb[40].mxu0 }
 0xab9   : > { %v2633_v31 = vpop.f32.mrb[41].mxu0  ;;  %2645 = vmatmul.mubr.msk.f32.gmra.mrb[34].mxu1 %vm635_vm4, %v1838_v32 }
 0xaba   : > { %2704 = vmatprep.mubr.msk.f32.mxu1 %vm2939_vm2, %v2936_v40 }
 0xb84   : > { %v1919_v33 = vpop.f32.mrb[30].mxu1 }
 0xb85   : > { %v1933_v34 = vadd.f32 %v1919_v33, %v1603_v3  ;;  %v2640_v35 = vpop.f32.mrb[31].mxu1  ;;  %v2368_v33 = vld [vmem:[%s3530_s7] ss:$0 sm:$0xff] }
 0xb86   : > { %v2369_v35 = vld [vmem:[%s3531_s8] ss:$0 sm:$0xff] }
 0xb87   : > { %v1936_v41 = vadd.f32 %v2925_v38, %v1933_v34 }
 0xb88   : > { %v1924_v42 = vpop.f32.mrb[32].mxu1 }
 0xb89   : > { %v3384_v44 = vadd.f32 %v2367_v37, %v1936_v41  ;;  %v1934_v45 = vadd.f32 %v1924_v42, %v1604_v8  ;;  %v2643_v46 = vpop.f32.mrb[33].mxu1 }
 0xb8b   : > { %v1937_v48 = vadd.f32 %v2926_v47, %v1934_v45  ;;  %v1951_v49 = vsel %vm446_vm0, %v3384_v44, 0.0 }
 0xb8c   : > { %1952 = vadd.xlane.f32.xlu1 %v1951_v49  ;;  %v1929_v50 = vpop.f32.mrb[34].mxu1 }
 0xb8d   : > { %v3389_v51 = vadd.f32 %v2367_v37, %v1937_v48  ;;  %v1935_v52 = vadd.f32 %v1929_v50, %v1605_v27  ;;  %v2646_v53 = vpop.f32.mrb[35].mxu1  ;;  %v2010_v27 = vld [vmem:[%s3532_s9 + $0x10] sm:$0xff] }
 0xb8e   : > { %v2773_v10 = vpack.c.bf16 %v2011_v36, %v2010_v27  ;;  %v2142_v53 = vld [vmem:[%s3534_s11 + $0x18] sm:$0xff] }
 0xb8f   : > { %v1938_v55 = vadd.f32 %v2927_v54, %v1935_v52  ;;  %v1954_v56 = vsel %vm446_vm0, %v3389_v51, 0.0  ;;  %v2141_v52 = vld [vmem:[%s3534_s11 + $0x10] sm:$0xff] }
 0xb90   : > { %1955 = vadd.xlane.f32.xlu0 %v1954_v56  ;;  %2774 = vmatpush3.bf16.msra.mxu0 %v2773_v10  ;;  %v2785_v54 = vpack.c.bf16 %v2142_v53, %v2141_v52  ;;  %v2144_v56 = vld [vmem:[%s3534_s11 + $0x28] sm:$0xff] }
 0xb91   : > { %v3394_v57 = vadd.f32 %v2367_v37, %v1938_v55  ;;  %2775 = vmatprep.subr.bf16.mxu0 %v2937_v5  ;;  %v2143_v55 = vld [vmem:[%s3534_s11 + $0x20] sm:$0xff] }
 0xb92   : > { %2786 = vmatpush3.bf16.msra.mxu1 %v2785_v54 }
 0xb93   : > { %v1957_v58 = vsel %vm453_vm1, %v3394_v57, 0.0  ;;  %2787 = vmatprep.subr.bf16.mxu1 %v2937_v5 }
 0xb94   : > { %1958 = vadd.xlane.f32.xlu1 %v1957_v58  ;;  %2777 = vmatpush3.bf16.msra.mxu0 %v2776_v12  ;;  %v2788_v58 = vpack.c.bf16 %v2144_v56, %v2143_v55 }
 0xb95   : > { %2778 = vmatprep.subr.bf16.mxu0 %v2937_v5 }
 0xb96   : > { %2789 = vmatpush3.bf16.msra.mxu1 %v2788_v58 }
 0xb97   : > { %2790 = vmatprep.subr.bf16.mxu1 %v2937_v5 }
 0xb98   : > { %2780 = vmatpush3.bf16.msra.mxu0 %v2779_v15 }
 0xc19   : > { %v1953_v59 = vpop.xlane.xlu1 %1952 }
 0xc1a   : > { %v1960_v60 = vmul.f32 0.015625, %v1953_v59  ;;  %v2145_v59 = vld [vmem:[%s3534_s11 + $0x30] sm:$0xff] }
 0xc1c   : > { %v1963_v61 = vsub.f32 %v3384_v44, %v1960_v60  ;;  %v2146_v60 = vld [vmem:[%s3534_s11 + $0x38] sm:$0xff] }
 0xc1d   : > { %v1956_v62 = vpop.xlane.xlu0 %1955 }
 0xc1e   : > { %v1961_v63 = vmul.f32 0.015625, %v1956_v62  ;;  %v1966_v0 = vmul.f32 %v1963_v61, %v1963_v61  ;;  %v2147_v62 = vld [vmem:[%s3534_s11 + $0x40] sm:$0xff] }
 0xc20   : > { %v1964_v1 = vsub.f32 %v3389_v51, %v1961_v63  ;;  %v1969_v21 = vsel %vm446_vm0, %v1966_v0, 0.0  ;;  %v2148_v63 = vld [vmem:[%s3534_s11 + $0x48] sm:$0xff] }
 0xc21   : > { %1970 = vadd.xlane.f32.xlu0 %v1969_v21  ;;  %v1959_v2 = vpop.xlane.xlu1 %1958  ;;  %v2794_v0 = vpack.c.bf16 %v2148_v63, %v2147_v62  ;;  %v2150_v21 = vld [vmem:[%s3534_s11 + $0x58] sm:$0xff] }
 0xc22   : > { %v1962_v3 = vmul.f32 0.015625, %v1959_v2  ;;  %v1967_v4 = vmul.f32 %v1964_v1, %v1964_v1 }
 0xc24   : > { %v1965_v6 = vsub.f32 %v3394_v57, %v1962_v3  ;;  %v1972_v7 = vsel %vm446_vm0, %v1967_v4, 0.0  ;;  %v2151_v3 = vld [vmem:[%s3534_s11 + $0x60] sm:$0xff]  ;;  %v2152_v4 = vld [vmem:[%s3534_s11 + $0x68] sm:$0xff] }
 0xc25   : > { %1973 = vadd.xlane.f32.xlu1 %v1972_v7  ;;  %v2153_v7 = vld [vmem:[%s3534_s11 + $0x70] sm:$0xff] }
 0xc26   : > { %v1968_v17 = vmul.f32 %v1965_v6, %v1965_v6 }
 0xc28   : > { %v1975_v8 = vsel %vm453_vm1, %v1968_v17, 0.0  ;;  %v2154_v17 = vld [vmem:[%s3534_s11 + $0x78] sm:$0xff] }
 0xc29   : > { %1976 = vadd.xlane.f32.xlu0 %v1975_v8  ;;  %v2803_v8 = vpack.c.bf16 %v2154_v17, %v2153_v7 }
 0xcae   : > { %v1971_v20 = vpop.xlane.xlu0 %1970 }
 0xcaf   : > { %v1978_v43 = vmul.f32 0.015625, %v1971_v20 }
 0xcb1   : > { %v1981_v22 = vadd.f32 1e-05, %v1978_v43 }
 0xcb2   : > { %v1974_v23 = vpop.xlane.xlu1 %1973 }
 0xcb3   : > { %2913 = vrsqrt.f32 %v1981_v22  ;;  %v1979_v26 = vmul.f32 0.015625, %v1974_v23 }
 0xcb5   : > { %v1982_v28 = vadd.f32 1e-05, %v1979_v26 }
 0xcb6   : > { %v1977_v29 = vpop.xlane.xlu0 %1976 }
 0xcb7   : > { %2915 = vrsqrt.f32 %v1982_v28  ;;  %v1980_v30 = vmul.f32 0.015625, %v1977_v29 }
 0xcb9   : > { %v1983_v32 = vadd.f32 1e-05, %v1980_v30 }
 0xcbb   : > { %2917 = vrsqrt.f32 %v1983_v32 }
 0xcbd   : > { %v2914_v31 = vpop.eup %2913 }
 0xcbe   : > { %v1987_v34 = vmul.f32 %v2914_v31, %v1963_v61  ;;  %v2791_v61 = vpack.c.bf16 %v2146_v60, %v2145_v59 }
 0xcc0   : > { %v1996_v37 = vmul.f32 %v2368_v33, %v1987_v34  ;;  %2792 = vmatpush3.bf16.msra.mxu1 %v2791_v61 }
 0xcc1   : > { %v2916_v38 = vpop.eup %2915  ;;  %2793 = vmatprep.subr.bf16.mxu1 %v2937_v5 }
 0xcc2   : > { %v2005_v41 = vadd.f32 %v2369_v35, %v1996_v37  ;;  %v1988_v42 = vmul.f32 %v2916_v38, %v1964_v1  ;;  %v2149_v1 = vld [vmem:[%s3534_s11 + $0x50] sm:$0xff] }
 0xcc3   : > { %v2797_v2 = vpack.c.bf16 %v2150_v21, %v2149_v1 }
 0xcc4   : > { %2664 = vmatmul.mubr.msk.f32.vlgmr.msra.gmra.mrb[42].mxu0 %vm446_vm0, %v2005_v41  ;;  %v1997_v45 = vmul.f32 %v2368_v33, %v1988_v42  ;;  %2795 = vmatpush3.bf16.msra.mxu1 %v2794_v0 }
 0xcc5   : > { %v2918_v46 = vpop.eup %2917  ;;  %2666 = vmatprep.mubr.msk.f32.mxu0 %vm2939_vm2, %v2936_v40  ;;  %2796 = vmatprep.subr.bf16.mxu1 %v2937_v5 }
 0xcc6   : > { %v2006_v47 = vadd.f32 %v2369_v35, %v1997_v45  ;;  %v1989_v48 = vmul.f32 %v2918_v46, %v1965_v6  ;;  %v2800_v6 = vpack.c.bf16 %v2152_v4, %v2151_v3 }
 0xcc8   : > { %2667 = vmatmul.mubr.msk.f32.gmra.mrb[44].mxu0 %vm446_vm0, %v2006_v47  ;;  %v1998_v49 = vmul.f32 %v2368_v33, %v1989_v48  ;;  %2798 = vmatpush3.bf16.msra.mxu1 %v2797_v2 }
 0xcc9   : > { %2669 = vmatprep.mubr.msk.f32.mxu0 %vm2939_vm2, %v2936_v40  ;;  %2799 = vmatprep.subr.bf16.mxu1 %v2937_v5 }
 0xcca   : > { %v2007_v50 = vadd.f32 %v2369_v35, %v1998_v49  ;;  %v2374_v49 = vld [vmem:[%s3535_s12] ss:$0 sm:$0xff] }
 0xccc   : > { %2670 = vmatmul.mubr.msk.f32.gmra.mrb[46].mxu0 %vm446_vm0, %v2007_v50  ;;  %2801 = vmatpush3.bf16.msra.mxu1 %v2800_v6 }
 0xccd   : > { %2802 = vmatprep.subr.bf16.mxu1 %v2937_v5 }
 0xcd0   : > { %2804 = vmatpush3.bf16.msra.mxu1 %v2803_v8 }
 0xd97   : > { %v2098_v24 = vpop.f32.mrb[42].mxu0 }
 0xd98   : > { %v2099_v16 = vadd.f32 %v2370_v9, %v2098_v24  ;;  %v2665_v27 = vpop.f32.mrb[43].mxu0 }
 0xd9a   : > { %v2115_v36 = vmul.f32 0.044715, %v2099_v16  ;;  %v2112_v33 = vmul.f32 0.5, %v2099_v16 }
 0xd9b   : > { %v2103_v10 = vpop.f32.mrb[44].mxu0 }
 0xd9c   : > { %v2118_v25 = vmul.f32 %v2115_v36, %v2099_v16  ;;  %v2104_v11 = vadd.f32 %v2370_v9, %v2103_v10  ;;  %v2668_v12 = vpop.f32.mrb[45].mxu0 }
 0xd9e   : > { %v2121_v13 = vmul.f32 %v2118_v25, %v2099_v16  ;;  %v2116_v14 = vmul.f32 0.044715, %v2104_v11  ;;  %v2113_v38 = vmul.f32 0.5, %v2104_v11 }
 0xd9f   : > { %v2108_v15 = vpop.f32.mrb[46].mxu0 }
 0xda0   : > { %v2124_v39 = vadd.f32 %v2121_v13, %v2099_v16  ;;  %v2119_v18 = vmul.f32 %v2116_v14, %v2104_v11  ;;  %v2109_v19 = vadd.f32 %v2370_v9, %v2108_v15  ;;  %v2671_v5 = vpop.f32.mrb[47].mxu0 }
 0xda2   : > { %v2127_v20 = vmul.f32 0.7978846, %v2124_v39  ;;  %v2117_v43 = vmul.f32 0.044715, %v2109_v19  ;;  %v2122_v22 = vmul.f32 %v2119_v18, %v2104_v11  ;;  %v2114_v46 = vmul.f32 0.5, %v2109_v19 }
 0xda4   : > { %2919 = vtanh.f32 %v2127_v20  ;;  %v2120_v23 = vmul.f32 %v2117_v43, %v2109_v19  ;;  %v2125_v26 = vadd.f32 %v2122_v22, %v2104_v11 }
 0xda6   : > { %v2128_v28 = vmul.f32 0.7978846, %v2125_v26  ;;  %v2123_v29 = vmul.f32 %v2120_v23, %v2109_v19 }
 0xda8   : > { %2921 = vtanh.f32 %v2128_v28  ;;  %v2126_v30 = vadd.f32 %v2123_v29, %v2109_v19 }
 0xdaa   : > { %v2129_v32 = vmul.f32 0.7978846, %v2126_v30 }
 0xdac   : > { %2923 = vtanh.f32 %v2129_v32 }
 0xdae   : > { %v2920_v31 = vpop.eup %2919 }
 0xdaf   : > { %v2133_v34 = vadd.f32 1.0, %v2920_v31 }
 0xdb1   : > { %v2136_v35 = vmul.f32 %v2133_v34, %v2112_v33 }
 0xdb2   : > { %v2922_v37 = vpop.eup %2921 }
 0xdb3   : > { %2705 = vmatmul.mubr.f32.vlgmr.msra.gmra.mrb[36].mxu1 %v2136_v35  ;;  %v2134_v41 = vadd.f32 1.0, %v2922_v37 }
 0xdb4   : > { %2707 = vmatprep.mubr.msk.f32.mxu1 %vm2939_vm2, %v2936_v40 }
 0xdb5   : > { %v2137_v42 = vmul.f32 %v2134_v41, %v2113_v38 }
 0xdb6   : > { %v2924_v45 = vpop.eup %2923 }
 0xdb7   : > { %2708 = vmatmul.mubr.f32.gmra.mrb[38].mxu1 %v2137_v42  ;;  %v2135_v47 = vadd.f32 1.0, %v2924_v45 }
 0xdb8   : > { %2710 = vmatprep.mubr.msk.f32.mxu1 %vm2939_vm2, %v2936_v40 }
 0xdb9   : > { %v2138_v48 = vmul.f32 %v2135_v47, %v2114_v46 }
 0xdbb   : > { %2711 = vmatmul.mubr.f32.gmra.mrb[40].mxu1 %v2138_v48 }
 0xe86   : > { %v2228_v50 = vpop.f32.mrb[36].mxu1 }
 0xe87   : > { %v2229_v52 = vadd.f32 %v2374_v49, %v2228_v50  ;;  %v2706_v53 = vpop.f32.mrb[37].mxu1 }
 0xe89   : > { %v2242_v54 = vadd.f32 %v2229_v52, %v3384_v44 }
 0xe8a   : > { %v2233_v55 = vpop.f32.mrb[38].mxu1 }
 0xe8b   : > { %2245 = vst.msk [vmem:[%s440_s29] sm:$0xff] %vm446_vm0, %v2242_v54  ;;  %v2234_v40 = vadd.f32 %v2374_v49, %v2233_v55  ;;  %v2709_v56 = vpop.f32.mrb[39].mxu1 }
 0xe8d   : > { %v2243_v58 = vadd.f32 %v2234_v40, %v3389_v51 }
 0xe8e   : > { %v2238_v59 = vpop.f32.mrb[40].mxu1 }
 0xe8f   : > { %2246 = vst.msk [vmem:[%s440_s29 + $0x8] sm:$0xff] %vm446_vm0, %v2243_v58  ;;  %v2239_v60 = vadd.f32 %v2374_v49, %v2238_v59  ;;  %v2712_v61 = vpop.f32.mrb[41].mxu1 }
 0xe91   : > { %v2244_v62 = vadd.f32 %v2239_v60, %v3394_v57 }
 0xe93   : > { %2247 = vst.msk [vmem:[%s440_s29 + $0x10] sm:$0x7] %vm453_vm1, %v2244_v62 }
 0xe94 PF: > { %s23_s25 = sadd.s32 1, %s2934_s25  }
 0xe95   : > { %p20_p4 = scmp.ge.s32.totalorder %s23_s25, 4  }
 0xe97   :  { %22 = sbr.rel (!%p20_p4) target bundleno = 1 (0x1), region = 102 }

</bundles_post_ra>
